<compile_context>
chip_gen: v7x
topology: tpu7x:2x2x1
jax: 0.10.0
libtpu: 0.0.40
codegen_flags: <defaults>
</compile_context>

<pallas_src>
import math
import functools

import jax
import jax.numpy as jnp
from jax.experimental import pallas as pl
from jax.experimental.pallas import tpu as pltpu

# ---- module constants (from CFEPI_predict.py) ----
B = 2                          # small batch for the demo
PEP_MAX_LEN = 11
HLA_MAX_LEN = 34
L = PEP_MAX_LEN + HLA_MAX_LEN  # tgt_len = 45
D = 64                         # d_model
H = 8                          # n_heads
DK = 64                        # d_k = d_v
HDK = H * DK                   # 512
DFF = 512                      # d_ff
LK = 128                       # lane-padded key length for the attention output
LN_EPS = 1e-5
BN_EPS = 1e-5

# Contract the last dim of both operands: Q [L,DK] . K [LK,DK] -> [L,LK] (no transpose).
_TRANS_B = (((1,), (1,)), ((), ()))


def make_decoder_kernel(nb):
    """Build a kernel that processes `nb` batch elements per grid step."""

    def decoder_kernel(dec_ref, pe_ref, wqkv_ref, fc_ref, ln_ref, scal_ref,
                       dw_ref, bn_ref, w1_ref, w2_ref,
                       out_ref, attn_ref,
                       q_scr, k_scr, v_scr, ctx_scr):
        # Zero K/V scratch once: rows [L:LK] must stay zero for every batch element.
        k_scr[...] = jnp.zeros((LK, HDK), jnp.bfloat16)
        v_scr[...] = jnp.zeros((LK, HDK), jnp.bfloat16)

        col = jax.lax.broadcasted_iota(jnp.int32, (L, LK), 1)
        key_valid = col < L                                     # mask the pad key columns

        for b in range(nb):                                     # static unroll over batch slice
            # -------- positional encoding (dropout == identity at inference) --------
            x = dec_ref[b] + pe_ref[...]                        # [L, D] f32

            # -------- fused Q|K|V projection: one [45,64]@[64,1536] bf16 MXU pass --------
            qkv = jnp.dot(x.astype(jnp.bfloat16), wqkv_ref[...],
                          preferred_element_type=jnp.float32).astype(jnp.bfloat16)
            q_scr[...] = qkv[:, :HDK]                           # 1/sqrt(d_k) folded into W_Q
            k_scr[pl.ds(0, L), :] = qkv[:, HDK:2 * HDK]
            v_scr[pl.ds(0, L), :] = qkv[:, 2 * HDK:]

            # -------- multi-head self-attention (pad mask is all-False) --------
            for h0 in range(0, H, 2):                           # head pairs -> 128-lane ctx stores
                ctx_pair = []
                for h in (h0, h0 + 1):
                    qh = q_scr[:, pl.ds(h * DK, DK)]            # [L, DK]  bf16
                    kh = k_scr[:, pl.ds(h * DK, DK)]            # [LK, DK] bf16 (rows >= L are 0)
                    vh = v_scr[:, pl.ds(h * DK, DK)]            # [LK, DK] bf16
                    s = jax.lax.dot_general(qh, kh, _TRANS_B,
                                            preferred_element_type=jnp.float32)  # [L, LK]
                    s = jnp.where(key_valid, s, -1e9)
                    s = s - jnp.max(s, axis=-1, keepdims=True)
                    e = jnp.exp(s)                              # pad cols underflow to exactly 0
                    p = e * (1.0 / jnp.sum(e, axis=-1, keepdims=True))   # exact softmax rows
                    attn_ref[b, h] = p                          # lane-dense 128-wide store
                    ctx_pair.append(
                        jnp.dot(p.astype(jnp.bfloat16), vh,
                                preferred_element_type=jnp.float32).astype(jnp.bfloat16))
                ctx_scr[:, pl.ds(h0 * DK, 2 * DK)] = jnp.concatenate(ctx_pair, axis=-1)

            # Fused output projection straight from the bf16 context scratch: K = 512.
            att = jnp.dot(ctx_scr[...], fc_ref[...],
                          preferred_element_type=jnp.float32)   # [L, D]
            mha = att + x                                       # residual

            # -------- ConvModule --------
            mu = jnp.mean(mha, axis=-1, keepdims=True)
            var = jnp.mean((mha - mu) ** 2, axis=-1, keepdims=True)
            ln = (mha - mu) * jax.lax.rsqrt(var + LN_EPS)
            ln = ln * ln_ref[0:1, :] + ln_ref[1:2, :]

            # pw_conv_1: Conv2d(1, 2, 1) -> two scalar affine copies, then GLU.
            a0 = ln * scal_ref[0] + scal_ref[2]
            a1 = ln * scal_ref[1] + scal_ref[3]
            g = a0 * jax.nn.sigmoid(a1)                         # [L, D]

            # Depthwise Conv1d(D, D, k=3, pad=1, groups=D) along the sequence axis.
            # Kept as slice+concat on tiny [45,64] operands (proven lowering; a sublane
            # roll on an unaligned 45-row axis is not worth the lowering risk here).
            zrow = jnp.zeros((1, D), jnp.float32)
            gp = jnp.concatenate([zrow, g[:-1, :]], axis=0)     # x[t-1]
            gn = jnp.concatenate([g[1:, :], zrow], axis=0)      # x[t+1]
            y = (gp * dw_ref[0:1, :] + g * dw_ref[1:2, :] + gn * dw_ref[2:3, :]
                 + dw_ref[3:4, :])                              # + per-channel bias

            # BatchNorm1d in eval mode (running stats), then ReLU.
            # TODO(synk): training-mode BatchNorm (batch statistics) not implemented; eval semantics used.
            y = (y - bn_ref[2:3, :]) * jax.lax.rsqrt(bn_ref[3:4, :] + BN_EPS)
            y = y * bn_ref[0:1, :] + bn_ref[1:2, :]
            y = jnp.maximum(y, 0.0)

            # pw_conv_2: Conv2d(1, 1, 1) scalar affine; dropout == identity.
            y = y * scal_ref[4] + scal_ref[5]
            conv_out = y + mha                                  # residual

            # -------- position-wise FFN + fresh LayerNorm (gamma=1, beta=0) --------
            hdn = jnp.maximum(
                jnp.dot(conv_out.astype(jnp.bfloat16), w1_ref[...],
                        preferred_element_type=jnp.float32), 0.0)    # [L, DFF]
            f = jnp.dot(hdn.astype(jnp.bfloat16), w2_ref[...],
                        preferred_element_type=jnp.float32)          # [L, D]
            s2 = f + conv_out
            mu2 = jnp.mean(s2, axis=-1, keepdims=True)
            var2 = jnp.mean((s2 - mu2) ** 2, axis=-1, keepdims=True)
            out_ref[b] = (s2 - mu2) * jax.lax.rsqrt(var2 + LN_EPS)

    return decoder_kernel


def _single_tensorcore_chip():
    """v5e / v6e have one TensorCore per chip -> fold the batch into one grid step."""
    try:
        kind = jax.devices()[0].device_kind.lower()
    except Exception:
        return False
    return any(tag in kind for tag in
               ("v5e", "v5 lite", "v5lite", "v6e", "v6 lite", "v6lite"))


def positional_encoding(length, d_model):
    pos = jnp.arange(length, dtype=jnp.float32)[:, None]
    div = jnp.exp(jnp.arange(0, d_model, 2, dtype=jnp.float32)
                  * (-math.log(10000.0) / d_model))
    pe = jnp.zeros((length, d_model), jnp.float32)
    pe = pe.at[:, 0::2].set(jnp.sin(pos * div))
    pe = pe.at[:, 1::2].set(jnp.cos(pos * div))
    return pe


def init_params(key):
    ks = jax.random.split(key, 10)
    scale = 0.05
    wq_t = scale * jax.random.normal(ks[0], (D, HDK), jnp.float32)   # W_Q.weight.T
    wk_t = scale * jax.random.normal(ks[1], (D, HDK), jnp.float32)
    wv_t = scale * jax.random.normal(ks[2], (D, HDK), jnp.float32)
    fc_t = scale * jax.random.normal(ks[3], (HDK, D), jnp.float32)   # fc.weight.T

    # ConvModule LayerNorm gamma/beta
    ln = jnp.stack([jnp.ones((D,), jnp.float32) +
                    0.01 * jax.random.normal(ks[4], (D,), jnp.float32),
                    0.01 * jax.random.normal(ks[5], (D,), jnp.float32)], axis=0)

    # pw_conv_1 (2 scalar weights + 2 biases), pw_conv_2 (1 weight + 1 bias)
    pw = 0.5 * jax.random.normal(ks[6], (6,), jnp.float32)
    scal = jnp.array([pw[0], pw[1], pw[2], pw[3], pw[4] + 1.0, pw[5]], jnp.float32)

    # depthwise conv: 3 taps + bias, each per-channel [D]
    dw = jnp.concatenate(
        [0.2 * jax.random.normal(ks[7], (3, D), jnp.float32),
         0.05 * jax.random.normal(ks[8], (1, D), jnp.float32)], axis=0)

    # BatchNorm1d: gamma, beta, running_mean, running_var
    bn = jnp.stack([jnp.ones((D,), jnp.float32),
                    jnp.zeros((D,), jnp.float32),
                    jnp.zeros((D,), jnp.float32),
                    jnp.ones((D,), jnp.float32)], axis=0)

    k1, k2 = jax.random.split(ks[9])
    w1_t = scale * jax.random.normal(k1, (D, DFF), jnp.float32)      # fc[0].weight.T
    w2_t = scale * jax.random.normal(k2, (DFF, D), jnp.float32)      # fc[2].weight.T

    return (wq_t, wk_t, wv_t, fc_t, ln, scal, dw, bn, w1_t, w2_t)


def prepare_params(params):
    """One-time host-side prep: fold 1/sqrt(d_k) into W_Q, fuse Q|K|V, cast weights to bf16."""
    (wq_t, wk_t, wv_t, fc_t, ln, scal, dw, bn, w1_t, w2_t) = params
    wqkv = jnp.concatenate([wq_t * (1.0 / math.sqrt(DK)), wk_t, wv_t],
                           axis=1).astype(jnp.bfloat16)               # [D, 3*HDK]
    return (positional_encoding(L, D), wqkv, fc_t.astype(jnp.bfloat16),
            ln, scal, dw, bn, w1_t.astype(jnp.bfloat16), w2_t.astype(jnp.bfloat16))


@functools.partial(jax.jit, static_argnames=("nb",))
def _decoder_call(dec_inputs, kparams, *, nb):
    (pe, wqkv, fc_b, ln, scal, dw, bn, w1_b, w2_b) = kparams
    grid = (B // nb,)
    grid_spec = pltpu.PrefetchScalarGridSpec(
        num_scalar_prefetch=0,
        grid=grid,
        in_specs=[
            pl.BlockSpec((nb, L, D), lambda i: (i, 0, 0)),           # dec_inputs
            pl.BlockSpec((L, D), lambda i: (0, 0)),                  # positional encoding
            pl.BlockSpec((D, 3 * HDK), lambda i: (0, 0)),            # fused [W_Q*scale|W_K|W_V]^T (bf16)
            pl.BlockSpec((HDK, D), lambda i: (0, 0)),                # fc^T (bf16)
            pl.BlockSpec((2, D), lambda i: (0, 0)),                  # ConvModule LN gamma/beta
            pl.BlockSpec(memory_space=pltpu.MemorySpace.SMEM),       # pointwise-conv scalars
            pl.BlockSpec((4, D), lambda i: (0, 0)),                  # depthwise taps + bias
            pl.BlockSpec((4, D), lambda i: (0, 0)),                  # BN gamma/beta/mean/var
            pl.BlockSpec((D, DFF), lambda i: (0, 0)),                # FFN W1^T (bf16)
            pl.BlockSpec((DFF, D), lambda i: (0, 0)),                # FFN W2^T (bf16)
        ],
        out_specs=[
            pl.BlockSpec((nb, L, D), lambda i: (i, 0, 0)),           # dec_outputs
            pl.BlockSpec((nb, H, L, LK), lambda i: (i, 0, 0, 0)),    # lane-padded attention probs
        ],
        scratch_shapes=[
            pltpu.VMEM((L, HDK), jnp.bfloat16),      # Q
            pltpu.VMEM((LK, HDK), jnp.bfloat16),     # K (padded to 128 key rows)
            pltpu.VMEM((LK, HDK), jnp.bfloat16),     # V (padded to 128 key rows)
            pltpu.VMEM((L, HDK), jnp.bfloat16),      # all-head context
        ],
    )
    out_shape = (
        jax.ShapeDtypeStruct((B, L, D), jnp.float32),
        jax.ShapeDtypeStruct((B, H, L, LK), jnp.float32),
    )
    dec_out, attn_padded = pl.pallas_call(
        make_decoder_kernel(nb),
        grid_spec=grid_spec,
        out_shape=out_shape,
        compiler_params=pltpu.CompilerParams(
            dimension_semantics=("parallel",)),     # 2-way TensorCore split on v7x (grid=(B,))
    )(dec_inputs, pe, wqkv, fc_b, ln, scal, dw, bn, w1_b, w2_b)

    # Strip the lane padding of the key axis back to tgt_len.
    return dec_out, attn_padded[:, :, :, :L]


def decoder_forward(dec_inputs, kparams):
    # Single-TC chips (v5e/v6e): fold both batch elements into one grid step.
    # Multi-TC chips (v7x/v4/v5p): one batch element per grid step, sharded across cores.
    nb = B if _single_tensorcore_chip() else 1
    return _decoder_call(dec_inputs, kparams, nb=nb)


if __name__ == "__main__":
    key = jax.random.PRNGKey(0)
    k_in, k_par = jax.random.split(key)
    dec_inputs = jax.random.normal(k_in, (B, L, D), jnp.float32)
    params = init_params(k_par)
    kparams = prepare_params(params)

    dec_out, attn = decoder_forward(dec_inputs, kparams)
    jax.block_until_ready((dec_out, attn))

    assert dec_out.shape == (B, L, D)
    assert attn.shape == (B, H, L, L)
    print("KERNEL_OK")
</pallas_src>

<mosaic_0001>
module attributes {stable_mosaic.version = 11 : i64} {
  func.func @decoder_kernel(%arg0: i32, %arg1: memref<1x45x64xf32, #tpu.memory_space<vmem>>, %arg2: memref<45x64xf32, #tpu.memory_space<vmem>>, %arg3: memref<64x1536xbf16, #tpu.memory_space<vmem>>, %arg4: memref<512x64xbf16, #tpu.memory_space<vmem>>, %arg5: memref<2x64xf32, #tpu.memory_space<vmem>>, %arg6: memref<6xf32, #tpu.memory_space<smem>>, %arg7: memref<4x64xf32, #tpu.memory_space<vmem>>, %arg8: memref<4x64xf32, #tpu.memory_space<vmem>>, %arg9: memref<64x512xbf16, #tpu.memory_space<vmem>>, %arg10: memref<512x64xbf16, #tpu.memory_space<vmem>>, %arg11: memref<1x45x64xf32, #tpu.memory_space<vmem>>, %arg12: memref<1x8x45x128xf32, #tpu.memory_space<vmem>>, %arg13: memref<45x512xbf16, #tpu.memory_space<vmem>>, %arg14: memref<128x512xbf16, #tpu.memory_space<vmem>>, %arg15: memref<128x512xbf16, #tpu.memory_space<vmem>>, %arg16: memref<45x512xbf16, #tpu.memory_space<vmem>>) attributes {dimension_semantics = [#tpu.dimension_semantics<parallel>], iteration_bounds = array<i64: 2>, scalar_prefetch = 0 : i64, scratch_operands = 4 : i64, tpu.core_type = #tpu.core_type<tc>, window_params = [{transform_indices = @transform_0, window_bounds = array<i64: 1, 45, 64>}, {pipeline_mode = #tpu.pipeline_mode<synchronous>, transform_indices = @transform_1, window_bounds = array<i64: 45, 64>}, {pipeline_mode = #tpu.pipeline_mode<synchronous>, transform_indices = @transform_2, window_bounds = array<i64: 64, 1536>}, {pipeline_mode = #tpu.pipeline_mode<synchronous>, transform_indices = @transform_3, window_bounds = array<i64: 512, 64>}, {pipeline_mode = #tpu.pipeline_mode<synchronous>, transform_indices = @transform_4, window_bounds = array<i64: 2, 64>}, {transform_indices = @transform_5, window_bounds = array<i64: 6>}, {pipeline_mode = #tpu.pipeline_mode<synchronous>, transform_indices = @transform_6, window_bounds = array<i64: 4, 64>}, {pipeline_mode = #tpu.pipeline_mode<synchronous>, transform_indices = @transform_7, window_bounds = array<i64: 4, 64>}, {pipeline_mode = #tpu.pipeline_mode<synchronous>, transform_indices = @transform_8, window_bounds = array<i64: 64, 512>}, {pipeline_mode = #tpu.pipeline_mode<synchronous>, transform_indices = @transform_9, window_bounds = array<i64: 512, 64>}, {transform_indices = @transform_10, window_bounds = array<i64: 1, 45, 64>}, {transform_indices = @transform_11, window_bounds = array<i64: 1, 8, 45, 128>}]} {
    %cst = arith.constant 0.000000e+00 : bf16
    %0 = vector.broadcast %cst : bf16 to vector<128x512xbf16>
    %c0 = arith.constant 0 : index
    %c0_0 = arith.constant 0 : index
    %1 = vector.load %arg14[%c0, %c0_0] : memref<128x512xbf16, #tpu.memory_space<vmem>>, vector<128x512xbf16>
    tpu.vector_store %arg14[%c0, %c0_0], %0 {strides = array<i32>} : memref<128x512xbf16, #tpu.memory_space<vmem>>, vector<128x512xbf16>,
    %cst_1 = arith.constant 0.000000e+00 : bf16
    %2 = vector.broadcast %cst_1 : bf16 to vector<128x512xbf16>
    %c0_2 = arith.constant 0 : index
    %c0_3 = arith.constant 0 : index
    %3 = vector.load %arg15[%c0_2, %c0_3] : memref<128x512xbf16, #tpu.memory_space<vmem>>, vector<128x512xbf16>
    tpu.vector_store %arg15[%c0_2, %c0_3], %2 {strides = array<i32>} : memref<128x512xbf16, #tpu.memory_space<vmem>>, vector<128x512xbf16>,
    %4 = tpu.iota {dimensions = array<i32: 1>} : vector<45x128xi32>
    %c45_i32 = arith.constant 45 : i32
    %5 = vector.broadcast %c45_i32 : i32 to vector<45x128xi32>
    %6 = arith.cmpi slt, %4, %5 : vector<45x128xi32>
    %c0_4 = arith.constant 0 : index
    %c0_5 = arith.constant 0 : index
    %c0_6 = arith.constant 0 : index
    %7 = vector.load %arg1[%c0_4, %c0_5, %c0_6] : memref<1x45x64xf32, #tpu.memory_space<vmem>>, vector<1x45x64xf32>
    %8 = vector.shape_cast %7 : vector<1x45x64xf32> to vector<45x64xf32>
    %c0_7 = arith.constant 0 : index
    %c0_8 = arith.constant 0 : index
    %9 = vector.load %arg2[%c0_7, %c0_8] : memref<45x64xf32, #tpu.memory_space<vmem>>, vector<45x64xf32>
    %10 = arith.addf %8, %9 : vector<45x64xf32>
    %11 = arith.truncf %10 : vector<45x64xf32> to vector<45x64xbf16>
    %c0_9 = arith.constant 0 : index
    %c0_10 = arith.constant 0 : index
    %12 = vector.load %arg3[%c0_9, %c0_10] : memref<64x1536xbf16, #tpu.memory_space<vmem>>, vector<64x1536xbf16>
    %cst_11 = arith.constant dense<0.000000e+00> : vector<45x1536xf32>
    %13 = tpu.matmul %11, %12, %cst_11 {dimension_numbers = #tpu.dot_dimension_numbers<[1], [0], [0], [1], [0, 0, 1, 1], [], []>} : vector<45x64xbf16>, vector<64x1536xbf16>, vector<45x1536xf32> -> vector<45x1536xf32>
    %14 = arith.truncf %13 : vector<45x1536xf32> to vector<45x1536xbf16>
    %15 = vector.extract_strided_slice %14 {offsets = [0, 0], sizes = [45, 512], strides = [1, 1]} : vector<45x1536xbf16> to vector<45x512xbf16>
    %c0_12 = arith.constant 0 : index
    %c0_13 = arith.constant 0 : index
    %16 = vector.load %arg13[%c0_12, %c0_13] : memref<45x512xbf16, #tpu.memory_space<vmem>>, vector<45x512xbf16>
    tpu.vector_store %arg13[%c0_12, %c0_13], %15 {strides = array<i32>} : memref<45x512xbf16, #tpu.memory_space<vmem>>, vector<45x512xbf16>,
    %17 = vector.extract_strided_slice %14 {offsets = [0, 512], sizes = [45, 512], strides = [1, 1]} : vector<45x1536xbf16> to vector<45x512xbf16>
    %c0_14 = arith.constant 0 : index
    %c0_15 = arith.constant 0 : index
    %18 = vector.load %arg14[%c0_14, %c0_15] : memref<128x512xbf16, #tpu.memory_space<vmem>>, vector<45x512xbf16>
    tpu.vector_store %arg14[%c0_14, %c0_15], %17 {strides = array<i32>} : memref<128x512xbf16, #tpu.memory_space<vmem>>, vector<45x512xbf16>,
    %19 = vector.extract_strided_slice %14 {offsets = [0, 1024], sizes = [45, 512], strides = [1, 1]} : vector<45x1536xbf16> to vector<45x512xbf16>
    %c0_16 = arith.constant 0 : index
    %c0_17 = arith.constant 0 : index
    %20 = vector.load %arg15[%c0_16, %c0_17] : memref<128x512xbf16, #tpu.memory_space<vmem>>, vector<45x512xbf16>
    tpu.vector_store %arg15[%c0_16, %c0_17], %19 {strides = array<i32>} : memref<128x512xbf16, #tpu.memory_space<vmem>>, vector<45x512xbf16>,
    %c0_18 = arith.constant 0 : index
    %c0_19 = arith.constant 0 : index
    %21 = vector.load %arg13[%c0_18, %c0_19] : memref<45x512xbf16, #tpu.memory_space<vmem>>, vector<45x64xbf16>
    %c0_20 = arith.constant 0 : index
    %c0_21 = arith.constant 0 : index
    %22 = vector.load %arg14[%c0_20, %c0_21] : memref<128x512xbf16, #tpu.memory_space<vmem>>, vector<128x64xbf16>
    %c0_22 = arith.constant 0 : index
    %c0_23 = arith.constant 0 : index
    %23 = vector.load %arg15[%c0_22, %c0_23] : memref<128x512xbf16, #tpu.memory_space<vmem>>, vector<128x64xbf16>
    %cst_24 = arith.constant dense<0.000000e+00> : vector<45x128xf32>
    %24 = tpu.matmul %21, %22, %cst_24 {dimension_numbers = #tpu.dot_dimension_numbers<[1], [1], [0], [0], [0, 0, 1, 0], [], []>} : vector<45x64xbf16>, vector<128x64xbf16>, vector<45x128xf32> -> vector<45x128xf32>
    %cst_25 = arith.constant -1.000000e+09 : f32
    %25 = vector.broadcast %cst_25 : f32 to vector<45x128xf32>
    %26 = arith.select %6, %24, %25 : vector<45x128xi1>, vector<45x128xf32>
    %cst_26 = arith.constant dense<0xFF800000> : vector<45xf32>
    %27 = vector.multi_reduction <maximumf>, %26, %cst_26 [1] : vector<45x128xf32> to vector<45xf32>
    %28 = vector.shape_cast %27 : vector<45xf32> to vector<45x1xf32>
    %29 = vector.broadcast %28 : vector<45x1xf32> to vector<45x128xf32>
    %30 = arith.subf %26, %29 : vector<45x128xf32>
    %31 = math.exp %30 : vector<45x128xf32>
    %cst_27 = arith.constant dense<0.000000e+00> : vector<45xf32>
    %32 = vector.multi_reduction <add>, %31, %cst_27 [1] : vector<45x128xf32> to vector<45xf32>
    %33 = vector.shape_cast %32 : vector<45xf32> to vector<45x1xf32>
    %cst_28 = arith.constant 1.000000e+00 : f32
    %34 = vector.broadcast %cst_28 : f32 to vector<45x1xf32>
    %35 = arith.divf %34, %33 : vector<45x1xf32>
    %36 = vector.broadcast %35 : vector<45x1xf32> to vector<45x128xf32>
    %37 = arith.mulf %31, %36 : vector<45x128xf32>
    %c0_29 = arith.constant 0 : index
    %c0_30 = arith.constant 0 : index
    %c0_31 = arith.constant 0 : index
    %c0_32 = arith.constant 0 : index
    %38 = vector.load %arg12[%c0_29, %c0_30, %c0_31, %c0_32] : memref<1x8x45x128xf32, #tpu.memory_space<vmem>>, vector<1x1x45x128xf32>
    %39 = vector.shape_cast %38 : vector<1x1x45x128xf32> to vector<45x128xf32>
    %40 = vector.shape_cast %37 : vector<45x128xf32> to vector<1x1x45x128xf32>
    tpu.vector_store %arg12[%c0_29, %c0_30, %c0_31, %c0_32], %40 {strides = array<i32>} : memref<1x8x45x128xf32, #tpu.memory_space<vmem>>, vector<1x1x45x128xf32>,
    %41 = arith.truncf %37 : vector<45x128xf32> to vector<45x128xbf16>
    %cst_33 = arith.constant dense<0.000000e+00> : vector<45x64xf32>
    %42 = tpu.matmul %41, %23, %cst_33 {dimension_numbers = #tpu.dot_dimension_numbers<[1], [0], [0], [1], [0, 0, 1, 1], [], []>} : vector<45x128xbf16>, vector<128x64xbf16>, vector<45x64xf32> -> vector<45x64xf32>
    %43 = arith.truncf %42 : vector<45x64xf32> to vector<45x64xbf16>
    %c0_34 = arith.constant 0 : index
    %c64 = arith.constant 64 : index
    %44 = vector.load %arg13[%c0_34, %c64] : memref<45x512xbf16, #tpu.memory_space<vmem>>, vector<45x64xbf16>
    %c0_35 = arith.constant 0 : index
    %c64_36 = arith.constant 64 : index
    %45 = vector.load %arg14[%c0_35, %c64_36] : memref<128x512xbf16, #tpu.memory_space<vmem>>, vector<128x64xbf16>
    %c0_37 = arith.constant 0 : index
    %c64_38 = arith.constant 64 : index
    %46 = vector.load %arg15[%c0_37, %c64_38] : memref<128x512xbf16, #tpu.memory_space<vmem>>, vector<128x64xbf16>
    %cst_39 = arith.constant dense<0.000000e+00> : vector<45x128xf32>
    %47 = tpu.matmul %44, %45, %cst_39 {dimension_numbers = #tpu.dot_dimension_numbers<[1], [1], [0], [0], [0, 0, 1, 0], [], []>} : vector<45x64xbf16>, vector<128x64xbf16>, vector<45x128xf32> -> vector<45x128xf32>
    %cst_40 = arith.constant -1.000000e+09 : f32
    %48 = vector.broadcast %cst_40 : f32 to vector<45x128xf32>
    %49 = arith.select %6, %47, %48 : vector<45x128xi1>, vector<45x128xf32>
    %cst_41 = arith.constant dense<0xFF800000> : vector<45xf32>
    %50 = vector.multi_reduction <maximumf>, %49, %cst_41 [1] : vector<45x128xf32> to vector<45xf32>
    %51 = vector.shape_cast %50 : vector<45xf32> to vector<45x1xf32>
    %52 = vector.broadcast %51 : vector<45x1xf32> to vector<45x128xf32>
    %53 = arith.subf %49, %52 : vector<45x128xf32>
    %54 = math.exp %53 : vector<45x128xf32>
    %cst_42 = arith.constant dense<0.000000e+00> : vector<45xf32>
    %55 = vector.multi_reduction <add>, %54, %cst_42 [1] : vector<45x128xf32> to vector<45xf32>
    %56 = vector.shape_cast %55 : vector<45xf32> to vector<45x1xf32>
    %cst_43 = arith.constant 1.000000e+00 : f32
    %57 = vector.broadcast %cst_43 : f32 to vector<45x1xf32>
    %58 = arith.divf %57, %56 : vector<45x1xf32>
    %59 = vector.broadcast %58 : vector<45x1xf32> to vector<45x128xf32>
    %60 = arith.mulf %54, %59 : vector<45x128xf32>
    %c0_44 = arith.constant 0 : index
    %c1 = arith.constant 1 : index
    %c0_45 = arith.constant 0 : index
    %c0_46 = arith.constant 0 : index
    %61 = vector.load %arg12[%c0_44, %c1, %c0_45, %c0_46] : memref<1x8x45x128xf32, #tpu.memory_space<vmem>>, vector<1x1x45x128xf32>
    %62 = vector.shape_cast %61 : vector<1x1x45x128xf32> to vector<45x128xf32>
    %63 = vector.shape_cast %60 : vector<45x128xf32> to vector<1x1x45x128xf32>
    tpu.vector_store %arg12[%c0_44, %c1, %c0_45, %c0_46], %63 {strides = array<i32>} : memref<1x8x45x128xf32, #tpu.memory_space<vmem>>, vector<1x1x45x128xf32>,
    %64 = arith.truncf %60 : vector<45x128xf32> to vector<45x128xbf16>
    %cst_47 = arith.constant dense<0.000000e+00> : vector<45x64xf32>
    %65 = tpu.matmul %64, %46, %cst_47 {dimension_numbers = #tpu.dot_dimension_numbers<[1], [0], [0], [1], [0, 0, 1, 1], [], []>} : vector<45x128xbf16>, vector<128x64xbf16>, vector<45x64xf32> -> vector<45x64xf32>
    %66 = arith.truncf %65 : vector<45x64xf32> to vector<45x64xbf16>
    %67 = tpu.concatenate %43, %66 in 1 : vector<45x64xbf16>, vector<45x64xbf16> -> vector<45x128xbf16>
    %c0_48 = arith.constant 0 : index
    %c0_49 = arith.constant 0 : index
    %68 = vector.load %arg16[%c0_48, %c0_49] : memref<45x512xbf16, #tpu.memory_space<vmem>>, vector<45x128xbf16>
    tpu.vector_store %arg16[%c0_48, %c0_49], %67 {strides = array<i32>} : memref<45x512xbf16, #tpu.memory_space<vmem>>, vector<45x128xbf16>,
    %c0_50 = arith.constant 0 : index
    %c128 = arith.constant 128 : index
    %69 = vector.load %arg13[%c0_50, %c128] : memref<45x512xbf16, #tpu.memory_space<vmem>>, vector<45x64xbf16>
    %c0_51 = arith.constant 0 : index
    %c128_52 = arith.constant 128 : index
    %70 = vector.load %arg14[%c0_51, %c128_52] : memref<128x512xbf16, #tpu.memory_space<vmem>>, vector<128x64xbf16>
    %c0_53 = arith.constant 0 : index
    %c128_54 = arith.constant 128 : index
    %71 = vector.load %arg15[%c0_53, %c128_54] : memref<128x512xbf16, #tpu.memory_space<vmem>>, vector<128x64xbf16>
    %cst_55 = arith.constant dense<0.000000e+00> : vector<45x128xf32>
    %72 = tpu.matmul %69, %70, %cst_55 {dimension_numbers = #tpu.dot_dimension_numbers<[1], [1], [0], [0], [0, 0, 1, 0], [], []>} : vector<45x64xbf16>, vector<128x64xbf16>, vector<45x128xf32> -> vector<45x128xf32>
    %cst_56 = arith.constant -1.000000e+09 : f32
    %73 = vector.broadcast %cst_56 : f32 to vector<45x128xf32>
    %74 = arith.select %6, %72, %73 : vector<45x128xi1>, vector<45x128xf32>
    %cst_57 = arith.constant dense<0xFF800000> : vector<45xf32>
    %75 = vector.multi_reduction <maximumf>, %74, %cst_57 [1] : vector<45x128xf32> to vector<45xf32>
    %76 = vector.shape_cast %75 : vector<45xf32> to vector<45x1xf32>
    %77 = vector.broadcast %76 : vector<45x1xf32> to vector<45x128xf32>
    %78 = arith.subf %74, %77 : vector<45x128xf32>
    %79 = math.exp %78 : vector<45x128xf32>
    %cst_58 = arith.constant dense<0.000000e+00> : vector<45xf32>
    %80 = vector.multi_reduction <add>, %79, %cst_58 [1] : vector<45x128xf32> to vector<45xf32>
    %81 = vector.shape_cast %80 : vector<45xf32> to vector<45x1xf32>
    %cst_59 = arith.constant 1.000000e+00 : f32
    %82 = vector.broadcast %cst_59 : f32 to vector<45x1xf32>
    %83 = arith.divf %82, %81 : vector<45x1xf32>
    %84 = vector.broadcast %83 : vector<45x1xf32> to vector<45x128xf32>
    %85 = arith.mulf %79, %84 : vector<45x128xf32>
    %c0_60 = arith.constant 0 : index
    %c2 = arith.constant 2 : index
    %c0_61 = arith.constant 0 : index
    %c0_62 = arith.constant 0 : index
    %86 = vector.load %arg12[%c0_60, %c2, %c0_61, %c0_62] : memref<1x8x45x128xf32, #tpu.memory_space<vmem>>, vector<1x1x45x128xf32>
    %87 = vector.shape_cast %86 : vector<1x1x45x128xf32> to vector<45x128xf32>
    %88 = vector.shape_cast %85 : vector<45x128xf32> to vector<1x1x45x128xf32>
    tpu.vector_store %arg12[%c0_60, %c2, %c0_61, %c0_62], %88 {strides = array<i32>} : memref<1x8x45x128xf32, #tpu.memory_space<vmem>>, vector<1x1x45x128xf32>,
    %89 = arith.truncf %85 : vector<45x128xf32> to vector<45x128xbf16>
    %cst_63 = arith.constant dense<0.000000e+00> : vector<45x64xf32>
    %90 = tpu.matmul %89, %71, %cst_63 {dimension_numbers = #tpu.dot_dimension_numbers<[1], [0], [0], [1], [0, 0, 1, 1], [], []>} : vector<45x128xbf16>, vector<128x64xbf16>, vector<45x64xf32> -> vector<45x64xf32>
    %91 = arith.truncf %90 : vector<45x64xf32> to vector<45x64xbf16>
    %c0_64 = arith.constant 0 : index
    %c192 = arith.constant 192 : index
    %92 = vector.load %arg13[%c0_64, %c192] : memref<45x512xbf16, #tpu.memory_space<vmem>>, vector<45x64xbf16>
    %c0_65 = arith.constant 0 : index
    %c192_66 = arith.constant 192 : index
    %93 = vector.load %arg14[%c0_65, %c192_66] : memref<128x512xbf16, #tpu.memory_space<vmem>>, vector<128x64xbf16>
    %c0_67 = arith.constant 0 : index
    %c192_68 = arith.constant 192 : index
    %94 = vector.load %arg15[%c0_67, %c192_68] : memref<128x512xbf16, #tpu.memory_space<vmem>>, vector<128x64xbf16>
    %cst_69 = arith.constant dense<0.000000e+00> : vector<45x128xf32>
    %95 = tpu.matmul %92, %93, %cst_69 {dimension_numbers = #tpu.dot_dimension_numbers<[1], [1], [0], [0], [0, 0, 1, 0], [], []>} : vector<45x64xbf16>, vector<128x64xbf16>, vector<45x128xf32> -> vector<45x128xf32>
    %cst_70 = arith.constant -1.000000e+09 : f32
    %96 = vector.broadcast %cst_70 : f32 to vector<45x128xf32>
    %97 = arith.select %6, %95, %96 : vector<45x128xi1>, vector<45x128xf32>
    %cst_71 = arith.constant dense<0xFF800000> : vector<45xf32>
    %98 = vector.multi_reduction <maximumf>, %97, %cst_71 [1] : vector<45x128xf32> to vector<45xf32>
    %99 = vector.shape_cast %98 : vector<45xf32> to vector<45x1xf32>
    %100 = vector.broadcast %99 : vector<45x1xf32> to vector<45x128xf32>
    %101 = arith.subf %97, %100 : vector<45x128xf32>
    %102 = math.exp %101 : vector<45x128xf32>
    %cst_72 = arith.constant dense<0.000000e+00> : vector<45xf32>
    %103 = vector.multi_reduction <add>, %102, %cst_72 [1] : vector<45x128xf32> to vector<45xf32>
    %104 = vector.shape_cast %103 : vector<45xf32> to vector<45x1xf32>
    %cst_73 = arith.constant 1.000000e+00 : f32
    %105 = vector.broadcast %cst_73 : f32 to vector<45x1xf32>
    %106 = arith.divf %105, %104 : vector<45x1xf32>
    %107 = vector.broadcast %106 : vector<45x1xf32> to vector<45x128xf32>
    %108 = arith.mulf %102, %107 : vector<45x128xf32>
    %c0_74 = arith.constant 0 : index
    %c3 = arith.constant 3 : index
    %c0_75 = arith.constant 0 : index
    %c0_76 = arith.constant 0 : index
    %109 = vector.load %arg12[%c0_74, %c3, %c0_75, %c0_76] : memref<1x8x45x128xf32, #tpu.memory_space<vmem>>, vector<1x1x45x128xf32>
    %110 = vector.shape_cast %109 : vector<1x1x45x128xf32> to vector<45x128xf32>
    %111 = vector.shape_cast %108 : vector<45x128xf32> to vector<1x1x45x128xf32>
    tpu.vector_store %arg12[%c0_74, %c3, %c0_75, %c0_76], %111 {strides = array<i32>} : memref<1x8x45x128xf32, #tpu.memory_space<vmem>>, vector<1x1x45x128xf32>,
    %112 = arith.truncf %108 : vector<45x128xf32> to vector<45x128xbf16>
    %cst_77 = arith.constant dense<0.000000e+00> : vector<45x64xf32>
    %113 = tpu.matmul %112, %94, %cst_77 {dimension_numbers = #tpu.dot_dimension_numbers<[1], [0], [0], [1], [0, 0, 1, 1], [], []>} : vector<45x128xbf16>, vector<128x64xbf16>, vector<45x64xf32> -> vector<45x64xf32>
    %114 = arith.truncf %113 : vector<45x64xf32> to vector<45x64xbf16>
    %115 = tpu.concatenate %91, %114 in 1 : vector<45x64xbf16>, vector<45x64xbf16> -> vector<45x128xbf16>
    %c0_78 = arith.constant 0 : index
    %c128_79 = arith.constant 128 : index
    %116 = vector.load %arg16[%c0_78, %c128_79] : memref<45x512xbf16, #tpu.memory_space<vmem>>, vector<45x128xbf16>
    tpu.vector_store %arg16[%c0_78, %c128_79], %115 {strides = array<i32>} : memref<45x512xbf16, #tpu.memory_space<vmem>>, vector<45x128xbf16>,
    %c0_80 = arith.constant 0 : index
    %c256 = arith.constant 256 : index
    %117 = vector.load %arg13[%c0_80, %c256] : memref<45x512xbf16, #tpu.memory_space<vmem>>, vector<45x64xbf16>
    %c0_81 = arith.constant 0 : index
    %c256_82 = arith.constant 256 : index
    %118 = vector.load %arg14[%c0_81, %c256_82] : memref<128x512xbf16, #tpu.memory_space<vmem>>, vector<128x64xbf16>
    %c0_83 = arith.constant 0 : index
    %c256_84 = arith.constant 256 : index
    %119 = vector.load %arg15[%c0_83, %c256_84] : memref<128x512xbf16, #tpu.memory_space<vmem>>, vector<128x64xbf16>
    %cst_85 = arith.constant dense<0.000000e+00> : vector<45x128xf32>
    %120 = tpu.matmul %117, %118, %cst_85 {dimension_numbers = #tpu.dot_dimension_numbers<[1], [1], [0], [0], [0, 0, 1, 0], [], []>} : vector<45x64xbf16>, vector<128x64xbf16>, vector<45x128xf32> -> vector<45x128xf32>
    %cst_86 = arith.constant -1.000000e+09 : f32
    %121 = vector.broadcast %cst_86 : f32 to vector<45x128xf32>
    %122 = arith.select %6, %120, %121 : vector<45x128xi1>, vector<45x128xf32>
    %cst_87 = arith.constant dense<0xFF800000> : vector<45xf32>
    %123 = vector.multi_reduction <maximumf>, %122, %cst_87 [1] : vector<45x128xf32> to vector<45xf32>
    %124 = vector.shape_cast %123 : vector<45xf32> to vector<45x1xf32>
    %125 = vector.broadcast %124 : vector<45x1xf32> to vector<45x128xf32>
    %126 = arith.subf %122, %125 : vector<45x128xf32>
    %127 = math.exp %126 : vector<45x128xf32>
    %cst_88 = arith.constant dense<0.000000e+00> : vector<45xf32>
    %128 = vector.multi_reduction <add>, %127, %cst_88 [1] : vector<45x128xf32> to vector<45xf32>
    %129 = vector.shape_cast %128 : vector<45xf32> to vector<45x1xf32>
    %cst_89 = arith.constant 1.000000e+00 : f32
    %130 = vector.broadcast %cst_89 : f32 to vector<45x1xf32>
    %131 = arith.divf %130, %129 : vector<45x1xf32>
    %132 = vector.broadcast %131 : vector<45x1xf32> to vector<45x128xf32>
    %133 = arith.mulf %127, %132 : vector<45x128xf32>
    %c0_90 = arith.constant 0 : index
    %c4 = arith.constant 4 : index
    %c0_91 = arith.constant 0 : index
    %c0_92 = arith.constant 0 : index
    %134 = vector.load %arg12[%c0_90, %c4, %c0_91, %c0_92] : memref<1x8x45x128xf32, #tpu.memory_space<vmem>>, vector<1x1x45x128xf32>
    %135 = vector.shape_cast %134 : vector<1x1x45x128xf32> to vector<45x128xf32>
    %136 = vector.shape_cast %133 : vector<45x128xf32> to vector<1x1x45x128xf32>
    tpu.vector_store %arg12[%c0_90, %c4, %c0_91, %c0_92], %136 {strides = array<i32>} : memref<1x8x45x128xf32, #tpu.memory_space<vmem>>, vector<1x1x45x128xf32>,
    %137 = arith.truncf %133 : vector<45x128xf32> to vector<45x128xbf16>
    %cst_93 = arith.constant dense<0.000000e+00> : vector<45x64xf32>
    %138 = tpu.matmul %137, %119, %cst_93 {dimension_numbers = #tpu.dot_dimension_numbers<[1], [0], [0], [1], [0, 0, 1, 1], [], []>} : vector<45x128xbf16>, vector<128x64xbf16>, vector<45x64xf32> -> vector<45x64xf32>
    %139 = arith.truncf %138 : vector<45x64xf32> to vector<45x64xbf16>
    %c0_94 = arith.constant 0 : index
    %c320 = arith.constant 320 : index
    %140 = vector.load %arg13[%c0_94, %c320] : memref<45x512xbf16, #tpu.memory_space<vmem>>, vector<45x64xbf16>
    %c0_95 = arith.constant 0 : index
    %c320_96 = arith.constant 320 : index
    %141 = vector.load %arg14[%c0_95, %c320_96] : memref<128x512xbf16, #tpu.memory_space<vmem>>, vector<128x64xbf16>
    %c0_97 = arith.constant 0 : index
    %c320_98 = arith.constant 320 : index
    %142 = vector.load %arg15[%c0_97, %c320_98] : memref<128x512xbf16, #tpu.memory_space<vmem>>, vector<128x64xbf16>
    %cst_99 = arith.constant dense<0.000000e+00> : vector<45x128xf32>
    %143 = tpu.matmul %140, %141, %cst_99 {dimension_numbers = #tpu.dot_dimension_numbers<[1], [1], [0], [0], [0, 0, 1, 0], [], []>} : vector<45x64xbf16>, vector<128x64xbf16>, vector<45x128xf32> -> vector<45x128xf32>
    %cst_100 = arith.constant -1.000000e+09 : f32
    %144 = vector.broadcast %cst_100 : f32 to vector<45x128xf32>
    %145 = arith.select %6, %143, %144 : vector<45x128xi1>, vector<45x128xf32>
    %cst_101 = arith.constant dense<0xFF800000> : vector<45xf32>
    %146 = vector.multi_reduction <maximumf>, %145, %cst_101 [1] : vector<45x128xf32> to vector<45xf32>
    %147 = vector.shape_cast %146 : vector<45xf32> to vector<45x1xf32>
    %148 = vector.broadcast %147 : vector<45x1xf32> to vector<45x128xf32>
    %149 = arith.subf %145, %148 : vector<45x128xf32>
    %150 = math.exp %149 : vector<45x128xf32>
    %cst_102 = arith.constant dense<0.000000e+00> : vector<45xf32>
    %151 = vector.multi_reduction <add>, %150, %cst_102 [1] : vector<45x128xf32> to vector<45xf32>
    %152 = vector.shape_cast %151 : vector<45xf32> to vector<45x1xf32>
    %cst_103 = arith.constant 1.000000e+00 : f32
    %153 = vector.broadcast %cst_103 : f32 to vector<45x1xf32>
    %154 = arith.divf %153, %152 : vector<45x1xf32>
    %155 = vector.broadcast %154 : vector<45x1xf32> to vector<45x128xf32>
    %156 = arith.mulf %150, %155 : vector<45x128xf32>
    %c0_104 = arith.constant 0 : index
    %c5 = arith.constant 5 : index
    %c0_105 = arith.constant 0 : index
    %c0_106 = arith.constant 0 : index
    %157 = vector.load %arg12[%c0_104, %c5, %c0_105, %c0_106] : memref<1x8x45x128xf32, #tpu.memory_space<vmem>>, vector<1x1x45x128xf32>
    %158 = vector.shape_cast %157 : vector<1x1x45x128xf32> to vector<45x128xf32>
    %159 = vector.shape_cast %156 : vector<45x128xf32> to vector<1x1x45x128xf32>
    tpu.vector_store %arg12[%c0_104, %c5, %c0_105, %c0_106], %159 {strides = array<i32>} : memref<1x8x45x128xf32, #tpu.memory_space<vmem>>, vector<1x1x45x128xf32>,
    %160 = arith.truncf %156 : vector<45x128xf32> to vector<45x128xbf16>
    %cst_107 = arith.constant dense<0.000000e+00> : vector<45x64xf32>
    %161 = tpu.matmul %160, %142, %cst_107 {dimension_numbers = #tpu.dot_dimension_numbers<[1], [0], [0], [1], [0, 0, 1, 1], [], []>} : vector<45x128xbf16>, vector<128x64xbf16>, vector<45x64xf32> -> vector<45x64xf32>
    %162 = arith.truncf %161 : vector<45x64xf32> to vector<45x64xbf16>
    %163 = tpu.concatenate %139, %162 in 1 : vector<45x64xbf16>, vector<45x64xbf16> -> vector<45x128xbf16>
    %c0_108 = arith.constant 0 : index
    %c256_109 = arith.constant 256 : index
    %164 = vector.load %arg16[%c0_108, %c256_109] : memref<45x512xbf16, #tpu.memory_space<vmem>>, vector<45x128xbf16>
    tpu.vector_store %arg16[%c0_108, %c256_109], %163 {strides = array<i32>} : memref<45x512xbf16, #tpu.memory_space<vmem>>, vector<45x128xbf16>,
    %c0_110 = arith.constant 0 : index
    %c384 = arith.constant 384 : index
    %165 = vector.load %arg13[%c0_110, %c384] : memref<45x512xbf16, #tpu.memory_space<vmem>>, vector<45x64xbf16>
    %c0_111 = arith.constant 0 : index
    %c384_112 = arith.constant 384 : index
    %166 = vector.load %arg14[%c0_111, %c384_112] : memref<128x512xbf16, #tpu.memory_space<vmem>>, vector<128x64xbf16>
    %c0_113 = arith.constant 0 : index
    %c384_114 = arith.constant 384 : index
    %167 = vector.load %arg15[%c0_113, %c384_114] : memref<128x512xbf16, #tpu.memory_space<vmem>>, vector<128x64xbf16>
    %cst_115 = arith.constant dense<0.000000e+00> : vector<45x128xf32>
    %168 = tpu.matmul %165, %166, %cst_115 {dimension_numbers = #tpu.dot_dimension_numbers<[1], [1], [0], [0], [0, 0, 1, 0], [], []>} : vector<45x64xbf16>, vector<128x64xbf16>, vector<45x128xf32> -> vector<45x128xf32>
    %cst_116 = arith.constant -1.000000e+09 : f32
    %169 = vector.broadcast %cst_116 : f32 to vector<45x128xf32>
    %170 = arith.select %6, %168, %169 : vector<45x128xi1>, vector<45x128xf32>
    %cst_117 = arith.constant dense<0xFF800000> : vector<45xf32>
    %171 = vector.multi_reduction <maximumf>, %170, %cst_117 [1] : vector<45x128xf32> to vector<45xf32>
    %172 = vector.shape_cast %171 : vector<45xf32> to vector<45x1xf32>
    %173 = vector.broadcast %172 : vector<45x1xf32> to vector<45x128xf32>
    %174 = arith.subf %170, %173 : vector<45x128xf32>
    %175 = math.exp %174 : vector<45x128xf32>
    %cst_118 = arith.constant dense<0.000000e+00> : vector<45xf32>
    %176 = vector.multi_reduction <add>, %175, %cst_118 [1] : vector<45x128xf32> to vector<45xf32>
    %177 = vector.shape_cast %176 : vector<45xf32> to vector<45x1xf32>
    %cst_119 = arith.constant 1.000000e+00 : f32
    %178 = vector.broadcast %cst_119 : f32 to vector<45x1xf32>
    %179 = arith.divf %178, %177 : vector<45x1xf32>
    %180 = vector.broadcast %179 : vector<45x1xf32> to vector<45x128xf32>
    %181 = arith.mulf %175, %180 : vector<45x128xf32>
    %c0_120 = arith.constant 0 : index
    %c6 = arith.constant 6 : index
    %c0_121 = arith.constant 0 : index
    %c0_122 = arith.constant 0 : index
    %182 = vector.load %arg12[%c0_120, %c6, %c0_121, %c0_122] : memref<1x8x45x128xf32, #tpu.memory_space<vmem>>, vector<1x1x45x128xf32>
    %183 = vector.shape_cast %182 : vector<1x1x45x128xf32> to vector<45x128xf32>
    %184 = vector.shape_cast %181 : vector<45x128xf32> to vector<1x1x45x128xf32>
    tpu.vector_store %arg12[%c0_120, %c6, %c0_121, %c0_122], %184 {strides = array<i32>} : memref<1x8x45x128xf32, #tpu.memory_space<vmem>>, vector<1x1x45x128xf32>,
    %185 = arith.truncf %181 : vector<45x128xf32> to vector<45x128xbf16>
    %cst_123 = arith.constant dense<0.000000e+00> : vector<45x64xf32>
    %186 = tpu.matmul %185, %167, %cst_123 {dimension_numbers = #tpu.dot_dimension_numbers<[1], [0], [0], [1], [0, 0, 1, 1], [], []>} : vector<45x128xbf16>, vector<128x64xbf16>, vector<45x64xf32> -> vector<45x64xf32>
    %187 = arith.truncf %186 : vector<45x64xf32> to vector<45x64xbf16>
    %c0_124 = arith.constant 0 : index
    %c448 = arith.constant 448 : index
    %188 = vector.load %arg13[%c0_124, %c448] : memref<45x512xbf16, #tpu.memory_space<vmem>>, vector<45x64xbf16>
    %c0_125 = arith.constant 0 : index
    %c448_126 = arith.constant 448 : index
    %189 = vector.load %arg14[%c0_125, %c448_126] : memref<128x512xbf16, #tpu.memory_space<vmem>>, vector<128x64xbf16>
    %c0_127 = arith.constant 0 : index
    %c448_128 = arith.constant 448 : index
    %190 = vector.load %arg15[%c0_127, %c448_128] : memref<128x512xbf16, #tpu.memory_space<vmem>>, vector<128x64xbf16>
    %cst_129 = arith.constant dense<0.000000e+00> : vector<45x128xf32>
    %191 = tpu.matmul %188, %189, %cst_129 {dimension_numbers = #tpu.dot_dimension_numbers<[1], [1], [0], [0], [0, 0, 1, 0], [], []>} : vector<45x64xbf16>, vector<128x64xbf16>, vector<45x128xf32> -> vector<45x128xf32>
    %cst_130 = arith.constant -1.000000e+09 : f32
    %192 = vector.broadcast %cst_130 : f32 to vector<45x128xf32>
    %193 = arith.select %6, %191, %192 : vector<45x128xi1>, vector<45x128xf32>
    %cst_131 = arith.constant dense<0xFF800000> : vector<45xf32>
    %194 = vector.multi_reduction <maximumf>, %193, %cst_131 [1] : vector<45x128xf32> to vector<45xf32>
    %195 = vector.shape_cast %194 : vector<45xf32> to vector<45x1xf32>
    %196 = vector.broadcast %195 : vector<45x1xf32> to vector<45x128xf32>
    %197 = arith.subf %193, %196 : vector<45x128xf32>
    %198 = math.exp %197 : vector<45x128xf32>
    %cst_132 = arith.constant dense<0.000000e+00> : vector<45xf32>
    %199 = vector.multi_reduction <add>, %198, %cst_132 [1] : vector<45x128xf32> to vector<45xf32>
    %200 = vector.shape_cast %199 : vector<45xf32> to vector<45x1xf32>
    %cst_133 = arith.constant 1.000000e+00 : f32
    %201 = vector.broadcast %cst_133 : f32 to vector<45x1xf32>
    %202 = arith.divf %201, %200 : vector<45x1xf32>
    %203 = vector.broadcast %202 : vector<45x1xf32> to vector<45x128xf32>
    %204 = arith.mulf %198, %203 : vector<45x128xf32>
    %c0_134 = arith.constant 0 : index
    %c7 = arith.constant 7 : index
    %c0_135 = arith.constant 0 : index
    %c0_136 = arith.constant 0 : index
    %205 = vector.load %arg12[%c0_134, %c7, %c0_135, %c0_136] : memref<1x8x45x128xf32, #tpu.memory_space<vmem>>, vector<1x1x45x128xf32>
    %206 = vector.shape_cast %205 : vector<1x1x45x128xf32> to vector<45x128xf32>
    %207 = vector.shape_cast %204 : vector<45x128xf32> to vector<1x1x45x128xf32>
    tpu.vector_store %arg12[%c0_134, %c7, %c0_135, %c0_136], %207 {strides = array<i32>} : memref<1x8x45x128xf32, #tpu.memory_space<vmem>>, vector<1x1x45x128xf32>,
    %208 = arith.truncf %204 : vector<45x128xf32> to vector<45x128xbf16>
    %cst_137 = arith.constant dense<0.000000e+00> : vector<45x64xf32>
    %209 = tpu.matmul %208, %190, %cst_137 {dimension_numbers = #tpu.dot_dimension_numbers<[1], [0], [0], [1], [0, 0, 1, 1], [], []>} : vector<45x128xbf16>, vector<128x64xbf16>, vector<45x64xf32> -> vector<45x64xf32>
    %210 = arith.truncf %209 : vector<45x64xf32> to vector<45x64xbf16>
    %211 = tpu.concatenate %187, %210 in 1 : vector<45x64xbf16>, vector<45x64xbf16> -> vector<45x128xbf16>
    %c0_138 = arith.constant 0 : index
    %c384_139 = arith.constant 384 : index
    %212 = vector.load %arg16[%c0_138, %c384_139] : memref<45x512xbf16, #tpu.memory_space<vmem>>, vector<45x128xbf16>
    tpu.vector_store %arg16[%c0_138, %c384_139], %211 {strides = array<i32>} : memref<45x512xbf16, #tpu.memory_space<vmem>>, vector<45x128xbf16>,
    %c0_140 = arith.constant 0 : index
    %c0_141 = arith.constant 0 : index
    %213 = vector.load %arg16[%c0_140, %c0_141] : memref<45x512xbf16, #tpu.memory_space<vmem>>, vector<45x512xbf16>
    %c0_142 = arith.constant 0 : index
    %c0_143 = arith.constant 0 : index
    %214 = vector.load %arg4[%c0_142, %c0_143] : memref<512x64xbf16, #tpu.memory_space<vmem>>, vector<512x64xbf16>
    %cst_144 = arith.constant dense<0.000000e+00> : vector<45x64xf32>
    %215 = tpu.matmul %213, %214, %cst_144 {dimension_numbers = #tpu.dot_dimension_numbers<[1], [0], [0], [1], [0, 0, 1, 1], [], []>} : vector<45x512xbf16>, vector<512x64xbf16>, vector<45x64xf32> -> vector<45x64xf32>
    %216 = arith.addf %215, %10 : vector<45x64xf32>
    %cst_145 = arith.constant dense<0.000000e+00> : vector<45xf32>
    %217 = vector.multi_reduction <add>, %216, %cst_145 [1] : vector<45x64xf32> to vector<45xf32>
    %218 = vector.shape_cast %217 : vector<45xf32> to vector<45x1xf32>
    %cst_146 = arith.constant 6.400000e+01 : f32
    %219 = vector.broadcast %cst_146 : f32 to vector<45x1xf32>
    %220 = arith.divf %218, %219 : vector<45x1xf32>
    %221 = vector.broadcast %220 : vector<45x1xf32> to vector<45x64xf32>
    %222 = arith.subf %216, %221 : vector<45x64xf32>
    %223 = arith.mulf %222, %222 : vector<45x64xf32>
    %cst_147 = arith.constant dense<0.000000e+00> : vector<45xf32>
    %224 = vector.multi_reduction <add>, %223, %cst_147 [1] : vector<45x64xf32> to vector<45xf32>
    %225 = vector.shape_cast %224 : vector<45xf32> to vector<45x1xf32>
    %cst_148 = arith.constant 6.400000e+01 : f32
    %226 = vector.broadcast %cst_148 : f32 to vector<45x1xf32>
    %227 = arith.divf %225, %226 : vector<45x1xf32>
    %228 = vector.broadcast %220 : vector<45x1xf32> to vector<45x64xf32>
    %229 = arith.subf %216, %228 : vector<45x64xf32>
    %cst_149 = arith.constant 9.99999974E-6 : f32
    %230 = vector.broadcast %cst_149 : f32 to vector<45x1xf32>
    %231 = arith.addf %227, %230 : vector<45x1xf32>
    %232 = math.rsqrt %231 : vector<45x1xf32>
    %233 = vector.broadcast %232 : vector<45x1xf32> to vector<45x64xf32>
    %234 = arith.mulf %229, %233 : vector<45x64xf32>
    %c0_150 = arith.constant 0 : index
    %c0_151 = arith.constant 0 : index
    %235 = vector.load %arg5[%c0_150, %c0_151] : memref<2x64xf32, #tpu.memory_space<vmem>>, vector<1x64xf32>
    %236 = vector.broadcast %235 : vector<1x64xf32> to vector<45x64xf32>
    %237 = arith.mulf %234, %236 : vector<45x64xf32>
    %c1_152 = arith.constant 1 : index
    %c0_153 = arith.constant 0 : index
    %238 = vector.load %arg5[%c1_152, %c0_153] : memref<2x64xf32, #tpu.memory_space<vmem>>, vector<1x64xf32>
    %239 = vector.broadcast %238 : vector<1x64xf32> to vector<45x64xf32>
    %240 = arith.addf %237, %239 : vector<45x64xf32>
    %c0_154 = arith.constant 0 : index
    %241 = memref.load %arg6[%c0_154] : memref<6xf32, #tpu.memory_space<smem>>
    %242 = vector.broadcast %241 : f32 to vector<45x64xf32>
    %243 = arith.mulf %240, %242 : vector<45x64xf32>
    %c2_155 = arith.constant 2 : index
    %244 = memref.load %arg6[%c2_155] : memref<6xf32, #tpu.memory_space<smem>>
    %245 = vector.broadcast %244 : f32 to vector<45x64xf32>
    %246 = arith.addf %243, %245 : vector<45x64xf32>
    %c1_156 = arith.constant 1 : index
    %247 = memref.load %arg6[%c1_156] : memref<6xf32, #tpu.memory_space<smem>>
    %248 = vector.broadcast %247 : f32 to vector<45x64xf32>
    %249 = arith.mulf %240, %248 : vector<45x64xf32>
    %c3_157 = arith.constant 3 : index
    %250 = memref.load %arg6[%c3_157] : memref<6xf32, #tpu.memory_space<smem>>
    %251 = vector.broadcast %250 : f32 to vector<45x64xf32>
    %252 = arith.addf %249, %251 : vector<45x64xf32>
    %253 = arith.negf %252 : vector<45x64xf32>
    %254 = math.exp %253 : vector<45x64xf32>
    %cst_158 = arith.constant 1.000000e+00 : f32
    %255 = vector.broadcast %cst_158 : f32 to vector<45x64xf32>
    %256 = arith.addf %255, %254 : vector<45x64xf32>
    %257 = arith.divf %255, %256 : vector<45x64xf32>
    %258 = arith.mulf %246, %257 : vector<45x64xf32>
    %cst_159 = arith.constant 0.000000e+00 : f32
    %259 = vector.broadcast %cst_159 : f32 to vector<1x64xf32>
    %260 = vector.extract_strided_slice %258 {offsets = [0, 0], sizes = [44, 64], strides = [1, 1]} : vector<45x64xf32> to vector<44x64xf32>
    %261 = tpu.concatenate %259, %260 in 0 : vector<1x64xf32>, vector<44x64xf32> -> vector<45x64xf32>
    %262 = vector.extract_strided_slice %258 {offsets = [1, 0], sizes = [44, 64], strides = [1, 1]} : vector<45x64xf32> to vector<44x64xf32>
    %263 = tpu.concatenate %262, %259 in 0 : vector<44x64xf32>, vector<1x64xf32> -> vector<45x64xf32>
    %c0_160 = arith.constant 0 : index
    %c0_161 = arith.constant 0 : index
    %264 = vector.load %arg7[%c0_160, %c0_161] : memref<4x64xf32, #tpu.memory_space<vmem>>, vector<1x64xf32>
    %265 = vector.broadcast %264 : vector<1x64xf32> to vector<45x64xf32>
    %266 = arith.mulf %261, %265 : vector<45x64xf32>
    %c1_162 = arith.constant 1 : index
    %c0_163 = arith.constant 0 : index
    %267 = vector.load %arg7[%c1_162, %c0_163] : memref<4x64xf32, #tpu.memory_space<vmem>>, vector<1x64xf32>
    %268 = vector.broadcast %267 : vector<1x64xf32> to vector<45x64xf32>
    %269 = arith.mulf %258, %268 : vector<45x64xf32>
    %270 = arith.addf %266, %269 : vector<45x64xf32>
    %c2_164 = arith.constant 2 : index
    %c0_165 = arith.constant 0 : index
    %271 = vector.load %arg7[%c2_164, %c0_165] : memref<4x64xf32, #tpu.memory_space<vmem>>, vector<1x64xf32>
    %272 = vector.broadcast %271 : vector<1x64xf32> to vector<45x64xf32>
    %273 = arith.mulf %263, %272 : vector<45x64xf32>
    %274 = arith.addf %270, %273 : vector<45x64xf32>
    %c3_166 = arith.constant 3 : index
    %c0_167 = arith.constant 0 : index
    %275 = vector.load %arg7[%c3_166, %c0_167] : memref<4x64xf32, #tpu.memory_space<vmem>>, vector<1x64xf32>
    %276 = vector.broadcast %275 : vector<1x64xf32> to vector<45x64xf32>
    %277 = arith.addf %274, %276 : vector<45x64xf32>
    %c2_168 = arith.constant 2 : index
    %c0_169 = arith.constant 0 : index
    %278 = vector.load %arg8[%c2_168, %c0_169] : memref<4x64xf32, #tpu.memory_space<vmem>>, vector<1x64xf32>
    %279 = vector.broadcast %278 : vector<1x64xf32> to vector<45x64xf32>
    %280 = arith.subf %277, %279 : vector<45x64xf32>
    %c3_170 = arith.constant 3 : index
    %c0_171 = arith.constant 0 : index
    %281 = vector.load %arg8[%c3_170, %c0_171] : memref<4x64xf32, #tpu.memory_space<vmem>>, vector<1x64xf32>
    %cst_172 = arith.constant 9.99999974E-6 : f32
    %282 = vector.broadcast %cst_172 : f32 to vector<1x64xf32>
    %283 = arith.addf %281, %282 : vector<1x64xf32>
    %284 = math.rsqrt %283 : vector<1x64xf32>
    %285 = vector.broadcast %284 : vector<1x64xf32> to vector<45x64xf32>
    %286 = arith.mulf %280, %285 : vector<45x64xf32>
    %c0_173 = arith.constant 0 : index
    %c0_174 = arith.constant 0 : index
    %287 = vector.load %arg8[%c0_173, %c0_174] : memref<4x64xf32, #tpu.memory_space<vmem>>, vector<1x64xf32>
    %288 = vector.broadcast %287 : vector<1x64xf32> to vector<45x64xf32>
    %289 = arith.mulf %286, %288 : vector<45x64xf32>
    %c1_175 = arith.constant 1 : index
    %c0_176 = arith.constant 0 : index
    %290 = vector.load %arg8[%c1_175, %c0_176] : memref<4x64xf32, #tpu.memory_space<vmem>>, vector<1x64xf32>
    %291 = vector.broadcast %290 : vector<1x64xf32> to vector<45x64xf32>
    %292 = arith.addf %289, %291 : vector<45x64xf32>
    %cst_177 = arith.constant 0.000000e+00 : f32
    %293 = vector.broadcast %cst_177 : f32 to vector<45x64xf32>
    %294 = arith.maximumf %292, %293 : vector<45x64xf32>
    %c4_178 = arith.constant 4 : index
    %295 = memref.load %arg6[%c4_178] : memref<6xf32, #tpu.memory_space<smem>>
    %296 = vector.broadcast %295 : f32 to vector<45x64xf32>
    %297 = arith.mulf %294, %296 : vector<45x64xf32>
    %c5_179 = arith.constant 5 : index
    %298 = memref.load %arg6[%c5_179] : memref<6xf32, #tpu.memory_space<smem>>
    %299 = vector.broadcast %298 : f32 to vector<45x64xf32>
    %300 = arith.addf %297, %299 : vector<45x64xf32>
    %301 = arith.addf %300, %216 : vector<45x64xf32>
    %302 = arith.truncf %301 : vector<45x64xf32> to vector<45x64xbf16>
    %c0_180 = arith.constant 0 : index
    %c0_181 = arith.constant 0 : index
    %303 = vector.load %arg9[%c0_180, %c0_181] : memref<64x512xbf16, #tpu.memory_space<vmem>>, vector<64x512xbf16>
    %cst_182 = arith.constant dense<0.000000e+00> : vector<45x512xf32>
    %304 = tpu.matmul %302, %303, %cst_182 {dimension_numbers = #tpu.dot_dimension_numbers<[1], [0], [0], [1], [0, 0, 1, 1], [], []>} : vector<45x64xbf16>, vector<64x512xbf16>, vector<45x512xf32> -> vector<45x512xf32>
    %cst_183 = arith.constant 0.000000e+00 : f32
    %305 = vector.broadcast %cst_183 : f32 to vector<45x512xf32>
    %306 = arith.maximumf %304, %305 : vector<45x512xf32>
    %307 = arith.truncf %306 : vector<45x512xf32> to vector<45x512xbf16>
    %c0_184 = arith.constant 0 : index
    %c0_185 = arith.constant 0 : index
    %308 = vector.load %arg10[%c0_184, %c0_185] : memref<512x64xbf16, #tpu.memory_space<vmem>>, vector<512x64xbf16>
    %cst_186 = arith.constant dense<0.000000e+00> : vector<45x64xf32>
    %309 = tpu.matmul %307, %308, %cst_186 {dimension_numbers = #tpu.dot_dimension_numbers<[1], [0], [0], [1], [0, 0, 1, 1], [], []>} : vector<45x512xbf16>, vector<512x64xbf16>, vector<45x64xf32> -> vector<45x64xf32>
    %310 = arith.addf %309, %301 : vector<45x64xf32>
    %cst_187 = arith.constant dense<0.000000e+00> : vector<45xf32>
    %311 = vector.multi_reduction <add>, %310, %cst_187 [1] : vector<45x64xf32> to vector<45xf32>
    %312 = vector.shape_cast %311 : vector<45xf32> to vector<45x1xf32>
    %cst_188 = arith.constant 6.400000e+01 : f32
    %313 = vector.broadcast %cst_188 : f32 to vector<45x1xf32>
    %314 = arith.divf %312, %313 : vector<45x1xf32>
    %315 = vector.broadcast %314 : vector<45x1xf32> to vector<45x64xf32>
    %316 = arith.subf %310, %315 : vector<45x64xf32>
    %317 = arith.mulf %316, %316 : vector<45x64xf32>
    %cst_189 = arith.constant dense<0.000000e+00> : vector<45xf32>
    %318 = vector.multi_reduction <add>, %317, %cst_189 [1] : vector<45x64xf32> to vector<45xf32>
    %319 = vector.shape_cast %318 : vector<45xf32> to vector<45x1xf32>
    %cst_190 = arith.constant 6.400000e+01 : f32
    %320 = vector.broadcast %cst_190 : f32 to vector<45x1xf32>
    %321 = arith.divf %319, %320 : vector<45x1xf32>
    %322 = vector.broadcast %314 : vector<45x1xf32> to vector<45x64xf32>
    %323 = arith.subf %310, %322 : vector<45x64xf32>
    %cst_191 = arith.constant 9.99999974E-6 : f32
    %324 = vector.broadcast %cst_191 : f32 to vector<45x1xf32>
    %325 = arith.addf %321, %324 : vector<45x1xf32>
    %326 = math.rsqrt %325 : vector<45x1xf32>
    %327 = vector.broadcast %326 : vector<45x1xf32> to vector<45x64xf32>
    %328 = arith.mulf %323, %327 : vector<45x64xf32>
    %c0_192 = arith.constant 0 : index
    %c0_193 = arith.constant 0 : index
    %c0_194 = arith.constant 0 : index
    %329 = vector.load %arg11[%c0_192, %c0_193, %c0_194] : memref<1x45x64xf32, #tpu.memory_space<vmem>>, vector<1x45x64xf32>
    %330 = vector.shape_cast %329 : vector<1x45x64xf32> to vector<45x64xf32>
    %331 = vector.shape_cast %328 : vector<45x64xf32> to vector<1x45x64xf32>
    tpu.vector_store %arg11[%c0_192, %c0_193, %c0_194], %331 {strides = array<i32>} : memref<1x45x64xf32, #tpu.memory_space<vmem>>, vector<1x45x64xf32>,
    return
  }
  func.func @transform_0(%arg0: i32) -> (i32, i32, i32) {
    %c0_i32 = arith.constant 0 : i32
    %c0_i32_0 = arith.constant 0 : i32
    %c0_i32_1 = arith.constant 0 : i32
    return %arg0, %c0_i32, %c0_i32_0 : i32, i32, i32
  }
  func.func @transform_1(%arg0: i32) -> (i32, i32) {
    %c0_i32 = arith.constant 0 : i32
    %c0_i32_0 = arith.constant 0 : i32
    %c0_i32_1 = arith.constant 0 : i32
    return %c0_i32, %c0_i32_0 : i32, i32
  }
  func.func @transform_2(%arg0: i32) -> (i32, i32) {
    %c0_i32 = arith.constant 0 : i32
    %c0_i32_0 = arith.constant 0 : i32
    %c0_i32_1 = arith.constant 0 : i32
    return %c0_i32, %c0_i32_0 : i32, i32
  }
  func.func @transform_3(%arg0: i32) -> (i32, i32) {
    %c0_i32 = arith.constant 0 : i32
    %c0_i32_0 = arith.constant 0 : i32
    %c0_i32_1 = arith.constant 0 : i32
    return %c0_i32, %c0_i32_0 : i32, i32
  }
  func.func @transform_4(%arg0: i32) -> (i32, i32) {
    %c0_i32 = arith.constant 0 : i32
    %c0_i32_0 = arith.constant 0 : i32
    %c0_i32_1 = arith.constant 0 : i32
    return %c0_i32, %c0_i32_0 : i32, i32
  }
  func.func @transform_5(%arg0: i32) -> i32 {
    %c0_i32 = arith.constant 0 : i32
    %c0_i32_0 = arith.constant 0 : i32
    return %c0_i32 : i32
  }
  func.func @transform_6(%arg0: i32) -> (i32, i32) {
    %c0_i32 = arith.constant 0 : i32
    %c0_i32_0 = arith.constant 0 : i32
    %c0_i32_1 = arith.constant 0 : i32
    return %c0_i32, %c0_i32_0 : i32, i32
  }
  func.func @transform_7(%arg0: i32) -> (i32, i32) {
    %c0_i32 = arith.constant 0 : i32
    %c0_i32_0 = arith.constant 0 : i32
    %c0_i32_1 = arith.constant 0 : i32
    return %c0_i32, %c0_i32_0 : i32, i32
  }
  func.func @transform_8(%arg0: i32) -> (i32, i32) {
    %c0_i32 = arith.constant 0 : i32
    %c0_i32_0 = arith.constant 0 : i32
    %c0_i32_1 = arith.constant 0 : i32
    return %c0_i32, %c0_i32_0 : i32, i32
  }
  func.func @transform_9(%arg0: i32) -> (i32, i32) {
    %c0_i32 = arith.constant 0 : i32
    %c0_i32_0 = arith.constant 0 : i32
    %c0_i32_1 = arith.constant 0 : i32
    return %c0_i32, %c0_i32_0 : i32, i32
  }
  func.func @transform_10(%arg0: i32) -> (i32, i32, i32) {
    %c0_i32 = arith.constant 0 : i32
    %c0_i32_0 = arith.constant 0 : i32
    %c0_i32_1 = arith.constant 0 : i32
    return %arg0, %c0_i32, %c0_i32_0 : i32, i32, i32
  }
  func.func @transform_11(%arg0: i32) -> (i32, i32, i32, i32) {
    %c0_i32 = arith.constant 0 : i32
    %c0_i32_0 = arith.constant 0 : i32
    %c0_i32_1 = arith.constant 0 : i32
    %c0_i32_2 = arith.constant 0 : i32
    return %arg0, %c0_i32, %c0_i32_0, %c0_i32_1 : i32, i32, i32, i32
  }
}

</mosaic_0001>

<bundles_post_ra>
// kernel: _decoder_call.1
= control target key start
LH: loop header
LB: loop body
LE: loop exit
PB: predicated region body
PF: predicated region fallthrough
CT: control target
= control target key end

     0   :  { %17 = vsyncpa [#allocation7], 0  ;;  %s7197_s17 = smov 0   ;;  %s9127_s0 = inlined_call_operand.vmem [shape: f32[2,45,64], index: 0, kind: input, shape index: {}]   ;;  %s9128_s1 = inlined_call_operand.vmem [shape: f32[45,64], index: 1, kind: input, shape index: {}]   ;;  %s9129_s2 = inlined_call_operand.vmem [shape: bf16[64,1536], index: 2, kind: input, shape index: {}]   ;;  %s9130_s3 = inlined_call_operand.vmem [shape: bf16[512,64], index: 3, kind: input, shape index: {}]   ;;  %s9131_s4 = inlined_call_operand.vmem [shape: f32[2,64], index: 4, kind: input, shape index: {}]   ;;  %s9132_s5 = inlined_call_operand.vmem [shape: f32[6], index: 5, kind: input, shape index: {}]   ;;  %s9133_s6 = inlined_call_operand.vmem [shape: f32[4,64], index: 6, kind: input, shape index: {}]   ;;  %s9134_s7 = inlined_call_operand.vmem [shape: f32[4,64], index: 7, kind: input, shape index: {}]   ;;  %s9135_s8 = inlined_call_operand.vmem [shape: bf16[64,512], index: 8, kind: input, shape index: {}]   ;;  %s9136_s9 = inlined_call_operand.vmem [shape: bf16[512,64], index: 9, kind: input, shape index: {}]   ;;  %s9137_s10 = inlined_call_operand.vmem [shape: f32[2,45,64], index: 10, kind: output, shape index: {0}]   ;;  %s9138_s11 = inlined_call_operand.vmem [shape: f32[2,8,45,128], index: 11, kind: output, shape index: {1}]  }
   0x1 LB: > { %s7203_s18 = sadd.s32 4294967295, %s7130_s17   ;;  %p5515_p0 = scmp.ge.s32.totalorder %s7130_s17, 1  ;;  %s7130_s17 = sphi %s7197_s17, %s23_s17  }
   0x2   : > { %p295_p1 = scmp.lt.s32.totalorder %s7130_s17, 3  ;;  %s320_s21 = sshll.u32 %s9132_s5, 4  ;;  %s321_s21 = int_to_ptr.vmem [resolvable:$true] %s320_s21 }
   0x3   : > { %p6617_p3 = scmp.eq.s32.totalorder %s7203_s18, 0  ;;  %s7105_s23 = scalar_lea.vmem %s321_s21, 16 }
   0x4   : > { %p7210_p2 = pnand %p5515_p0, %p295_p1  ;;  %p7106_p6 = scmp.ne.s32.totalorder %s321_s21, %s7105_s23 }
   0x5   : > { %p7113_p10 = scmp.lt.s32.totalorder %s321_s21, %s321_s21  ;;  %p7114_p11 = scmp.lt.s32.totalorder %s7105_s23, %s7105_s23 }
   0x6   : > { %p6613_p4 = pneg %p7210_p2 }
   0x7   : > { %p7115_p12 = por %p7114_p11, %p7113_p10 }
   0x8   : > { %p6614_p5 = pnand %p6617_p3, %p6613_p4 }
   0xa   : > { %p7107_p7 = pneg %p6614_p5 }
   0xc   : > { %p7108_p8 = pnand %p7107_p7, %p7106_p6 }
   0xe   : > { %p7109_p9 = pneg %p7108_p8 }
  0x10   : > { %p7116_p13 = pnand %p7115_p12, %p7109_p9 }
  0x12   : > { %7119 = shalt.err (!%p7116_p13)
}
  0x13   : > { %s7132_s24 = smov [#allocation6]   ;;  %353 = sbr.rel (%p7210_p2) target bundleno = 6829 (0x1aad), region = 60 }
  0x14   : > { %6616 = dma.vmem_to_smem (!%p6614_p5), %s321_s21, 16, %s7132_s24, [#allocation7]  }
  0x1a   : > { %7125 = dma.done.wait (%p6617_p3), [#allocation7], 16  }
  0x1b   : > { %7127 = vsyncadd (%p6617_p3), [#allocation7], 4294967280 }
  0x1c   : > { %359 = sfence }
  0x1d   : > { %v6657_v0 = vld [vmem:[%s9129_s2 + $0x4] ss:$48 sps:$4 sm:$0xff]   ;;  %p399_p0 = scmp.lt.s32.totalorder %s7203_s18, 1  ;;  %v6659_v1 = vld [vmem:[%s9129_s2] ss:$48 sps:$4 sm:$0xff]   ;;  %v7133_v2 = vmov 0  }
  0x1e   : > { %833 = vmatprep.mubr.bf16.mxu0 %v7133_v2  ;;  %423 = vst [vmem:[#allocation3 + $0x40] sm:$0xff] %v7133_v2  ;;  %424 = vst [vmem:[#allocation3 + $0x48] sm:$0xff] %v7133_v2  ;;  %896 = vmatprep.mubr.bf16.mxu1 %v7133_v2  ;;  %v6660_v3 = vld [vmem:[%s9129_s2 + $0x64] ss:$48 sps:$4 sm:$0xff]   ;;  %v6662_v4 = vld [vmem:[%s9129_s2 + $0x60] ss:$48 sps:$4 sm:$0xff]  }
  0x1f   : > { %425 = vst [vmem:[#allocation3 + $0x50] sm:$0xff] %v7133_v2  ;;  %426 = vst [vmem:[#allocation3 + $0x58] sm:$0xff] %v7133_v2  ;;  %801 = vmatprep.subr.bf16.mxu0 %v6657_v0  ;;  %s9200_s18 = smov (!%p399_p0, %s7203_s18), 1  ;;  %v6663_v5 = vld [vmem:[%s9129_s2 + $0xc4] ss:$48 sps:$4 sm:$0xff]   ;;  %v489_v10 = vld [vmem:[%s9128_s1 + $0x8] sm:$0xff] }
  0x20   : > { %427 = vst [vmem:[#allocation3 + $0x60] sm:$0xff] %v7133_v2  ;;  %455 = vst [vmem:[#allocation4 + $0x40] sm:$0xff] %v7133_v2  ;;  %802 = vmatpush1.bf16.msra.mxu0 %v6659_v1  ;;  %s6607_s16 = smul.u32 48, %s9200_s18  ;;  %v6665_v6 = vld [vmem:[%s9129_s2 + $0xc0] ss:$48 sps:$4 sm:$0xff]   ;;  %v491_v22 = vld [vmem:[%s9128_s1 + $0x18] sm:$0xff] }
  0x21   : > { %456 = vst [vmem:[#allocation4 + $0x48] sm:$0xff] %v7133_v2  ;;  %457 = vst [vmem:[#allocation4 + $0x50] sm:$0xff] %v7133_v2  ;;  %803 = vmatprep.subr.bf16.mxu0 %v6660_v3  ;;  %v488_v7 = vld [vmem:[%s9128_s1] sm:$0xff]  ;;  %v490_v21 = vld [vmem:[%s9128_s1 + $0x10] sm:$0xff]  ;;  %vm791_vm0 = vcmask 523264   ;;  %v9140_v46 = vmov 0.0  }
  0x22   : > { %458 = vst [vmem:[#allocation4 + $0x58] sm:$0xff] %v7133_v2  ;;  %s7266_s23 = scalar_lea.vmem %s9127_s0, %s6607_s16  ;;  %v6666_v11 = vld [vmem:[%s9129_s2 + $0x124] ss:$48 sps:$4 sm:$0xff]   ;;  %v6668_v14 = vld [vmem:[%s9129_s2 + $0x120] ss:$48 sps:$4 sm:$0xff]   ;;  %vm7135_vm1 = vmmov 0   ;;  %s408_s30 = scalar_lea.vmem %s9137_s10, %s6607_s16 }
  0x23   : > { %v482_v8 = vld [vmem:[%s7266_s23] sm:$0xff]  ;;  %v483_v9 = vld [vmem:[%s7266_s23 + $0x8] sm:$0xff]  ;;  %v484_v17 = vld [vmem:[%s7266_s23 + $0x10] sm:$0xff]  ;;  %vm1285_vm2 = vcmask 1042432   ;;  %vm1286_vm3 = vsmask.f32 2304 }
  0x24   : > { %804 = vmatpush1.bf16.msra.mxu0 %v6662_v4  ;;  %v7279_v12 = vadd.f32 %v488_v7, %v482_v8  ;;  %v7281_v13 = vadd.f32 %v489_v10, %v483_v9  ;;  %v6671_v15 = vld [vmem:[%s9129_s2 + $0x14] ss:$48 sps:$4 sm:$0xff]   ;;  %v6669_v16 = vld [vmem:[%s9129_s2 + $0x10] ss:$48 sps:$4 sm:$0xff]   ;;  %v485_v18 = vld [vmem:[%s7266_s23 + $0x18] sm:$0xff]  ;;  %v7312_v24 = vadd.f32 %v490_v21, %v484_v17  ;;  %vm1288_vm4 = vcmask 1046532  }
  0x25   : > { %805 = vmatprep.subr.bf16.mxu0 %v6663_v5  ;;  %v6674_v20 = vld [vmem:[%s9129_s2 + $0x74] ss:$48 sps:$4 sm:$0xff]   ;;  %v6672_v23 = vld [vmem:[%s9129_s2 + $0x70] ss:$48 sps:$4 sm:$0xff]   ;;  %v7314_v25 = vadd.f32 %v491_v22, %v485_v18  ;;  %v487_v29 = vld [vmem:[%s7266_s23 + $0x28] sm:$0x1f] }
  0x26   : > { %9152 = vst [vmem:[#allocation9_spill] sm:$0xff] %v7279_v12  ;;  %9153 = vst [vmem:[#allocation10_spill] sm:$0xff] %v7281_v13  ;;  %v7296_v19 = vpack.c.bf16 %v7281_v13, %v7279_v12  ;;  %v6677_v26 = vld [vmem:[%s9129_s2 + $0xd4] ss:$48 sps:$4 sm:$0xff]   ;;  %v6675_v27 = vld [vmem:[%s9129_s2 + $0xd0] ss:$48 sps:$4 sm:$0xff]  }
  0x27   : > { %9154 = vst [vmem:[#allocation11_spill] sm:$0xff] %v7312_v24  ;;  %9155 = vst [vmem:[#allocation12_spill] sm:$0xff] %v7314_v25  ;;  %v486_v28 = vld [vmem:[%s7266_s23 + $0x20] sm:$0xff]  ;;  %v493_v31 = vld [vmem:[%s9128_s1 + $0x28] sm:$0x1f]  ;;  %v7333_v32 = vpack.c.bf16 %v7314_v25, %v7312_v24  ;;  %vm1306_vm9 = vcmask 1046528  }
  0x28   : > { %806 = vmatpush1.bf16.msra.mxu0 %v6665_v6  ;;  %v492_v30 = vld [vmem:[%s9128_s1 + $0x20] sm:$0xff]  ;;  %v7345_v36 = vadd.f32 %v493_v31, %v487_v29  ;;  %v6696_v47 = vld [vmem:[%s9129_s2 + $0xc] ss:$48 sps:$4 sm:$0xff]   ;;  %v6698_v48 = vld [vmem:[%s9129_s2 + $0x8] ss:$48 sps:$4 sm:$0xff]   ;;  %vm1483_vm12 = vcmask 1044480  }
  0x29   : > { %807 = vmatprep.subr.bf16.mxu0 %v6666_v11  ;;  %v6680_v33 = vld [vmem:[%s9129_s2 + $0x134] ss:$48 sps:$4 sm:$0xff]   ;;  %v6678_v34 = vld [vmem:[%s9129_s2 + $0x130] ss:$48 sps:$4 sm:$0xff]   ;;  %v7343_v35 = vadd.f32 %v492_v30, %v486_v28  ;;  %v6699_v49 = vld [vmem:[%s9129_s2 + $0x6c] ss:$48 sps:$4 sm:$0xff]   ;;  %864 = vmatprep.subr.bf16.mxu1 %v6696_v47 }
  0x2a   : > { %9157 = vst [vmem:[#allocation14_spill] sm:$0xff] %v7345_v36  ;;  %v6683_v38 = vld [vmem:[%s9129_s2 + $0x24] ss:$48 sps:$4 sm:$0xff]   ;;  %v6681_v39 = vld [vmem:[%s9129_s2 + $0x20] ss:$48 sps:$4 sm:$0xff]   ;;  %865 = vmatpush1.bf16.msra.mxu1 %v6698_v48  ;;  %vm7447_vm6 = vmand %vm1285_vm2, %vm1286_vm3  ;;  %s7136_s25 = smov 64  }
  0x2b   : > { %9156 = vst [vmem:[#allocation13_spill] sm:$0xff] %v7343_v35  ;;  %v7350_v37 = vpack.c.bf16 %v7345_v36, %v7343_v35  ;;  %v6686_v40 = vld [vmem:[%s9129_s2 + $0x84] ss:$48 sps:$4 sm:$0xff]   ;;  %v6684_v41 = vld [vmem:[%s9129_s2 + $0x80] ss:$48 sps:$4 sm:$0xff]   ;;  %866 = vmatprep.subr.bf16.mxu1 %v6699_v49  ;;  %s6608_s26 = smul.u32 384, %s9200_s18 }
  0x2c   : > { %808 = vmatpush1.bf16.msra.mxu0 %v6668_v14  ;;  %v6689_v42 = vld [vmem:[%s9129_s2 + $0xe4] ss:$48 sps:$4 sm:$0xff]   ;;  %v6687_v43 = vld [vmem:[%s9129_s2 + $0xe0] ss:$48 sps:$4 sm:$0xff]   ;;  %v6701_v50 = vld [vmem:[%s9129_s2 + $0x68] ss:$48 sps:$4 sm:$0xff]  }
  0x2d   : > { %927 = vmatprep.subr.bf16.mxu0 %v6671_v15  ;;  %v6692_v44 = vld [vmem:[%s9129_s2 + $0x144] ss:$48 sps:$4 sm:$0xff]   ;;  %v6690_v45 = vld [vmem:[%s9129_s2 + $0x140] ss:$48 sps:$4 sm:$0xff]   ;;  %v6702_v51 = vld [vmem:[%s9129_s2 + $0xcc] ss:$48 sps:$4 sm:$0xff]   ;;  %s7672_s29 = scalar_lea.vmem %s9138_s11, %s6608_s26 }
  0x2e   : > { %867 = vmatpush1.bf16.msra.mxu1 %v6701_v50  ;;  %v6704_v52 = vld [vmem:[%s9129_s2 + $0xc8] ss:$48 sps:$4 sm:$0xff]   ;;  %v6705_v53 = vld [vmem:[%s9129_s2 + $0x12c] ss:$48 sps:$4 sm:$0xff]   ;;  %vm1289_vm5 = vsmask.f32 6400 }
  0x2f   : > { %5571 = vmatmul.mubr.msk.bf16.vlgmr.msra.gmra.mrb[0].mxu0 %vm791_vm0, %v7296_v19  ;;  %868 = vmatprep.subr.bf16.mxu1 %v6702_v51  ;;  %v6707_v56 = vld [vmem:[%s9129_s2 + $0x128] ss:$48 sps:$4 sm:$0xff]   ;;  %v6710_v59 = vld [vmem:[%s9129_s2 + $0x1c] ss:$48 sps:$4 sm:$0xff]   ;;  %vm7452_vm7 = vmand %vm1288_vm4, %vm1289_vm5  ;;  %vm4353_vm13 = vcmask 520192   ;;  %s5762_s21 = sld [smem:[#allocation6 + $0x1]] }
  0x30   : > { %928 = vmatpush1.bf16.msra.mxu0 %v6669_v16  ;;  %843 = vmatprep.mubr.bf16.mxu0 %v7133_v2  ;;  %v6708_v62 = vld [vmem:[%s9129_s2 + $0x18] ss:$48 sps:$4 sm:$0xff]   ;;  %v6713_v63 = vld [vmem:[%s9129_s2 + $0x7c] ss:$48 sps:$4 sm:$0xff]   ;;  %v1292_v21 = vld [vmem:[#allocation2 + $0x50] sm:$0x77] }
  0x31   : > { %929 = vmatprep.subr.bf16.mxu0 %v6674_v20  ;;  %v6711_v3 = vld [vmem:[%s9129_s2 + $0x78] ss:$48 sps:$4 sm:$0xff]   ;;  %v6716_v6 = vld [vmem:[%s9129_s2 + $0xdc] ss:$48 sps:$4 sm:$0xff]   ;;  %vm1291_vm8 = vmor %vm7452_vm7, %vm7447_vm6  ;;  %s5763_s22 = sld [smem:[#allocation6 + $0x3]]  ;;  %s4440_s28 = sld [smem:[#allocation6]] }
  0x32   : > { %869 = vmatpush1.bf16.msra.mxu1 %v6704_v52  ;;  %v6714_v9 = vld [vmem:[%s9129_s2 + $0xd8] ss:$48 sps:$4 sm:$0xff]   ;;  %v6719_v10 = vld [vmem:[%s9129_s2 + $0x13c] ss:$48 sps:$4 sm:$0xff]   ;;  %vm7516_vm10 = vmand %vm1306_vm9, %vm1289_vm5  ;;  %vm4520_vm14 = vcmask 1040384   ;;  %vm4557_vm15 = vcmask 1043456  }
  0x33   : > { %870 = vmatprep.subr.bf16.mxu1 %v6705_v53  ;;  %v6717_v17 = vld [vmem:[%s9129_s2 + $0x138] ss:$48 sps:$4 sm:$0xff]   ;;  %v6722_v22 = vld [vmem:[%s9129_s2 + $0x2c] ss:$48 sps:$4 sm:$0xff]  }
  0x34   : > { %930 = vmatpush1.bf16.msra.mxu0 %v6672_v23  ;;  %v6726_v51 = vld [vmem:[%s9129_s2 + $0xe8] ss:$48 sps:$4 sm:$0xff]   ;;  %v6731_v52 = vld [vmem:[%s9129_s2 + $0x14c] ss:$48 sps:$4 sm:$0xff]  }
  0x35   : > { %931 = vmatprep.subr.bf16.mxu0 %v6677_v26 }
  0x36   : > { %871 = vmatpush1.bf16.msra.mxu1 %v6707_v56 }
  0x37   : > { %5572 = vmatmul.mubr.msk.bf16.gmra.mrb[4].mxu0 %vm791_vm0, %v7333_v32  ;;  %990 = vmatprep.subr.bf16.mxu1 %v6710_v59 }
  0x38   : > { %932 = vmatpush1.bf16.msra.mxu0 %v6675_v27  ;;  %853 = vmatprep.mubr.bf16.mxu0 %v7133_v2 }
  0x39   : > { %933 = vmatprep.subr.bf16.mxu0 %v6680_v33  ;;  %5574 = vmatmul.mubr.msk.bf16.vlgmr.msra.gmra.mrb[0].mxu1 %vm791_vm0, %v7296_v19 }
  0x3a   : > { %906 = vmatprep.mubr.bf16.mxu1 %v7133_v2  ;;  %991 = vmatpush1.bf16.msra.mxu1 %v6708_v62 }
  0x3b   : > { %992 = vmatprep.subr.bf16.mxu1 %v6713_v63 }
  0x3c   : > { %934 = vmatpush1.bf16.msra.mxu0 %v6678_v34 }
  0x3d   : > { %1053 = vmatprep.subr.bf16.mxu0 %v6683_v38 }
  0x3e   : > { %993 = vmatpush1.bf16.msra.mxu1 %v6711_v3 }
  0x3f   : > { %5573 = vmatmul.mubr.msk.bf16.gmra.mrb[8].mxu0 %vm791_vm0, %v7350_v37  ;;  %994 = vmatprep.subr.bf16.mxu1 %v6716_v6 }
  0x40   : > { %959 = vmatprep.mubr.bf16.mxu0 %v7133_v2 }
  0x41   : > { %5575 = vmatmul.mubr.msk.bf16.gmra.mrb[4].mxu1 %vm791_vm0, %v7333_v32 }
  0x42   : > { %916 = vmatprep.mubr.bf16.mxu1 %v7133_v2  ;;  %995 = vmatpush1.bf16.msra.mxu1 %v6714_v9 }
  0x43   : > { %996 = vmatprep.subr.bf16.mxu1 %v6719_v10 }
  0x46   : > { %997 = vmatpush1.bf16.msra.mxu1 %v6717_v17 }
  0x47   : > { %5577 = vmatmul.mubr.msk.bf16.vlgmr.msra.gmra.mrb[12].mxu0 %vm791_vm0, %v7296_v19  ;;  %1116 = vmatprep.subr.bf16.mxu1 %v6722_v22 }
  0x48   : > { %969 = vmatprep.mubr.bf16.mxu0 %v7133_v2  ;;  %1054 = vmatpush1.bf16.msra.mxu0 %v6681_v39  ;;  %v6720_v39 = vld [vmem:[%s9129_s2 + $0x28] ss:$48 sps:$4 sm:$0xff]  }
  0x49   : > { %1055 = vmatprep.subr.bf16.mxu0 %v6686_v40  ;;  %5576 = vmatmul.mubr.msk.bf16.gmra.mrb[8].mxu1 %vm791_vm0, %v7350_v37  ;;  %v6725_v40 = vld [vmem:[%s9129_s2 + $0x8c] ss:$48 sps:$4 sm:$0xff]  }
  0x4a   : > { %1022 = vmatprep.mubr.bf16.mxu1 %v7133_v2 }
  0x4c   : > { %1056 = vmatpush1.bf16.msra.mxu0 %v6684_v41 }
  0x4d   : > { %1057 = vmatprep.subr.bf16.mxu0 %v6689_v42 }
  0x4f   : > { %5578 = vmatmul.mubr.msk.bf16.gmra.mrb[16].mxu0 %vm791_vm0, %v7333_v32 }
  0x50   : > { %979 = vmatprep.mubr.bf16.mxu0 %v7133_v2  ;;  %1058 = vmatpush1.bf16.msra.mxu0 %v6687_v43  ;;  %v6723_v43 = vld [vmem:[%s9129_s2 + $0x88] ss:$48 sps:$4 sm:$0xff]  }
  0x51   : > { %1059 = vmatprep.subr.bf16.mxu0 %v6692_v44  ;;  %5580 = vmatmul.mubr.msk.bf16.vlgmr.msra.gmra.mrb[12].mxu1 %vm791_vm0, %v7296_v19 }
  0x52   : > { %1032 = vmatprep.mubr.bf16.mxu1 %v7133_v2  ;;  %1117 = vmatpush1.bf16.msra.mxu1 %v6720_v39  ;;  %v9139_v39 = vlaneseq }
  0x53   : > { %1118 = vmatprep.subr.bf16.mxu1 %v6725_v40 }
  0x54   : > { %1060 = vmatpush1.bf16.msra.mxu0 %v6690_v45  ;;  %v6728_v45 = vld [vmem:[%s9129_s2 + $0xec] ss:$48 sps:$4 sm:$0xff]   ;;  %v7597_v40 = vand.u32 127, %v9139_v39 }
  0x55   : > { %6159 = vmatprep.subr.bf16.mxu0 %v9140_v46 }
  0x56   : > { %1119 = vmatpush1.bf16.msra.mxu1 %v6723_v43  ;;  %vm481_vm11 = vcmp.lt.s32.totalorder %v7597_v40, 45 }
  0x57   : > { %5579 = vmatmul.mubr.msk.bf16.gmra.mrb[20].mxu0 %vm791_vm0, %v7350_v37  ;;  %1120 = vmatprep.subr.bf16.mxu1 %v6728_v45 }
  0x58   : > { %1085 = vmatprep.mubr.bf16.mxu0 %v7133_v2 }
  0x59   : > { %5581 = vmatmul.mubr.msk.bf16.gmra.mrb[16].mxu1 %vm791_vm0, %v7333_v32 }
  0x5a   : > { %1042 = vmatprep.mubr.bf16.mxu1 %v7133_v2  ;;  %1121 = vmatpush1.bf16.msra.mxu1 %v6726_v51 }
  0x5b   : > { %1122 = vmatprep.subr.bf16.mxu1 %v6731_v52 }
  0x5f   : > { %5583 = vmatmul.mubr.msk.bf16.vlgmr.msra.gmra.mrb[24].mxu0 %vm791_vm0, %v7296_v19 }
  0x60   : > { %1095 = vmatprep.mubr.bf16.mxu0 %v7133_v2 }
  0x61   : > { %5582 = vmatmul.mubr.msk.bf16.gmra.mrb[20].mxu1 %vm791_vm0, %v7350_v37 }
  0x62   : > { %1148 = vmatprep.mubr.bf16.mxu1 %v7133_v2 }
  0x67   : > { %5584 = vmatmul.mubr.msk.bf16.gmra.mrb[28].mxu0 %vm791_vm0, %v7333_v32 }
  0x68   : > { %1105 = vmatprep.mubr.bf16.mxu0 %v7133_v2 }
  0x6f   : > { %5585 = vmatmul.mubr.msk.bf16.gmra.mrb[32].mxu0 %vm791_vm0, %v7350_v37 }
  0x70   : > { %6175 = vmatprep.mubr.msk.bf16.mxu0 %vm7135_vm1, %v9140_v46 }
 0x102   : > { %v835_v54 = vpop.f32.mrb[0].mxu0 }
 0x103   : > { %v837_v55 = vpop.f32.mrb[1].mxu0 }
 0x104   : > { %v5835_v57 = vpack.c.bf16 %v837_v55, %v835_v54  ;;  %v839_v58 = vpop.f32.mrb[2].mxu0  ;;  %v6729_v55 = vld [vmem:[%s9129_s2 + $0x148] ss:$48 sps:$4 sm:$0xff]  }
 0x105   : > { %v841_v60 = vpop.f32.mrb[3].mxu0  ;;  %1123 = vmatpush1.bf16.msra.mxu1 %v6729_v55 }
 0x106   : > { %1275 = vst [vmem:[#allocation2] sm:$0xff] %v5835_v57  ;;  %v5837_v61 = vpack.c.bf16 %v841_v60, %v839_v58  ;;  %v1308_v58 = vld [vmem:[#allocation3 + $0x40] sm:$0x7f]  ;;  %6187 = vmatprep.subr.bf16.mxu1 %v9140_v46 }
 0x108   : > { %1277 = vst [vmem:[#allocation2 + $0x10] sm:$0xff] %v5837_v61  ;;  %v1311_v61 = vld [vmem:[#allocation3 + $0x48] sm:$0x7f]  ;;  %5586 = vmatmul.mubr.msk.bf16.vlgmr.msra.gmra.mrb[24].mxu1 %vm791_vm0, %v7296_v19 }
 0x109   : > { %1158 = vmatprep.mubr.bf16.mxu1 %v7133_v2 }
 0x10a   : > { %v845_v0 = vpop.f32.mrb[4].mxu0 }
 0x10b   : > { %v847_v1 = vpop.f32.mrb[5].mxu0 }
 0x10c   : > { %v5839_v4 = vpack.c.bf16 %v847_v1, %v845_v0  ;;  %v849_v5 = vpop.f32.mrb[6].mxu0 }
 0x10d   : > { %v851_v7 = vpop.f32.mrb[7].mxu0 }
 0x10e   : > { %1279 = vst [vmem:[#allocation2 + $0x20] sm:$0xff] %v5839_v4  ;;  %v5841_v8 = vpack.c.bf16 %v851_v7, %v849_v5 }
 0x10f   : > { %v6693_v19 = vld [vmem:[#allocation2] ss:$16 sps:$4 sm:$0xff]  }
 0x110   : > { %1281 = vst [vmem:[#allocation2 + $0x30] sm:$0xff] %v5841_v8  ;;  %5587 = vmatmul.mubr.msk.bf16.gmra.mrb[28].mxu1 %vm791_vm0, %v7333_v32 }
 0x111   : > { %1168 = vmatprep.mubr.bf16.mxu1 %v7133_v2 }
 0x112   : > { %v855_v14 = vpop.f32.mrb[8].mxu0 }
 0x113   : > { %v857_v16 = vpop.f32.mrb[9].mxu0 }
 0x114   : > { %v5843_v18 = vpack.c.bf16 %v857_v16, %v855_v14  ;;  %v859_v20 = vpop.f32.mrb[10].mxu0 }
 0x115   : > { %v861_v23 = vpop.f32.mrb[11].mxu0 }
 0x116   : > { %1283 = vst [vmem:[#allocation2 + $0x40] sm:$0xff] %v5843_v18  ;;  %v5845_v26 = vpack.c.bf16 %v861_v23, %v859_v20  ;;  %v1328_v23 = vld [vmem:[#allocation4 + $0x40] sm:$0x7f] }
 0x117   : > { %v6694_v32 = vld [vmem:[#allocation2 + $0x20] ss:$16 sps:$4 sm:$0xff]  }
 0x118   : > { %v1293_v27 = vsel %vm1291_vm8, %v5845_v26, %v1292_v21  ;;  %5588 = vmatmul.mubr.msk.bf16.gmra.mrb[32].mxu1 %vm791_vm0, %v7350_v37 }
 0x119   : > { %1294 = vst [vmem:[#allocation2 + $0x50] sm:$0x77] %v1293_v27  ;;  %6203 = vmatprep.mubr.msk.bf16.mxu1 %vm7135_vm1, %v9140_v46 }
 0x11a   : > { %v961_v28 = vpop.f32.mrb[12].mxu0 }
 0x11b   : > { %v963_v29 = vpop.f32.mrb[13].mxu0 }
 0x11c   : > { %v965_v30 = vpop.f32.mrb[14].mxu0 }
 0x11d   : > { %v7477_v31 = vpack.c.bf16 %v965_v30, %v961_v28  ;;  %v967_v33 = vpop.f32.mrb[15].mxu0  ;;  %v1331_v28 = vld [vmem:[#allocation4 + $0x48] sm:$0x7f] }
 0x11e   : > { %v1184_v34 = vpack.c.bf16 %v967_v33, %v963_v29 }
 0x11f   : > { %v1387_v38 = vsel %vm791_vm0, %v7477_v31, 0 }
 0x120   : > { %1299 = vst [vmem:[#allocation3 + $0x8] sm:$0xff] %v1184_v34  ;;  %6160 = vmatpush3.bf16.xpose.msra.mxu0 %v1387_v38  ;;  %v6695_v8 = vld [vmem:[#allocation2 + $0x40] ss:$16 sps:$4 sm:$0x7f]  }
 0x121   : > { %6161 = vmatprep.subr.bf16.mxu0 %v9140_v46  ;;  %v7584_v38 = vld [vmem:[#allocation3 + $0x50] sm:$0xff] }
 0x122   : > { %v971_v41 = vpop.f32.mrb[16].mxu0 }
 0x123   : > { %v973_v42 = vpop.f32.mrb[17].mxu0 }
 0x124   : > { %v975_v44 = vpop.f32.mrb[18].mxu0 }
 0x125   : > { %v7497_v47 = vpack.c.bf16 %v975_v44, %v971_v41  ;;  %v977_v48 = vpop.f32.mrb[19].mxu0 }
 0x126   : > { %v1196_v49 = vpack.c.bf16 %v977_v48, %v973_v42 }
 0x127   : > { %v1390_v50 = vsel %vm791_vm0, %v7497_v47, 0 }
 0x128   : > { %1303 = vst [vmem:[#allocation3 + $0x28] sm:$0xff] %v1196_v49  ;;  %6162 = vmatpush3.bf16.xpose.msra.mxu0 %v1390_v50 }
 0x129   : > { %6163 = vmatprep.subr.bf16.mxu0 %v9140_v46 }
 0x12a   : > { %v981_v53 = vpop.f32.mrb[20].mxu0 }
 0x12b   : > { %v983_v54 = vpop.f32.mrb[21].mxu0 }
 0x12c   : > { %v985_v57 = vpop.f32.mrb[22].mxu0 }
 0x12d   : > { %v1207_v59 = vpack.c.bf16 %v985_v57, %v981_v53  ;;  %v987_v60 = vpop.f32.mrb[23].mxu0 }
 0x12e   : > { %v1208_v62 = vpack.c.bf16 %v987_v60, %v983_v54 }
 0x12f   : > { %v1309_v63 = vsel %vm7516_vm10, %v1207_v59, %v1308_v58 }
 0x130   : > { %1310 = vst [vmem:[#allocation3 + $0x40] sm:$0x7f] %v1309_v63  ;;  %v1312_v0 = vsel %vm7516_vm10, %v1208_v62, %v1311_v61 }
 0x131   : > { %1313 = vst [vmem:[#allocation3 + $0x48] sm:$0x7f] %v1312_v0 }
 0x132   : > { %v1087_v37 = vpop.f32.mrb[24].mxu0 }
 0x133   : > { %v1089_v4 = vpop.f32.mrb[25].mxu0 }
 0x134   : > { %v1091_v5 = vpop.f32.mrb[26].mxu0 }
 0x135   : > { %v7559_v6 = vpack.c.bf16 %v1091_v5, %v1087_v37 }
 0x137   : > { %v7528_v1 = vld [vmem:[#allocation3 + $0x40] sm:$0xff]  ;;  %6188 = vmatpush3.bf16.msra.mxu1 %v7559_v6 }
 0x138   : > { %v1393_v3 = vsel %vm791_vm0, %v7528_v1, 0  ;;  %6189 = vmatprep.subr.bf16.mxu1 %v9140_v46 }
 0x139   : > { %6164 = vmatpush3.bf16.xpose.msra.mxu0 %v1393_v3 }
 0x13a   : > { %6165 = vmatprep.subr.bf16.mxu0 %v9140_v46 }
 0x141   : > { %6166 = vmatpush3.bf16.xpose.msra.mxu0 %v7133_v2 }
 0x142   : > { %6167 = vmatprep.subr.bf16.mxu0 %v9140_v46 }
 0x149   : > { %6168 = vmatpush3.bf16.xpose.msra.mxu0 %v7133_v2 }
 0x14a   : > { %6169 = vmatprep.subr.bf16.mxu0 %v9140_v46 }
 0x151   : > { %6170 = vmatpush3.bf16.xpose.msra.mxu0 %v7133_v2 }
 0x152   : > { %6171 = vmatprep.subr.bf16.mxu0 %v9140_v46 }
 0x159   : > { %6172 = vmatpush3.bf16.xpose.msra.mxu0 %v7133_v2 }
 0x15a   : > { %6173 = vmatprep.subr.bf16.mxu0 %v9140_v46 }
 0x161   : > { %6174 = vmatpush3.bf16.xpose.msra.mxu0 %v7133_v2  ;;  %v1093_v2 = vpop.f32.mrb[27].mxu0 }
 0x162   : > { %6243 = vmatprep.subr.bf16.mxu0 %v9140_v46  ;;  %v7561_v7 = vpack.c.bf16 %v1093_v2, %v1089_v4  ;;  %v1097_v9 = vpop.f32.mrb[28].mxu0 }
 0x163   : > { %v1099_v10 = vpop.f32.mrb[29].mxu0 }
 0x164   : > { %1321 = vst [vmem:[#allocation4 + $0x8] sm:$0xff] %v7561_v7  ;;  %v1101_v14 = vpop.f32.mrb[30].mxu0 }
 0x165   : > { %v7567_v16 = vpack.c.bf16 %v1101_v14, %v1097_v9  ;;  %v1103_v17 = vpop.f32.mrb[31].mxu0 }
 0x166   : > { %v7571_v18 = vpack.c.bf16 %v1103_v17, %v1099_v10  ;;  %v1107_v20 = vpop.f32.mrb[32].mxu0 }
 0x167   : > { %6190 = vmatpush3.bf16.msra.mxu1 %v7567_v16  ;;  %v1109_v21 = vpop.f32.mrb[33].mxu0 }
 0x168   : > { %6176 = vmatmul.mubr.msk.bf16.vlgmr.msra.gmra.mrb[36].mxu0 %vm791_vm0, %v6693_v19  ;;  %1325 = vst [vmem:[#allocation4 + $0x28] sm:$0xff] %v7571_v18  ;;  %6191 = vmatprep.subr.bf16.mxu1 %v9140_v46  ;;  %v1111_v22 = vpop.f32.mrb[34].mxu0 }
 0x169   : > { %6179 = vmatprep.mubr.msk.bf16.mxu0 %vm7135_vm1, %v9140_v46  ;;  %v1211_v26 = vpack.c.bf16 %v1111_v22, %v1107_v20  ;;  %v1113_v27 = vpop.f32.mrb[35].mxu0 }
 0x16a   : > { %v1212_v29 = vpack.c.bf16 %v1113_v27, %v1109_v21 }
 0x16b   : > { %v1329_v30 = vsel %vm7516_vm10, %v1211_v26, %v1328_v23 }
 0x16c   : > { %1330 = vst [vmem:[#allocation4 + $0x40] sm:$0x7f] %v1329_v30  ;;  %v1332_v33 = vsel %vm7516_vm10, %v1212_v29, %v1331_v28 }
 0x16d   : > { %1333 = vst [vmem:[#allocation4 + $0x48] sm:$0x7f] %v1332_v33  ;;  %v6732_v33 = vld [vmem:[#allocation2 + $0x20] ss:$16 sps:$4 sm:$0xff]  }
 0x170   : > { %6180 = vmatmul.mubr.msk.bf16.gmra.mrb[40].mxu0 %vm791_vm0, %v6694_v32 }
 0x171   : > { %6183 = vmatprep.mubr.msk.bf16.mxu0 %vm7135_vm1, %v9140_v46 }
 0x173   : > { %v7580_v34 = vld [vmem:[#allocation4 + $0x40] sm:$0xff] }
 0x174   : > { %6192 = vmatpush3.bf16.msra.mxu1 %v7580_v34 }
 0x175   : > { %6193 = vmatprep.subr.bf16.mxu1 %v9140_v46 }
 0x178   : > { %6184 = vmatmul.mubr.msk.bf16.gmra.mrb[44].mxu0 %vm791_vm0, %v6695_v8  ;;  %6194 = vmatpush3.bf16.msra.mxu1 %v7584_v38 }
 0x179   : > { %6259 = vmatprep.mubr.msk.bf16.mxu0 %vm7135_vm1, %v9140_v46  ;;  %6195 = vmatprep.subr.bf16.mxu1 %v9140_v46 }
 0x17c   : > { %6196 = vmatpush3.bf16.msra.mxu1 %v7584_v38 }
 0x17d   : > { %6197 = vmatprep.subr.bf16.mxu1 %v9140_v46 }
 0x180   : > { %6198 = vmatpush3.bf16.msra.mxu1 %v7584_v38 }
 0x181   : > { %6199 = vmatprep.subr.bf16.mxu1 %v9140_v46 }
 0x184   : > { %6200 = vmatpush3.bf16.msra.mxu1 %v7584_v38 }
 0x185   : > { %6201 = vmatprep.subr.bf16.mxu1 %v9140_v46 }
 0x188   : > { %6202 = vmatpush3.bf16.msra.mxu1 %v7584_v38 }
 0x189   : > { %6215 = vmatprep.subr.bf16.mxu1 %v9140_v46 }
 0x23b   : > { %v1444_v41 = vpop.f32.mrb[36].mxu0 }
 0x23c   : > { %v6177_v42 = vpop.f32.mrb[37].mxu0  ;;  %v1467_v43 = vsel %vm481_vm11, %v1444_v41, -1e+09  ;;  %v6733_v41 = vld [vmem:[#allocation2] ss:$16 sps:$4 sm:$0xff]  }
 0x23d   : > { %1473 = vmax.xlane.f32.xlu0 %v1467_v43  ;;  %v1447_v44 = vpop.f32.mrb[38].mxu0  ;;  %v6734_v42 = vld [vmem:[#allocation2 + $0x40] ss:$16 sps:$4 sm:$0x7f]  }
 0x23e   : > { %v6178_v45 = vpop.f32.mrb[39].mxu0  ;;  %v1468_v48 = vsel %vm481_vm11, %v1447_v44, -1e+09 }
 0x241   : > { %1475 = vmax.xlane.f32.xlu0 %v1468_v48 }
 0x243   : > { %v1452_v49 = vpop.f32.mrb[40].mxu0 }
 0x244   : > { %v6181_v50 = vpop.f32.mrb[41].mxu0  ;;  %v1469_v51 = vsel %vm481_vm11, %v1452_v49, -1e+09 }
 0x245   : > { %1477 = vmax.xlane.f32.xlu1 %v1469_v51  ;;  %v1455_v52 = vpop.f32.mrb[42].mxu0 }
 0x246   : > { %v6182_v53 = vpop.f32.mrb[43].mxu0  ;;  %v1470_v54 = vsel %vm481_vm11, %v1455_v52, -1e+09 }
 0x249   : > { %1479 = vmax.xlane.f32.xlu1 %v1470_v54 }
 0x24b   : > { %v1460_v55 = vpop.f32.mrb[44].mxu0 }
 0x24c   : > { %v6185_v57 = vpop.f32.mrb[45].mxu0  ;;  %v1471_v58 = vsel %vm481_vm11, %v1460_v55, -1e+09 }
 0x24d   : > { %1481 = vmax.xlane.f32.xlu1 %v1471_v58  ;;  %v1463_v59 = vpop.f32.mrb[46].mxu0 }
 0x24e   : > { %v1472_v60 = vsel %vm481_vm11, %v1463_v59, -1e+09  ;;  %v6186_v61 = vpop.f32.mrb[47].mxu0 }
 0x24f   : > { %v1484_v62 = vsel %vm1483_vm12, %v1472_v60, -inf }
 0x250   : > { %1485 = vmax.xlane.f32.xlu0 %v1484_v62  ;;  %v1295_v62 = vld [vmem:[#allocation2 + $0x58] sm:$0x77] }
 0x25e   : > { %1658 = vrot.lane.b32.xlu1 %v7497_v47, %s7136_s25  ;;  %v7625_v47 = vpack.i.bf16 %v7584_v38, %v7584_v38 }
 0x266   : > { %1656 = vrot.lane.b32.xlu0 %v7477_v31, %s7136_s25 }
 0x2ca   : > { %v1474_v63 = vpop.xlane.xlu0 %1473 }
 0x2cb   : > { %v1487_v0 = vsub.f32 %v1467_v43, %v1474_v63  ;;  %v898_v43 = vpop.f32.mrb[0].mxu1 }
 0x2cc   : > { %v900_v44 = vpop.f32.mrb[1].mxu1 }
 0x2cd   : > { %v1493_v3 = vmul.f32 1.442695, %v1487_v0  ;;  %v5836_v45 = vpack.c.bf16 %v900_v44, %v898_v43 }
 0x2ce   : > { %v1476_v19 = vpop.xlane.xlu0 %1475 }
 0x2cf   : > { %6859 = vpow2.f32 %v1493_v3  ;;  %v1488_v32 = vsub.f32 %v1468_v48, %v1476_v19  ;;  %v902_v48 = vpop.f32.mrb[2].mxu1  ;;  %1276 = vst [vmem:[#allocation2 + $0x8] sm:$0xff] %v5836_v45  ;;  %v1317_v45 = vld [vmem:[#allocation3 + $0x58] sm:$0x7f] }
 0x2d0   : > { %v904_v49 = vpop.f32.mrb[3].mxu1 }
 0x2d1   : > { %v1495_v37 = vmul.f32 1.442695, %v1488_v32  ;;  %v5838_v50 = vpack.c.bf16 %v904_v49, %v902_v48 }
 0x2d2   : > { %v1478_v31 = vpop.xlane.xlu1 %1477 }
 0x2d3   : > { %6861 = vpow2.f32 %v1495_v37  ;;  %v1489_v9 = vsub.f32 %v1469_v51, %v1478_v31  ;;  %v908_v51 = vpop.f32.mrb[4].mxu1  ;;  %1278 = vst [vmem:[#allocation2 + $0x18] sm:$0xff] %v5838_v50 }
 0x2d4   : > { %v910_v52 = vpop.f32.mrb[5].mxu1 }
 0x2d5   : > { %v1497_v20 = vmul.f32 1.442695, %v1489_v9  ;;  %v5840_v53 = vpack.c.bf16 %v910_v52, %v908_v51 }
 0x2d6   : > { %v1480_v2 = vpop.xlane.xlu1 %1479 }
 0x2d7   : > { %v1490_v8 = vsub.f32 %v1470_v54, %v1480_v2  ;;  %v912_v54 = vpop.f32.mrb[6].mxu1  ;;  %1280 = vst [vmem:[#allocation2 + $0x28] sm:$0xff] %v5840_v53 }
 0x2d8   : > { %v914_v55 = vpop.f32.mrb[7].mxu1 }
 0x2d9   : > { %v7617_v4 = vpop.eup %6859  ;;  %v1499_v10 = vmul.f32 1.442695, %v1490_v8  ;;  %v5842_v57 = vpack.c.bf16 %v914_v55, %v912_v54 }
 0x2da   : > { %1505 = vadd.xlane.f32.xlu0 %v7617_v4  ;;  %v1482_v14 = vpop.xlane.xlu1 %1481 }
 0x2db   : > { %6863 = vpow2.f32 %v1499_v10  ;;  %v1491_v21 = vsub.f32 %v1471_v58, %v1482_v14  ;;  %v918_v58 = vpop.f32.mrb[8].mxu1  ;;  %1282 = vst [vmem:[#allocation2 + $0x38] sm:$0xff] %v5842_v57 }
 0x2dc   : > { %6865 = vpow2.f32 %v1497_v20  ;;  %v920_v59 = vpop.f32.mrb[9].mxu1 }
 0x2dd   : > { %v7620_v5 = vpop.eup %6861  ;;  %v1486_v17 = vpop.xlane.xlu0 %1485  ;;  %v1501_v23 = vmul.f32 1.442695, %v1491_v21 }
 0x2de   : > { %1507 = vadd.xlane.f32.xlu1 %v7620_v5  ;;  %v1492_v22 = vsub.f32 %v1472_v60, %v1486_v17  ;;  %v5844_v60 = vpack.c.bf16 %v920_v59, %v918_v58  ;;  %v922_v61 = vpop.f32.mrb[10].mxu1  ;;  %v7660_v14 = vpop.permute.xlu1 %1658 }
 0x2df   : > { %6867 = vpow2.f32 %v1501_v23  ;;  %v924_v63 = vpop.f32.mrb[11].mxu1 }
 0x2e0   : > { %v1503_v26 = vmul.f32 1.442695, %v1492_v22  ;;  %1284 = vst [vmem:[#allocation2 + $0x48] sm:$0xff] %v5844_v60  ;;  %v5846_v0 = vpack.c.bf16 %v924_v63, %v922_v61  ;;  %v1024_v3 = vpop.f32.mrb[12].mxu1 }
 0x2e1   : > { %v1026_v19 = vpop.f32.mrb[13].mxu1  ;;  %v7653_v32 = vpop.permute.xlu0 %1656 }
 0x2e2   : > { %6869 = vpow2.f32 %v1503_v26  ;;  %v1296_v37 = vsel %vm1291_vm8, %v5846_v0, %v1295_v62  ;;  %v1028_v31 = vpop.f32.mrb[14].mxu1 }
 0x2e3   : > { %1297 = vst [vmem:[#allocation2 + $0x58] sm:$0x77] %v1296_v37  ;;  %v1185_v2 = vpack.c.bf16 %v1028_v31, %v1024_v3  ;;  %v1030_v8 = vpop.f32.mrb[15].mxu1 }
 0x2e4   : > { %v1186_v9 = vpack.c.bf16 %v1030_v8, %v1026_v19  ;;  %v1034_v10 = vpop.f32.mrb[16].mxu1  ;;  %v1334_v8 = vld [vmem:[#allocation4 + $0x50] sm:$0x7f] }
 0x2e5   : > { %1300 = vst [vmem:[#allocation3 + $0x10] sm:$0xff] %v1185_v2  ;;  %v1036_v17 = vpop.f32.mrb[17].mxu1 }
 0x2e6   : > { %1301 = vst [vmem:[#allocation3 + $0x18] sm:$0xff] %v1186_v9  ;;  %v1038_v21 = vpop.f32.mrb[18].mxu1 }
 0x2e7   : > { %v1197_v15 = vpack.c.bf16 %v1038_v21, %v1034_v10  ;;  %v1040_v22 = vpop.f32.mrb[19].mxu1 }
 0x2e8   : > { %v1198_v23 = vpack.c.bf16 %v1040_v22, %v1036_v17  ;;  %v1044_v26 = vpop.f32.mrb[20].mxu1 }
 0x2e9   : > { %1304 = vst [vmem:[#allocation3 + $0x30] sm:$0xff] %v1197_v15  ;;  %v1682_v15 = vsel %vm791_vm0, %v7653_v32, 0 }
 0x2ea   : > { %1305 = vst [vmem:[#allocation3 + $0x38] sm:$0xff] %v1198_v23  ;;  %v1685_v23 = vsel %vm791_vm0, %v7660_v14, 0 }
 0x2ef   : > { %1660 = vrot.lane.b32.xlu1 %v7528_v1, %s7136_s25  ;;  %v7631_v1 = vpop.eup %6863 }
 0x2f0   : > { %6633 = vrot.lane.b32.xlu0 %v7625_v47, %s7136_s25  ;;  %v7634_v27 = vpop.eup %6865 }
 0x2f1   : > { %v7637_v28 = vpop.eup %6867 }
 0x2f2   : > { %v7639_v29 = vpop.eup %6869 }
 0x2f3   : > { %v1515_v30 = vsel %vm1483_vm12, %v7639_v29, 0.0 }
 0x30f   : > { %1511 = vadd.xlane.f32.xlu0 %v7631_v1 }
 0x313   : > { %1509 = vadd.xlane.f32.xlu1 %v7634_v27 }
 0x317   : > { %1513 = vadd.xlane.f32.xlu1 %v7637_v28 }
 0x31b   : > { %1516 = vadd.xlane.f32.xlu1 %v1515_v30  ;;  %v1046_v30 = vpop.f32.mrb[21].mxu1 }
 0x325   : > { %1668 = vrot.lane.b32.xlu0 %v7584_v38, %s7136_s25 }
 0x329   : > { %1670 = vrot.lane.b32.xlu0 %v7584_v38, %s7136_s25 }
 0x32c   : > { %1666 = vrot.lane.b32.xlu1 %v7584_v38, %s7136_s25 }
 0x32d   : > { %1644 = vrot.lane.b32.xlu0 %v6732_v33, %s7136_s25 }
 0x330   : > { %1642 = vrot.lane.b32.xlu1 %v6733_v41, %s7136_s25  ;;  %v1048_v41 = vpop.f32.mrb[22].mxu1 }
 0x331   : > { %v1209_v43 = vpack.c.bf16 %v1048_v41, %v1044_v26  ;;  %v1050_v44 = vpop.f32.mrb[23].mxu1 }
 0x332   : > { %v1210_v48 = vpack.c.bf16 %v1050_v44, %v1046_v30  ;;  %v1150_v49 = vpop.f32.mrb[24].mxu1 }
 0x333   : > { %v1152_v51 = vpop.f32.mrb[25].mxu1 }
 0x334   : > { %1646 = vrot.lane.b32.xlu1 %v6734_v42, %s7136_s25  ;;  %v1314_v42 = vld [vmem:[#allocation3 + $0x50] sm:$0x7f]  ;;  %v1318_v52 = vsel %vm7516_vm10, %v1210_v48, %v1317_v45  ;;  %v1154_v53 = vpop.f32.mrb[26].mxu1 }
 0x335   : > { %v1315_v50 = vsel %vm7516_vm10, %v1209_v43, %v1314_v42  ;;  %1319 = vst [vmem:[#allocation3 + $0x58] sm:$0x7f] %v1318_v52  ;;  %v7667_v54 = vpack.c.bf16 %v1154_v53, %v1150_v49  ;;  %v1156_v55 = vpop.f32.mrb[27].mxu1 }
 0x336   : > { %1316 = vst [vmem:[#allocation3 + $0x50] sm:$0x7f] %v1315_v50  ;;  %v1190_v58 = vpack.c.bf16 %v1156_v55, %v1152_v51  ;;  %v1160_v59 = vpop.f32.mrb[28].mxu1 }
 0x337   : > { %1322 = vst [vmem:[#allocation4 + $0x10] sm:$0xff] %v7667_v54  ;;  %v1162_v61 = vpop.f32.mrb[29].mxu1 }
 0x338   : > { %1323 = vst [vmem:[#allocation4 + $0x18] sm:$0xff] %v1190_v58  ;;  %v1164_v62 = vpop.f32.mrb[30].mxu1 }
 0x339   : > { %v7677_v63 = vpack.c.bf16 %v1164_v62, %v1160_v59  ;;  %v1166_v0 = vpop.f32.mrb[31].mxu1 }
 0x33a   : > { %v1202_v19 = vpack.c.bf16 %v1166_v0, %v1162_v61  ;;  %v1170_v37 = vpop.f32.mrb[32].mxu1 }
 0x33b   : > { %1326 = vst [vmem:[#allocation4 + $0x30] sm:$0xff] %v7677_v63  ;;  %v1172_v2 = vpop.f32.mrb[33].mxu1 }
 0x33c   : > { %1327 = vst [vmem:[#allocation4 + $0x38] sm:$0xff] %v1202_v19 }
 0x367   : > { %v1506_v20 = vpop.xlane.xlu0 %1505 }
 0x368   : > { %6871 = vrcp.f32 %v1506_v20  ;;  %v1337_v20 = vld [vmem:[#allocation4 + $0x58] sm:$0x7f] }
 0x36b   : > { %v1508_v33 = vpop.xlane.xlu1 %1507  ;;  %v6634_v30 = vpop.permute.xlu0 %6633 }
 0x36c   : > { %6873 = vrcp.f32 %v1508_v33  ;;  %v6635_v33 = vunpack.i.l.bf16 %v6634_v30  ;;  %v6636_v41 = vunpack.i.h.bf16 %v6634_v30 }
 0x36e   : > { %v1691_v56 = vsel %vm791_vm0, %v6635_v33, 0  ;;  %v1694_v14 = vsel %vm791_vm0, %v6636_v41, 0 }
 0x36f   : > { %v1661_v32 = vpop.permute.xlu1 %1660 }
 0x370   : > { %v1688_v26 = vsel %vm791_vm0, %v1661_v32, 0 }
 0x372   : > { %v6872_v57 = vpop.eup %6871 }
 0x373   : > { %v1530_v60 = vmul.f32 %v6872_v57, %v7617_v4  ;;  %v1174_v4 = vpop.f32.mrb[34].mxu1 }
 0x374   : > { %v1213_v10 = vpack.c.bf16 %v1174_v4, %v1170_v37  ;;  %v1176_v17 = vpop.f32.mrb[35].mxu1 }
 0x375   : > { %1536 = vst [vmem:[%s7672_s29] sm:$0xff] %v1530_v60  ;;  %v1214_v21 = vpack.c.bf16 %v1176_v17, %v1172_v2 }
 0x376   : > { %v6874_v3 = vpop.eup %6873  ;;  %v1335_v22 = vsel %vm7516_vm10, %v1213_v10, %v1334_v8 }
 0x377   : > { %v1531_v31 = vmul.f32 %v6874_v3, %v7620_v5  ;;  %1336 = vst [vmem:[#allocation4 + $0x50] sm:$0x7f] %v1335_v22  ;;  %v1338_v5 = vsel %vm7516_vm10, %v1214_v21, %v1337_v20  ;;  %v1995_v3 = vld [vmem:[#allocation4 + $0x48] sm:$0xff] }
 0x378   : > { %1339 = vst [vmem:[#allocation4 + $0x58] sm:$0x7f] %v1338_v5 }
 0x379   : > { %1537 = vst [vmem:[%s7672_s29 + $0x8] sm:$0xff] %v1531_v31  ;;  %v1542_v9 = vpack.c.bf16 %v1531_v31, %v1530_v60  ;;  %v2898_v31 = vld [vmem:[#allocation4 + $0x30] sm:$0xff] }
 0x37b   : > { %6204 = vmatmul.mubr.bf16.vlgmr.msra.gmra.mrb[36].mxu1 %v1542_v9 }
 0x37c   : > { %6216 = vmatpush3.bf16.xpose.msra.mxu1 %v1682_v15  ;;  %6207 = vmatprep.mubr.msk.bf16.mxu1 %vm7135_vm1, %v9140_v46 }
 0x37d   : > { %6217 = vmatprep.subr.bf16.mxu1 %v9140_v46 }
 0x384   : > { %6218 = vmatpush3.bf16.xpose.msra.mxu1 %v1685_v23 }
 0x385   : > { %6219 = vmatprep.subr.bf16.mxu1 %v9140_v46 }
 0x38c   : > { %6220 = vmatpush3.bf16.xpose.msra.mxu1 %v1688_v26 }
 0x38d   : > { %6221 = vmatprep.subr.bf16.mxu1 %v9140_v46 }
 0x394   : > { %6222 = vmatpush3.bf16.xpose.msra.mxu1 %v1691_v56 }
 0x395   : > { %6223 = vmatprep.subr.bf16.mxu1 %v9140_v46 }
 0x39c   : > { %6224 = vmatpush3.bf16.xpose.msra.mxu1 %v1694_v14  ;;  %v1512_v42 = vpop.xlane.xlu0 %1511 }
 0x39d   : > { %6875 = vrcp.f32 %v1512_v42  ;;  %6225 = vmatprep.subr.bf16.mxu1 %v9140_v46 }
 0x3a0   : > { %v1510_v43 = vpop.xlane.xlu1 %1509 }
 0x3a1   : > { %6877 = vrcp.f32 %v1510_v43 }
 0x3a4   : > { %v1514_v44 = vpop.xlane.xlu1 %1513 }
 0x3a5   : > { %6879 = vrcp.f32 %v1514_v44 }
 0x3a7   : > { %v6876_v45 = vpop.eup %6875 }
 0x3a8   : > { %v1517_v48 = vpop.xlane.xlu1 %1516  ;;  %v1533_v49 = vmul.f32 %v6876_v45, %v7631_v1  ;;  %v1669_v1 = vpop.permute.xlu0 %1668 }
 0x3a9   : > { %6881 = vrcp.f32 %v1517_v48 }
 0x3aa   : > { %1539 = vst [vmem:[%s7672_s29 + $0x18] sm:$0xff] %v1533_v49 }
 0x3ab   : > { %v6878_v50 = vpop.eup %6877 }
 0x3ac   : > { %v1667_v51 = vpop.permute.xlu1 %1666  ;;  %v1532_v52 = vmul.f32 %v6878_v50, %v7634_v27  ;;  %v1700_v27 = vsel %vm791_vm0, %v1669_v1, 0 }
 0x3ad   : > { %v1697_v53 = vsel %vm791_vm0, %v1667_v51, 0 }
 0x3ae   : > { %6226 = vmatpush3.bf16.xpose.msra.mxu1 %v1697_v53  ;;  %1538 = vst [vmem:[%s7672_s29 + $0x10] sm:$0xff] %v1532_v52  ;;  %v1543_v55 = vpack.c.bf16 %v1533_v49, %v1532_v52 }
 0x3af   : > { %v6880_v57 = vpop.eup %6879  ;;  %6227 = vmatprep.subr.bf16.mxu1 %v9140_v46 }
 0x3b0   : > { %6208 = vmatmul.mubr.bf16.gmra.mrb[40].mxu1 %v1543_v55  ;;  %v1534_v58 = vmul.f32 %v6880_v57, %v7637_v28  ;;  %v1671_v28 = vpop.permute.xlu0 %1670  ;;  %v1643_v0 = vpop.permute.xlu1 %1642 }
 0x3b1   : > { %6211 = vmatprep.mubr.msk.bf16.mxu1 %vm7135_vm1, %v9140_v46  ;;  %v1703_v62 = vsel %vm791_vm0, %v1671_v28, 0 }
 0x3b2   : > { %1540 = vst [vmem:[%s7672_s29 + $0x20] sm:$0xff] %v1534_v58 }
 0x3b3   : > { %v6882_v59 = vpop.eup %6881 }
 0x3b4   : > { %v1535_v60 = vmul.f32 %v6882_v59, %v7639_v29  ;;  %v1645_v29 = vpop.permute.xlu0 %1644 }
 0x3b6   : > { %6228 = vmatpush3.bf16.xpose.msra.mxu1 %v1700_v27  ;;  %1541 = vst [vmem:[%s7672_s29 + $0x28] sm:$0x1f] %v1535_v60  ;;  %v1544_v61 = vpack.c.bf16 %v1535_v60, %v1534_v58 }
 0x3b7   : > { %6229 = vmatprep.subr.bf16.mxu1 %v9140_v46 }
 0x3b8   : > { %6212 = vmatmul.mubr.bf16.gmra.mrb[44].mxu1 %v1544_v61 }
 0x3b9   : > { %6231 = vmatprep.mubr.msk.bf16.mxu1 %vm7135_vm1, %v9140_v46 }
 0x3be   : > { %6230 = vmatpush3.bf16.xpose.msra.mxu1 %v1703_v62 }
 0x3bf   : > { %6299 = vmatprep.subr.bf16.mxu1 %v9140_v46 }
 0x3c5   : > { %6232 = vmatmul.mubr.msk.bf16.vlgmr.msra.gmra.mrb[48].mxu1 %vm791_vm0, %v1643_v0 }
 0x3c6   : > { %6300 = vmatpush3.bf16.msra.mxu1 %v7561_v7  ;;  %6235 = vmatprep.mubr.msk.bf16.mxu1 %vm7135_vm1, %v9140_v46  ;;  %v1647_v7 = vpop.permute.xlu1 %1646 }
 0x3c7   : > { %6301 = vmatprep.subr.bf16.mxu1 %v9140_v46 }
 0x3ca   : > { %6302 = vmatpush3.bf16.msra.mxu1 %v7571_v18 }
 0x3cb   : > { %6303 = vmatprep.subr.bf16.mxu1 %v9140_v46 }
 0x3cd   : > { %6236 = vmatmul.mubr.msk.bf16.gmra.mrb[52].mxu1 %vm791_vm0, %v1645_v29 }
 0x3ce   : > { %6304 = vmatpush3.bf16.msra.mxu1 %v1995_v3  ;;  %6239 = vmatprep.mubr.msk.bf16.mxu1 %vm7135_vm1, %v9140_v46 }
 0x3cf   : > { %6305 = vmatprep.subr.bf16.mxu1 %v9140_v46 }
 0x3d2   : > { %6306 = vmatpush3.bf16.msra.mxu1 %v7584_v38 }
 0x3d3   : > { %6307 = vmatprep.subr.bf16.mxu1 %v9140_v46 }
 0x3d5   : > { %6240 = vmatmul.mubr.msk.bf16.gmra.mrb[56].mxu1 %vm791_vm0, %v1647_v7 }
 0x3d6   : > { %6308 = vmatpush3.bf16.msra.mxu1 %v7584_v38  ;;  %6315 = vmatprep.mubr.msk.bf16.mxu1 %vm7135_vm1, %v9140_v46 }
 0x3d7   : > { %6309 = vmatprep.subr.bf16.mxu1 %v9140_v46 }
 0x3da   : > { %6310 = vmatpush3.bf16.msra.mxu1 %v7584_v38 }
 0x3db   : > { %6311 = vmatprep.subr.bf16.mxu1 %v9140_v46 }
 0x3de   : > { %6312 = vmatpush3.bf16.msra.mxu1 %v7584_v38 }
 0x3df   : > { %6313 = vmatprep.subr.bf16.mxu1 %v9140_v46 }
 0x3e2   : > { %6314 = vmatpush3.bf16.msra.mxu1 %v7584_v38 }
 0x3e3   : > { %6327 = vmatprep.subr.bf16.mxu1 %v9140_v46 }
 0x44e   : > { %v7742_v18 = vpop.f32.mrb[36].mxu1 }
 0x44f   : > { %v6205_v19 = vpop.f32.mrb[37].mxu1 }
 0x450   : > { %v7744_v37 = vpop.f32.mrb[38].mxu1 }
 0x451   : > { %v6206_v2 = vpop.f32.mrb[39].mxu1 }
 0x483   : > { %v7748_v4 = vpop.f32.mrb[40].mxu1 }
 0x484   : > { %v6209_v8 = vpop.f32.mrb[41].mxu1 }
 0x485   : > { %v7750_v9 = vpop.f32.mrb[42].mxu1 }
 0x486   : > { %v6210_v17 = vpop.f32.mrb[43].mxu1 }
 0x48b   : > { %v7754_v20 = vpop.f32.mrb[44].mxu1 }
 0x48c   : > { %v6213_v21 = vpop.f32.mrb[45].mxu1 }
 0x48d   : > { %v7756_v15 = vpop.f32.mrb[46].mxu1 }
 0x48e   : > { %v6214_v5 = vpop.f32.mrb[47].mxu1 }
 0x498   : > { %v1739_v23 = vpop.f32.mrb[48].mxu1 }
 0x499   : > { %v6233_v32 = vpop.f32.mrb[49].mxu1  ;;  %v1762_v26 = vsel %vm481_vm11, %v1739_v23, -1e+09 }
 0x49a   : > { %1768 = vmax.xlane.f32.xlu0 %v1762_v26  ;;  %v1742_v30 = vpop.f32.mrb[50].mxu1 }
 0x49b   : > { %v6234_v33 = vpop.f32.mrb[51].mxu1  ;;  %v1763_v56 = vsel %vm481_vm11, %v1742_v30, -1e+09 }
 0x49c   : > { %1770 = vmax.xlane.f32.xlu1 %v1763_v56 }
 0x4a0   : > { %v1747_v41 = vpop.f32.mrb[52].mxu1 }
 0x4a1   : > { %v6237_v14 = vpop.f32.mrb[53].mxu1  ;;  %v1764_v50 = vsel %vm481_vm11, %v1747_v41, -1e+09 }
 0x4a2   : > { %v1750_v42 = vpop.f32.mrb[54].mxu1 }
 0x4a3   : > { %v6238_v43 = vpop.f32.mrb[55].mxu1  ;;  %v1765_v52 = vsel %vm481_vm11, %v1750_v42, -1e+09 }
 0x4a8   : > { %v1755_v44 = vpop.f32.mrb[56].mxu1 }
 0x4a9   : > { %v6241_v45 = vpop.f32.mrb[57].mxu1  ;;  %v1766_v51 = vsel %vm481_vm11, %v1755_v44, -1e+09 }
 0x4aa   : > { %v1758_v48 = vpop.f32.mrb[58].mxu1 }
 0x4ab   : > { %v6242_v49 = vpop.f32.mrb[59].mxu1  ;;  %v1767_v53 = vsel %vm481_vm11, %v1758_v48, -1e+09 }
 0x4ad   : > { %1850 = vrot.lane.b32.xlu1 %v7567_v16, %s7136_s25  ;;  %v1778_v16 = vsel %vm1483_vm12, %v1767_v53, -inf }
 0x4b0   : > { %1848 = vrot.lane.b32.xlu0 %v7559_v6, %s7136_s25 }
 0x4cf   : > { %1772 = vmax.xlane.f32.xlu0 %v1764_v50 }
 0x4d1   : > { %1776 = vmax.xlane.f32.xlu1 %v1766_v51 }
 0x4d3   : > { %1774 = vmax.xlane.f32.xlu0 %v1765_v52 }
 0x4d7   : > { %1779 = vmax.xlane.f32.xlu0 %v1778_v16  ;;  %v7809_v16 = vld [vmem:[#allocation3 + $0x8] sm:$0xff] }
 0x4e2   : > { %1854 = vrot.lane.b32.xlu1 %v7584_v38, %s7136_s25 }
 0x4e6   : > { %1856 = vrot.lane.b32.xlu1 %v7584_v38, %s7136_s25 }
 0x4ea   : > { %1858 = vrot.lane.b32.xlu1 %v7584_v38, %s7136_s25 }
 0x4ed   : > { %1852 = vrot.lane.b32.xlu0 %v7580_v34, %s7136_s25 }
 0x527   : > { %v1769_v6 = vpop.xlane.xlu0 %1768 }
 0x528   : > { %v1781_v55 = vsub.f32 %v1762_v26, %v1769_v6  ;;  %v2026_v6 = vsel %vm791_vm0, %v7809_v16, 0 }
 0x529   : > { %v1771_v57 = vpop.xlane.xlu1 %1770 }
 0x52a   : > { %v1787_v58 = vmul.f32 1.442695, %v1781_v55  ;;  %v1782_v1 = vsub.f32 %v1763_v56, %v1771_v57  ;;  %v7816_v55 = vld [vmem:[#allocation3 + $0x28] sm:$0xff] }
 0x52b   : > { %v1849_v59 = vpop.permute.xlu0 %1848  ;;  %v2029_v57 = vsel %vm791_vm0, %v7816_v55, 0 }
 0x52c   : > { %6883 = vpow2.f32 %v1787_v58  ;;  %v1789_v27 = vmul.f32 1.442695, %v1782_v1  ;;  %6244 = vmatpush3.bf16.msra.mxu0 %v1849_v59  ;;  %v7821_v58 = vld [vmem:[#allocation3 + $0x48] sm:$0xff]  ;;  %v7828_v59 = vsel %vm791_vm0, %v7584_v38, 0 }
 0x52d   : > { %6245 = vmatprep.subr.bf16.mxu0 %v9140_v46  ;;  %v1851_v60 = vpop.permute.xlu1 %1850  ;;  %v2032_v1 = vsel %vm791_vm0, %v7821_v58, 0 }
 0x52e   : > { %6885 = vpow2.f32 %v1789_v27 }
 0x530   : > { %6246 = vmatpush3.bf16.msra.mxu0 %v1851_v60 }
 0x531   : > { %6247 = vmatprep.subr.bf16.mxu0 %v9140_v46 }
 0x536   : > { %v6884_v61 = vpop.eup %6883 }
 0x537   : > { %1799 = vadd.xlane.f32.xlu1 %v6884_v61 }
 0x538   : > { %v6886_v28 = vpop.eup %6885 }
 0x539   : > { %1801 = vadd.xlane.f32.xlu0 %v6886_v28 }
 0x548   : > { %1862 = vrot.lane.b32.xlu1 %v7584_v38, %s7136_s25 }
 0x54f   : > { %1860 = vrot.lane.b32.xlu0 %v7584_v38, %s7136_s25 }
 0x55c   : > { %v1773_v34 = vpop.xlane.xlu0 %1772 }
 0x55d   : > { %v1783_v62 = vsub.f32 %v1764_v50, %v1773_v34 }
 0x55e   : > { %v1777_v0 = vpop.xlane.xlu1 %1776 }
 0x55f   : > { %v1791_v29 = vmul.f32 1.442695, %v1783_v62  ;;  %v1785_v3 = vsub.f32 %v1766_v51, %v1777_v0 }
 0x560   : > { %v1775_v7 = vpop.xlane.xlu0 %1774 }
 0x561   : > { %v1784_v19 = vsub.f32 %v1765_v52, %v1775_v7  ;;  %6887 = vpow2.f32 %v1791_v29  ;;  %v1795_v2 = vmul.f32 1.442695, %v1785_v3 }
 0x562   : > { %v1855_v5 = vpop.permute.xlu1 %1854 }
 0x563   : > { %v1793_v8 = vmul.f32 1.442695, %v1784_v19 }
 0x564   : > { %v1780_v17 = vpop.xlane.xlu0 %1779 }
 0x565   : > { %6889 = vpow2.f32 %v1793_v8  ;;  %v1786_v21 = vsub.f32 %v1767_v53, %v1780_v17  ;;  %v6735_v17 = vld [vmem:[#allocation2 + $0x4] ss:$16 sps:$4 sm:$0xff]  }
 0x566   : > { %6891 = vpow2.f32 %v1795_v2  ;;  %v1857_v26 = vpop.permute.xlu1 %1856 }
 0x567   : > { %v1797_v23 = vmul.f32 1.442695, %v1786_v21  ;;  %v6736_v21 = vld [vmem:[#allocation2 + $0x24] ss:$16 sps:$4 sm:$0xff]  }
 0x568   : > { %v1853_v32 = vpop.permute.xlu0 %1852 }
 0x569   : > { %6893 = vpow2.f32 %v1797_v23  ;;  %6248 = vmatpush3.bf16.msra.mxu0 %v1853_v32 }
 0x56a   : > { %6249 = vmatprep.subr.bf16.mxu0 %v9140_v46  ;;  %v1859_v41 = vpop.permute.xlu1 %1858 }
 0x56b   : > { %v7792_v30 = vpop.eup %6887 }
 0x56d   : > { %6250 = vmatpush3.bf16.msra.mxu0 %v1855_v5  ;;  %v6737_v5 = vld [vmem:[#allocation2 + $0x44] ss:$16 sps:$4 sm:$0x7f]  }
 0x56e   : > { %1803 = vadd.xlane.f32.xlu0 %v7792_v30  ;;  %6251 = vmatprep.subr.bf16.mxu0 %v9140_v46 }
 0x56f   : > { %v6890_v33 = vpop.eup %6889 }
 0x570   : > { %1805 = vadd.xlane.f32.xlu1 %v6890_v33  ;;  %v7796_v56 = vpop.eup %6891 }
 0x571   : > { %6252 = vmatpush3.bf16.msra.mxu0 %v1857_v26 }
 0x572   : > { %1807 = vadd.xlane.f32.xlu0 %v7796_v56  ;;  %6253 = vmatprep.subr.bf16.mxu0 %v9140_v46 }
 0x573   : > { %v7800_v14 = vpop.eup %6893 }
 0x574   : > { %v1809_v42 = vsel %vm1483_vm12, %v7800_v14, 0.0 }
 0x575   : > { %6254 = vmatpush3.bf16.msra.mxu0 %v1859_v41 }
 0x576   : > { %1810 = vadd.xlane.f32.xlu0 %v1809_v42  ;;  %6255 = vmatprep.subr.bf16.mxu0 %v9140_v46 }
 0x5c4   : > { %v1800_v43 = vpop.xlane.xlu1 %1799 }
 0x5c5   : > { %6895 = vrcp.f32 %v1800_v43 }
 0x5c6   : > { %v1802_v44 = vpop.xlane.xlu0 %1801 }
 0x5c7   : > { %6897 = vrcp.f32 %v1802_v44 }
 0x5c8   : > { %v1863_v48 = vpop.permute.xlu1 %1862 }
 0x5ca   : > { %v1861_v45 = vpop.permute.xlu0 %1860 }
 0x5cb   : > { %6256 = vmatpush3.bf16.msra.mxu0 %v1861_v45 }
 0x5cc   : > { %6257 = vmatprep.subr.bf16.mxu0 %v9140_v46 }
 0x5cf   : > { %v6896_v49 = vpop.eup %6895  ;;  %6258 = vmatpush3.bf16.msra.mxu0 %v1863_v48 }
 0x5d0   : > { %v1824_v50 = vmul.f32 %v6896_v49, %v6884_v61  ;;  %6271 = vmatprep.subr.bf16.mxu0 %v9140_v46 }
 0x5d1   : > { %v6898_v51 = vpop.eup %6897 }
 0x5d2   : > { %5613 = vst [vmem:[%s7672_s29 + $0x30] sm:$0xff] %v1824_v50  ;;  %v1825_v52 = vmul.f32 %v6898_v51, %v6886_v28 }
 0x5d4   : > { %5614 = vst [vmem:[%s7672_s29 + $0x38] sm:$0xff] %v1825_v52  ;;  %v1837_v53 = vpack.c.bf16 %v1825_v52, %v1824_v50 }
 0x5d6   : > { %6260 = vmatmul.mubr.bf16.vlgmr.msra.gmra.mrb[48].mxu0 %v1837_v53 }
 0x5d7   : > { %6263 = vmatprep.mubr.msk.bf16.mxu0 %vm7135_vm1, %v9140_v46 }
 0x5d8   : > { %6272 = vmatpush3.bf16.xpose.msra.mxu0 %v2026_v6 }
 0x5d9   : > { %6273 = vmatprep.subr.bf16.mxu0 %v9140_v46 }
 0x5e0   : > { %6274 = vmatpush3.bf16.xpose.msra.mxu0 %v2029_v57 }
 0x5e1   : > { %6275 = vmatprep.subr.bf16.mxu0 %v9140_v46 }
 0x5e8   : > { %6276 = vmatpush3.bf16.xpose.msra.mxu0 %v2032_v1 }
 0x5e9   : > { %6277 = vmatprep.subr.bf16.mxu0 %v9140_v46 }
 0x5f0   : > { %6278 = vmatpush3.bf16.xpose.msra.mxu0 %v7828_v59 }
 0x5f1   : > { %6279 = vmatprep.subr.bf16.mxu0 %v9140_v46 }
 0x5f8   : > { %6280 = vmatpush3.bf16.xpose.msra.mxu0 %v7828_v59 }
 0x5f9   : > { %6281 = vmatprep.subr.bf16.mxu0 %v9140_v46 }
 0x5fb   : > { %v1804_v27 = vpop.xlane.xlu0 %1803 }
 0x5fc   : > { %6899 = vrcp.f32 %v1804_v27 }
 0x5fd   : > { %v1806_v60 = vpop.xlane.xlu1 %1805 }
 0x5fe   : > { %6901 = vrcp.f32 %v1806_v60 }
 0x5ff   : > { %v1808_v61 = vpop.xlane.xlu0 %1807 }
 0x600   : > { %6903 = vrcp.f32 %v1808_v61  ;;  %6282 = vmatpush3.bf16.xpose.msra.mxu0 %v7828_v59 }
 0x601   : > { %6283 = vmatprep.subr.bf16.mxu0 %v9140_v46 }
 0x603   : > { %v1811_v38 = vpop.xlane.xlu0 %1810 }
 0x604   : > { %6905 = vrcp.f32 %v1811_v38 }
 0x606   : > { %v6900_v28 = vpop.eup %6899 }
 0x607   : > { %v1826_v34 = vmul.f32 %v6900_v28, %v7792_v30 }
 0x608   : > { %v6902_v62 = vpop.eup %6901  ;;  %6284 = vmatpush3.bf16.xpose.msra.mxu0 %v7828_v59 }
 0x609   : > { %v1827_v0 = vmul.f32 %v6902_v62, %v6890_v33  ;;  %5615 = vst [vmem:[%s7672_s29 + $0x40] sm:$0xff] %v1826_v34  ;;  %6285 = vmatprep.subr.bf16.mxu0 %v9140_v46 }
 0x60a   : > { %v6904_v29 = vpop.eup %6903 }
 0x60b   : > { %5616 = vst [vmem:[%s7672_s29 + $0x48] sm:$0xff] %v1827_v0  ;;  %v1838_v3 = vpack.c.bf16 %v1827_v0, %v1826_v34  ;;  %v1828_v7 = vmul.f32 %v6904_v29, %v7796_v56 }
 0x60d   : > { %6264 = vmatmul.mubr.bf16.gmra.mrb[52].mxu0 %v1838_v3  ;;  %5617 = vst [vmem:[%s7672_s29 + $0x50] sm:$0xff] %v1828_v7 }
 0x60e   : > { %v6906_v19 = vpop.eup %6905  ;;  %6267 = vmatprep.mubr.msk.bf16.mxu0 %vm7135_vm1, %v9140_v46 }
 0x60f   : > { %v1829_v2 = vmul.f32 %v6906_v19, %v7800_v14 }
 0x610   : > { %6286 = vmatpush3.bf16.xpose.msra.mxu0 %v7828_v59 }
 0x611   : > { %5618 = vst [vmem:[%s7672_s29 + $0x58] sm:$0x1f] %v1829_v2  ;;  %6355 = vmatprep.subr.bf16.mxu0 %v9140_v46  ;;  %v1839_v8 = vpack.c.bf16 %v1829_v2, %v1828_v7 }
 0x615   : > { %6268 = vmatmul.mubr.bf16.gmra.mrb[56].mxu0 %v1839_v8 }
 0x616   : > { %6287 = vmatprep.mubr.msk.bf16.mxu0 %vm7135_vm1, %v9140_v46 }
 0x61d   : > { %6288 = vmatmul.mubr.msk.bf16.vlgmr.msra.gmra.mrb[60].mxu0 %vm791_vm0, %v6735_v17 }
 0x61e   : > { %6291 = vmatprep.mubr.msk.bf16.mxu0 %vm7135_vm1, %v9140_v46 }
 0x625   : > { %6292 = vmatmul.mubr.msk.bf16.gmra.mrb[64].mxu0 %vm791_vm0, %v6736_v21 }
 0x626   : > { %6295 = vmatprep.mubr.msk.bf16.mxu0 %vm7135_vm1, %v9140_v46 }
 0x62d   : > { %6296 = vmatmul.mubr.msk.bf16.gmra.mrb[68].mxu0 %vm791_vm0, %v6737_v5 }
 0x62e   : > { %6371 = vmatprep.mubr.msk.bf16.mxu0 %vm7135_vm1, %v9140_v46 }
 0x6a9   : > { %v7860_v23 = vpop.f32.mrb[48].mxu0 }
 0x6aa   : > { %v6261_v32 = vpop.f32.mrb[49].mxu0 }
 0x6ab   : > { %v7862_v26 = vpop.f32.mrb[50].mxu0 }
 0x6ac   : > { %v6262_v33 = vpop.f32.mrb[51].mxu0 }
 0x6e0   : > { %v7866_v56 = vpop.f32.mrb[52].mxu0 }
 0x6e1   : > { %v6265_v41 = vpop.f32.mrb[53].mxu0 }
 0x6e2   : > { %v7868_v14 = vpop.f32.mrb[54].mxu0 }
 0x6e3   : > { %v6266_v43 = vpop.f32.mrb[55].mxu0 }
 0x6e8   : > { %v7872_v44 = vpop.f32.mrb[56].mxu0 }
 0x6e9   : > { %v6269_v45 = vpop.f32.mrb[57].mxu0 }
 0x6ea   : > { %v7874_v48 = vpop.f32.mrb[58].mxu0 }
 0x6eb   : > { %v6270_v50 = vpop.f32.mrb[59].mxu0 }
 0x6f0   : > { %v2083_v51 = vpop.f32.mrb[60].mxu0 }
 0x6f1   : > { %v6289_v52 = vpop.f32.mrb[61].mxu0  ;;  %v2106_v53 = vsel %vm481_vm11, %v2083_v51, -1e+09 }
 0x6f2   : > { %2112 = vmax.xlane.f32.xlu0 %v2106_v53  ;;  %v2086_v6 = vpop.f32.mrb[62].mxu0 }
 0x6f3   : > { %v6290_v57 = vpop.f32.mrb[63].mxu0  ;;  %v2107_v1 = vsel %vm481_vm11, %v2086_v6, -1e+09 }
 0x6f4   : > { %2114 = vmax.xlane.f32.xlu1 %v2107_v1 }
 0x6f8   : > { %v2091_v27 = vpop.f32.mrb[64].mxu0 }
 0x6f9   : > { %v6293_v60 = vpop.f32.mrb[65].mxu0  ;;  %v2108_v61 = vsel %vm481_vm11, %v2091_v27, -1e+09 }
 0x6fa   : > { %2116 = vmax.xlane.f32.xlu0 %v2108_v61  ;;  %v2094_v38 = vpop.f32.mrb[66].mxu0 }
 0x6fb   : > { %v6294_v28 = vpop.f32.mrb[67].mxu0  ;;  %v2109_v34 = vsel %vm481_vm11, %v2094_v38, -1e+09 }
 0x6fc   : > { %2118 = vmax.xlane.f32.xlu1 %v2109_v34 }
 0x700   : > { %v2099_v62 = vpop.f32.mrb[68].mxu0 }
 0x701   : > { %v6297_v0 = vpop.f32.mrb[69].mxu0  ;;  %v2110_v29 = vsel %vm481_vm11, %v2099_v62, -1e+09  ;;  %v6738_v62 = vld [vmem:[#allocation2 + $0x24] ss:$16 sps:$4 sm:$0xff]  }
 0x702   : > { %2120 = vmax.xlane.f32.xlu1 %v2110_v29  ;;  %v2102_v3 = vpop.f32.mrb[70].mxu0  ;;  %v6739_v0 = vld [vmem:[#allocation2 + $0x4] ss:$16 sps:$4 sm:$0xff]  }
 0x703   : > { %v2111_v7 = vsel %vm481_vm11, %v2102_v3, -1e+09  ;;  %v6298_v19 = vpop.f32.mrb[71].mxu0 }
 0x704   : > { %v2122_v2 = vsel %vm1483_vm12, %v2111_v7, -inf }
 0x705   : > { %2123 = vmax.xlane.f32.xlu0 %v2122_v2 }
 0x713   : > { %2297 = vrot.lane.b32.xlu1 %v7816_v55, %s7136_s25 }
 0x71b   : > { %2295 = vrot.lane.b32.xlu0 %v7809_v16, %s7136_s25 }
 0x77f   : > { %v2113_v8 = vpop.xlane.xlu0 %2112 }
 0x780   : > { %v2125_v17 = vsub.f32 %v2106_v53, %v2113_v8 }
 0x781   : > { %v2115_v21 = vpop.xlane.xlu1 %2114 }
 0x782   : > { %v2131_v5 = vmul.f32 1.442695, %v2125_v17  ;;  %v2126_v32 = vsub.f32 %v2107_v1, %v2115_v21 }
 0x784   : > { %6907 = vpow2.f32 %v2131_v5  ;;  %v2133_v33 = vmul.f32 1.442695, %v2126_v32 }
 0x786   : > { %6909 = vpow2.f32 %v2133_v33 }
 0x787   : > { %v2117_v16 = vpop.xlane.xlu0 %2116 }
 0x788   : > { %v2127_v50 = vsub.f32 %v2108_v61, %v2117_v16 }
 0x789   : > { %v2119_v55 = vpop.xlane.xlu1 %2118 }
 0x78a   : > { %v2128_v45 = vsub.f32 %v2109_v34, %v2119_v55  ;;  %v2135_v6 = vmul.f32 1.442695, %v2127_v50  ;;  %v7909_v34 = vld [vmem:[#allocation3 + $0x60] sm:$0xff] }
 0x78c   : > { %v2137_v52 = vmul.f32 1.442695, %v2128_v45 }
 0x78e   : > { %v6908_v41 = vpop.eup %6907  ;;  %6911 = vpow2.f32 %v2137_v52 }
 0x78f   : > { %2143 = vadd.xlane.f32.xlu0 %v6908_v41  ;;  %v2121_v51 = vpop.xlane.xlu1 %2120  ;;  %6913 = vpow2.f32 %v2135_v6 }
 0x790   : > { %v6910_v43 = vpop.eup %6909  ;;  %v2129_v57 = vsub.f32 %v2110_v29, %v2121_v51  ;;  %v6740_v29 = vld [vmem:[#allocation2 + $0x44] ss:$16 sps:$4 sm:$0x7f]  }
 0x791   : > { %2145 = vadd.xlane.f32.xlu1 %v6910_v43 }
 0x792   : > { %v2124_v53 = vpop.xlane.xlu0 %2123  ;;  %v2139_v27 = vmul.f32 1.442695, %v2129_v57 }
 0x793   : > { %v2130_v1 = vsub.f32 %v2111_v7, %v2124_v53  ;;  %v2298_v7 = vpop.permute.xlu1 %2297 }
 0x794   : > { %6915 = vpow2.f32 %v2139_v27  ;;  %v2324_v55 = vsel %vm791_vm0, %v2298_v7, 0 }
 0x795   : > { %v2141_v60 = vmul.f32 1.442695, %v2130_v1 }
 0x796   : > { %v2296_v3 = vpop.permute.xlu0 %2295 }
 0x797   : > { %6917 = vpow2.f32 %v2141_v60  ;;  %v2321_v33 = vsel %vm791_vm0, %v2296_v3, 0 }
 0x7a2   : > { %2299 = vrot.lane.b32.xlu1 %v7821_v58, %s7136_s25  ;;  %v6912_v58 = vpop.eup %6911 }
 0x7a3   : > { %v7899_v38 = vpop.eup %6913 }
 0x7a5   : > { %6638 = vrot.lane.b32.xlu0 %v7625_v47, %s7136_s25  ;;  %v7902_v47 = vpop.eup %6915 }
 0x7a6   : > { %v7904_v61 = vpop.eup %6917 }
 0x7a7   : > { %v2153_v28 = vsel %vm1483_vm12, %v7904_v61, 0.0 }
 0x7c4   : > { %2149 = vadd.xlane.f32.xlu0 %v6912_v58 }
 0x7c6   : > { %2147 = vadd.xlane.f32.xlu1 %v7899_v38 }
 0x7ca   : > { %2151 = vadd.xlane.f32.xlu1 %v7902_v47 }
 0x7ce   : > { %2154 = vadd.xlane.f32.xlu1 %v2153_v28 }
 0x7da   : > { %2307 = vrot.lane.b32.xlu0 %v7909_v34, %s7136_s25 }
 0x7de   : > { %2309 = vrot.lane.b32.xlu0 %v7909_v34, %s7136_s25 }
 0x7df   : > { %2305 = vrot.lane.b32.xlu1 %v7909_v34, %s7136_s25 }
 0x7e2   : > { %2283 = vrot.lane.b32.xlu0 %v6738_v62, %s7136_s25 }
 0x7e3   : > { %2281 = vrot.lane.b32.xlu1 %v6739_v0, %s7136_s25 }
 0x7e7   : > { %2285 = vrot.lane.b32.xlu1 %v6740_v29, %s7136_s25 }
 0x81c   : > { %v2144_v19 = vpop.xlane.xlu0 %2143 }
 0x81d   : > { %6919 = vrcp.f32 %v2144_v19 }
 0x81e   : > { %v2146_v2 = vpop.xlane.xlu1 %2145 }
 0x81f   : > { %6921 = vrcp.f32 %v2146_v2 }
 0x827   : > { %v6920_v8 = vpop.eup %6919 }
 0x828   : > { %v2168_v17 = vmul.f32 %v6920_v8, %v6908_v41  ;;  %v2300_v41 = vpop.permute.xlu1 %2299 }
 0x829   : > { %v6922_v21 = vpop.eup %6921  ;;  %v2327_v16 = vsel %vm791_vm0, %v2300_v41, 0 }
 0x82a   : > { %5631 = vst [vmem:[%s7672_s29 + $0x60] sm:$0xff] %v2168_v17  ;;  %v2169_v5 = vmul.f32 %v6922_v21, %v6910_v43  ;;  %v6639_v43 = vpop.permute.xlu0 %6638 }
 0x82b   : > { %v6640_v45 = vunpack.i.l.bf16 %v6639_v43  ;;  %v6641_v51 = vunpack.i.h.bf16 %v6639_v43 }
 0x82c   : > { %5632 = vst [vmem:[%s7672_s29 + $0x68] sm:$0xff] %v2169_v5  ;;  %v2181_v32 = vpack.c.bf16 %v2169_v5, %v2168_v17 }
 0x82d   : > { %v2330_v50 = vsel %vm791_vm0, %v6640_v45, 0  ;;  %v2333_v52 = vsel %vm791_vm0, %v6641_v51, 0 }
 0x82e   : > { %6316 = vmatmul.mubr.bf16.vlgmr.msra.gmra.mrb[60].mxu1 %v2181_v32  ;;  %v7959_v32 = vld [vmem:[#allocation4 + $0x50] sm:$0xff] }
 0x82f   : > { %6328 = vmatpush3.bf16.xpose.msra.mxu1 %v2321_v33  ;;  %6319 = vmatprep.mubr.msk.bf16.mxu1 %vm7135_vm1, %v9140_v46 }
 0x830   : > { %6329 = vmatprep.subr.bf16.mxu1 %v9140_v46 }
 0x837   : > { %6330 = vmatpush3.bf16.xpose.msra.mxu1 %v2324_v55 }
 0x838   : > { %6331 = vmatprep.subr.bf16.mxu1 %v9140_v46 }
 0x83f   : > { %6332 = vmatpush3.bf16.xpose.msra.mxu1 %v2327_v16 }
 0x840   : > { %6333 = vmatprep.subr.bf16.mxu1 %v9140_v46 }
 0x847   : > { %6334 = vmatpush3.bf16.xpose.msra.mxu1 %v2330_v50 }
 0x848   : > { %6335 = vmatprep.subr.bf16.mxu1 %v9140_v46 }
 0x84f   : > { %6336 = vmatpush3.bf16.xpose.msra.mxu1 %v2333_v52 }
 0x850   : > { %6337 = vmatprep.subr.bf16.mxu1 %v9140_v46 }
 0x851   : > { %v2150_v53 = vpop.xlane.xlu0 %2149 }
 0x852   : > { %6923 = vrcp.f32 %v2150_v53 }
 0x853   : > { %v2148_v6 = vpop.xlane.xlu1 %2147 }
 0x854   : > { %6925 = vrcp.f32 %v2148_v6 }
 0x857   : > { %v2152_v57 = vpop.xlane.xlu1 %2151 }
 0x858   : > { %6927 = vrcp.f32 %v2152_v57 }
 0x85b   : > { %v2155_v1 = vpop.xlane.xlu1 %2154 }
 0x85c   : > { %v6924_v27 = vpop.eup %6923  ;;  %6929 = vrcp.f32 %v2155_v1 }
 0x85d   : > { %v2171_v60 = vmul.f32 %v6924_v27, %v6912_v58  ;;  %v2308_v58 = vpop.permute.xlu0 %2307 }
 0x85e   : > { %v6926_v28 = vpop.eup %6925 }
 0x85f   : > { %v2306_v62 = vpop.permute.xlu1 %2305  ;;  %v2170_v0 = vmul.f32 %v6926_v28, %v7899_v38  ;;  %5634 = vst [vmem:[%s7672_s29 + $0x78] sm:$0xff] %v2171_v60  ;;  %v2339_v38 = vsel %vm791_vm0, %v2308_v58, 0 }
 0x860   : > { %v2336_v29 = vsel %vm791_vm0, %v2306_v62, 0 }
 0x861   : > { %6338 = vmatpush3.bf16.xpose.msra.mxu1 %v2336_v29  ;;  %5633 = vst [vmem:[%s7672_s29 + $0x70] sm:$0xff] %v2170_v0  ;;  %v2182_v3 = vpack.c.bf16 %v2171_v60, %v2170_v0 }
 0x862   : > { %v6928_v7 = vpop.eup %6927  ;;  %6339 = vmatprep.subr.bf16.mxu1 %v9140_v46 }
 0x863   : > { %6320 = vmatmul.mubr.bf16.gmra.mrb[64].mxu1 %v2182_v3  ;;  %v2172_v19 = vmul.f32 %v6928_v7, %v7902_v47  ;;  %v2310_v47 = vpop.permute.xlu0 %2309  ;;  %v2282_v5 = vpop.permute.xlu1 %2281 }
 0x864   : > { %6323 = vmatprep.mubr.msk.bf16.mxu1 %vm7135_vm1, %v9140_v46  ;;  %v2342_v21 = vsel %vm791_vm0, %v2310_v47, 0 }
 0x865   : > { %5635 = vst [vmem:[%s7672_s29 + $0x80] sm:$0xff] %v2172_v19 }
 0x866   : > { %v6930_v2 = vpop.eup %6929 }
 0x867   : > { %v2173_v8 = vmul.f32 %v6930_v2, %v7904_v61  ;;  %v2284_v61 = vpop.permute.xlu0 %2283 }
 0x869   : > { %6340 = vmatpush3.bf16.xpose.msra.mxu1 %v2339_v38  ;;  %5636 = vst [vmem:[%s7672_s29 + $0x88] sm:$0x1f] %v2173_v8  ;;  %v2183_v17 = vpack.c.bf16 %v2173_v8, %v2172_v19 }
 0x86a   : > { %6341 = vmatprep.subr.bf16.mxu1 %v9140_v46 }
 0x86b   : > { %6324 = vmatmul.mubr.bf16.gmra.mrb[68].mxu1 %v2183_v17 }
 0x86c   : > { %6343 = vmatprep.mubr.msk.bf16.mxu1 %vm7135_vm1, %v9140_v46 }
 0x871   : > { %6342 = vmatpush3.bf16.xpose.msra.mxu1 %v2342_v21  ;;  %v2259_v21 = vld [vmem:[#allocation4 + $0x28] sm:$0xff] }
 0x872   : > { %6411 = vmatprep.subr.bf16.mxu1 %v9140_v46 }
 0x878   : > { %6344 = vmatmul.mubr.msk.bf16.vlgmr.msra.gmra.mrb[72].mxu1 %vm791_vm0, %v2282_v5  ;;  %v2258_v5 = vld [vmem:[#allocation4 + $0x8] sm:$0xff] }
 0x879   : > { %6412 = vmatpush3.bf16.msra.mxu1 %v7667_v54  ;;  %6347 = vmatprep.mubr.msk.bf16.mxu1 %vm7135_vm1, %v9140_v46  ;;  %v2286_v54 = vpop.permute.xlu1 %2285 }
 0x87a   : > { %6413 = vmatprep.subr.bf16.mxu1 %v9140_v46 }
 0x87d   : > { %6414 = vmatpush3.bf16.msra.mxu1 %v7677_v63 }
 0x87e   : > { %6415 = vmatprep.subr.bf16.mxu1 %v9140_v46 }
 0x880   : > { %6348 = vmatmul.mubr.msk.bf16.gmra.mrb[76].mxu1 %vm791_vm0, %v2284_v61 }
 0x881   : > { %6416 = vmatpush3.bf16.msra.mxu1 %v7959_v32  ;;  %6351 = vmatprep.mubr.msk.bf16.mxu1 %vm7135_vm1, %v9140_v46 }
 0x882   : > { %6417 = vmatprep.subr.bf16.mxu1 %v9140_v46 }
 0x885   : > { %6418 = vmatpush3.bf16.msra.mxu1 %v7909_v34 }
 0x886   : > { %6419 = vmatprep.subr.bf16.mxu1 %v9140_v46 }
 0x888   : > { %6352 = vmatmul.mubr.msk.bf16.gmra.mrb[80].mxu1 %vm791_vm0, %v2286_v54 }
 0x889   : > { %6420 = vmatpush3.bf16.msra.mxu1 %v7909_v34  ;;  %6427 = vmatprep.mubr.msk.bf16.mxu1 %vm7135_vm1, %v9140_v46 }
 0x88a   : > { %6421 = vmatprep.subr.bf16.mxu1 %v9140_v46 }
 0x88d   : > { %6422 = vmatpush3.bf16.msra.mxu1 %v7909_v34 }
 0x88e   : > { %6423 = vmatprep.subr.bf16.mxu1 %v9140_v46 }
 0x891   : > { %6424 = vmatpush3.bf16.msra.mxu1 %v7909_v34 }
 0x892   : > { %6425 = vmatprep.subr.bf16.mxu1 %v9140_v46 }
 0x895   : > { %6426 = vmatpush3.bf16.msra.mxu1 %v7909_v34 }
 0x896   : > { %6439 = vmatprep.subr.bf16.mxu1 %v9140_v46 }
 0x901   : > { %v7978_v63 = vpop.f32.mrb[60].mxu1 }
 0x902   : > { %v6317_v33 = vpop.f32.mrb[61].mxu1 }
 0x903   : > { %v7980_v55 = vpop.f32.mrb[62].mxu1 }
 0x904   : > { %v6318_v16 = vpop.f32.mrb[63].mxu1 }
 0x936   : > { %v7984_v43 = vpop.f32.mrb[64].mxu1 }
 0x937   : > { %v6321_v45 = vpop.f32.mrb[65].mxu1 }
 0x938   : > { %v7986_v50 = vpop.f32.mrb[66].mxu1 }
 0x939   : > { %v6322_v52 = vpop.f32.mrb[67].mxu1 }
 0x93a   : > { %v2260_v52 = vld [vmem:[#allocation4 + $0x48] sm:$0xff] }
 0x93e   : > { %v7990_v53 = vpop.f32.mrb[68].mxu1 }
 0x93f   : > { %9164 = vst [vmem:[#allocation15_spill] sm:$0xff] %v7990_v53  ;;  %v6325_v6 = vpop.f32.mrb[69].mxu1 }
 0x940   : > { %v7992_v57 = vpop.f32.mrb[70].mxu1 }
 0x941   : > { %v6326_v27 = vpop.f32.mrb[71].mxu1 }
 0x94b   : > { %v2378_v60 = vpop.f32.mrb[72].mxu1 }
 0x94c   : > { %v6345_v28 = vpop.f32.mrb[73].mxu1  ;;  %v2401_v62 = vsel %vm481_vm11, %v2378_v60, -1e+09 }
 0x94d   : > { %2407 = vmax.xlane.f32.xlu0 %v2401_v62  ;;  %v2381_v0 = vpop.f32.mrb[74].mxu1 }
 0x94e   : > { %v6346_v29 = vpop.f32.mrb[75].mxu1  ;;  %v2402_v3 = vsel %vm481_vm11, %v2381_v0, -1e+09 }
 0x94f   : > { %2409 = vmax.xlane.f32.xlu1 %v2402_v3 }
 0x953   : > { %v2386_v7 = vpop.f32.mrb[76].mxu1 }
 0x954   : > { %v6349_v19 = vpop.f32.mrb[77].mxu1  ;;  %v2403_v61 = vsel %vm481_vm11, %v2386_v7, -1e+09 }
 0x955   : > { %v2389_v58 = vpop.f32.mrb[78].mxu1 }
 0x956   : > { %v6350_v2 = vpop.f32.mrb[79].mxu1  ;;  %v2404_v33 = vsel %vm481_vm11, %v2389_v58, -1e+09 }
 0x95b   : > { %v2394_v38 = vpop.f32.mrb[80].mxu1 }
 0x95c   : > { %v6353_v8 = vpop.f32.mrb[81].mxu1  ;;  %v2405_v54 = vsel %vm481_vm11, %v2394_v38, -1e+09 }
 0x95d   : > { %v2397_v17 = vpop.f32.mrb[82].mxu1 }
 0x95e   : > { %v6354_v47 = vpop.f32.mrb[83].mxu1  ;;  %v2406_v16 = vsel %vm481_vm11, %v2397_v17, -1e+09 }
 0x95f   : > { %v2417_v45 = vsel %vm1483_vm12, %v2406_v16, -inf }
 0x960   : > { %2489 = vrot.lane.b32.xlu1 %v2259_v21, %s7136_s25 }
 0x963   : > { %2487 = vrot.lane.b32.xlu0 %v2258_v5, %s7136_s25 }
 0x982   : > { %2411 = vmax.xlane.f32.xlu0 %v2403_v61 }
 0x984   : > { %2415 = vmax.xlane.f32.xlu1 %v2405_v54 }
 0x986   : > { %2413 = vmax.xlane.f32.xlu0 %v2404_v33 }
 0x98a   : > { %2418 = vmax.xlane.f32.xlu0 %v2417_v45 }
 0x995   : > { %2493 = vrot.lane.b32.xlu1 %v7909_v34, %s7136_s25 }
 0x999   : > { %2495 = vrot.lane.b32.xlu1 %v7909_v34, %s7136_s25 }
 0x99d   : > { %2497 = vrot.lane.b32.xlu1 %v7909_v34, %s7136_s25 }
 0x9a0   : > { %2491 = vrot.lane.b32.xlu0 %v2260_v52, %s7136_s25 }
 0x9da   : > { %v2408_v6 = vpop.xlane.xlu0 %2407 }
 0x9db   : > { %v2420_v27 = vsub.f32 %v2401_v62, %v2408_v6 }
 0x9dc   : > { %v2410_v60 = vpop.xlane.xlu1 %2409 }
 0x9dd   : > { %v2426_v28 = vmul.f32 1.442695, %v2420_v27  ;;  %v2421_v0 = vsub.f32 %v2402_v3, %v2410_v60 }
 0x9de   : > { %v2488_v29 = vpop.permute.xlu0 %2487 }
 0x9df   : > { %6931 = vpow2.f32 %v2426_v28  ;;  %v2428_v7 = vmul.f32 1.442695, %v2421_v0  ;;  %6356 = vmatpush3.bf16.msra.mxu0 %v2488_v29 }
 0x9e0   : > { %6357 = vmatprep.subr.bf16.mxu0 %v9140_v46  ;;  %v2490_v19 = vpop.permute.xlu1 %2489 }
 0x9e1   : > { %6933 = vpow2.f32 %v2428_v7 }
 0x9e3   : > { %6358 = vmatpush3.bf16.msra.mxu0 %v2490_v19 }
 0x9e4   : > { %6359 = vmatprep.subr.bf16.mxu0 %v9140_v46 }
 0x9e9   : > { %v6932_v58 = vpop.eup %6931 }
 0x9ea   : > { %2438 = vadd.xlane.f32.xlu1 %v6932_v58 }
 0x9eb   : > { %v6934_v2 = vpop.eup %6933 }
 0x9ec   : > { %2440 = vadd.xlane.f32.xlu0 %v6934_v2 }
 0x9fb   : > { %2501 = vrot.lane.b32.xlu1 %v7909_v34, %s7136_s25 }
 0xa02   : > { %2499 = vrot.lane.b32.xlu0 %v7909_v34, %s7136_s25 }
 0xa0f   : > { %v2412_v62 = vpop.xlane.xlu0 %2411 }
 0xa10   : > { %v2422_v3 = vsub.f32 %v2403_v61, %v2412_v62 }
 0xa11   : > { %v2416_v38 = vpop.xlane.xlu1 %2415 }
 0xa12   : > { %v2430_v8 = vmul.f32 1.442695, %v2422_v3  ;;  %v2424_v17 = vsub.f32 %v2405_v54, %v2416_v38 }
 0xa13   : > { %v2414_v47 = vpop.xlane.xlu0 %2413 }
 0xa14   : > { %v2423_v21 = vsub.f32 %v2404_v33, %v2414_v47  ;;  %6935 = vpow2.f32 %v2430_v8  ;;  %v2434_v5 = vmul.f32 1.442695, %v2424_v17 }
 0xa15   : > { %v2494_v27 = vpop.permute.xlu1 %2493 }
 0xa16   : > { %v2432_v45 = vmul.f32 1.442695, %v2423_v21 }
 0xa17   : > { %v2419_v52 = vpop.xlane.xlu0 %2418 }
 0xa18   : > { %6937 = vpow2.f32 %v2432_v45  ;;  %v2425_v6 = vsub.f32 %v2406_v16, %v2419_v52  ;;  %v8039_v45 = vld [vmem:[#allocation3 + $0x10] sm:$0xff] }
 0xa19   : > { %6939 = vpow2.f32 %v2434_v5  ;;  %v2496_v61 = vpop.permute.xlu1 %2495  ;;  %v2665_v52 = vsel %vm791_vm0, %v8039_v45, 0 }
 0xa1a   : > { %v2436_v60 = vmul.f32 1.442695, %v2425_v6 }
 0xa1b   : > { %v2492_v28 = vpop.permute.xlu0 %2491 }
 0xa1c   : > { %6941 = vpow2.f32 %v2436_v60  ;;  %6360 = vmatpush3.bf16.msra.mxu0 %v2492_v28 }
 0xa1d   : > { %6361 = vmatprep.subr.bf16.mxu0 %v9140_v46  ;;  %v2498_v16 = vpop.permute.xlu1 %2497 }
 0xa1e   : > { %v6936_v0 = vpop.eup %6935 }
 0xa20   : > { %6362 = vmatpush3.bf16.msra.mxu0 %v2494_v27 }
 0xa21   : > { %2442 = vadd.xlane.f32.xlu0 %v6936_v0  ;;  %6363 = vmatprep.subr.bf16.mxu0 %v9140_v46 }
 0xa22   : > { %v6938_v54 = vpop.eup %6937 }
 0xa23   : > { %2444 = vadd.xlane.f32.xlu1 %v6938_v54  ;;  %v8026_v33 = vpop.eup %6939 }
 0xa24   : > { %6364 = vmatpush3.bf16.msra.mxu0 %v2496_v61 }
 0xa25   : > { %2446 = vadd.xlane.f32.xlu0 %v8026_v33  ;;  %6365 = vmatprep.subr.bf16.mxu0 %v9140_v46 }
 0xa26   : > { %v8030_v29 = vpop.eup %6941 }
 0xa27   : > { %v2448_v7 = vsel %vm1483_vm12, %v8030_v29, 0.0 }
 0xa28   : > { %6366 = vmatpush3.bf16.msra.mxu0 %v2498_v16 }
 0xa29   : > { %2449 = vadd.xlane.f32.xlu0 %v2448_v7  ;;  %6367 = vmatprep.subr.bf16.mxu0 %v9140_v46 }
 0xa77   : > { %v2439_v19 = vpop.xlane.xlu1 %2438 }
 0xa78   : > { %6943 = vrcp.f32 %v2439_v19 }
 0xa79   : > { %v2441_v62 = vpop.xlane.xlu0 %2440 }
 0xa7a   : > { %6945 = vrcp.f32 %v2441_v62 }
 0xa7b   : > { %v2502_v38 = vpop.permute.xlu1 %2501 }
 0xa7d   : > { %v2500_v3 = vpop.permute.xlu0 %2499 }
 0xa7e   : > { %6368 = vmatpush3.bf16.msra.mxu0 %v2500_v3 }
 0xa7f   : > { %6369 = vmatprep.subr.bf16.mxu0 %v9140_v46 }
 0xa82   : > { %v6944_v8 = vpop.eup %6943  ;;  %6370 = vmatpush3.bf16.msra.mxu0 %v2502_v38 }
 0xa83   : > { %v2463_v17 = vmul.f32 %v6944_v8, %v6932_v58  ;;  %6383 = vmatprep.subr.bf16.mxu0 %v9140_v46  ;;  %v8046_v58 = vld [vmem:[#allocation3 + $0x30] sm:$0xff] }
 0xa84   : > { %v6946_v47 = vpop.eup %6945  ;;  %v2668_v6 = vsel %vm791_vm0, %v8046_v58, 0 }
 0xa85   : > { %5643 = vst [vmem:[%s7672_s29 + $0x90] sm:$0xff] %v2463_v17  ;;  %v2464_v21 = vmul.f32 %v6946_v47, %v6934_v2  ;;  %v8051_v2 = vld [vmem:[#allocation3 + $0x50] sm:$0xff] }
 0xa86   : > { %v2671_v27 = vsel %vm791_vm0, %v8051_v2, 0 }
 0xa87   : > { %5644 = vst [vmem:[%s7672_s29 + $0x98] sm:$0xff] %v2464_v21  ;;  %v2476_v5 = vpack.c.bf16 %v2464_v21, %v2463_v17  ;;  %v6741_v21 = vld [vmem:[#allocation2 + $0x8] ss:$16 sps:$4 sm:$0xff]  }
 0xa89   : > { %6372 = vmatmul.mubr.bf16.vlgmr.msra.gmra.mrb[72].mxu0 %v2476_v5 }
 0xa8a   : > { %6375 = vmatprep.mubr.msk.bf16.mxu0 %vm7135_vm1, %v9140_v46 }
 0xa8b   : > { %6384 = vmatpush3.bf16.xpose.msra.mxu0 %v2665_v52 }
 0xa8c   : > { %6385 = vmatprep.subr.bf16.mxu0 %v9140_v46 }
 0xa93   : > { %6386 = vmatpush3.bf16.xpose.msra.mxu0 %v2668_v6 }
 0xa94   : > { %6387 = vmatprep.subr.bf16.mxu0 %v9140_v46 }
 0xa9b   : > { %6388 = vmatpush3.bf16.xpose.msra.mxu0 %v2671_v27 }
 0xa9c   : > { %6389 = vmatprep.subr.bf16.mxu0 %v9140_v46 }
 0xaa3   : > { %6390 = vmatpush3.bf16.xpose.msra.mxu0 %v7828_v59 }
 0xaa4   : > { %6391 = vmatprep.subr.bf16.mxu0 %v9140_v46 }
 0xaab   : > { %6392 = vmatpush3.bf16.xpose.msra.mxu0 %v7828_v59 }
 0xaac   : > { %6393 = vmatprep.subr.bf16.mxu0 %v9140_v46 }
 0xaae   : > { %v2443_v60 = vpop.xlane.xlu0 %2442 }
 0xaaf   : > { %6947 = vrcp.f32 %v2443_v60 }
 0xab0   : > { %v2445_v28 = vpop.xlane.xlu1 %2444 }
 0xab1   : > { %6949 = vrcp.f32 %v2445_v28 }
 0xab2   : > { %v2447_v61 = vpop.xlane.xlu0 %2446 }
 0xab3   : > { %6951 = vrcp.f32 %v2447_v61  ;;  %6394 = vmatpush3.bf16.xpose.msra.mxu0 %v7828_v59 }
 0xab4   : > { %6395 = vmatprep.subr.bf16.mxu0 %v9140_v46 }
 0xab6   : > { %v2450_v16 = vpop.xlane.xlu0 %2449 }
 0xab7   : > { %6953 = vrcp.f32 %v2450_v16 }
 0xab9   : > { %v6948_v7 = vpop.eup %6947 }
 0xaba   : > { %v2465_v19 = vmul.f32 %v6948_v7, %v6936_v0 }
 0xabb   : > { %v6950_v62 = vpop.eup %6949  ;;  %6396 = vmatpush3.bf16.xpose.msra.mxu0 %v7828_v59 }
 0xabc   : > { %v2466_v3 = vmul.f32 %v6950_v62, %v6938_v54  ;;  %5645 = vst [vmem:[%s7672_s29 + $0xa0] sm:$0xff] %v2465_v19  ;;  %6397 = vmatprep.subr.bf16.mxu0 %v9140_v46 }
 0xabd   : > { %v6952_v38 = vpop.eup %6951 }
 0xabe   : > { %5646 = vst [vmem:[%s7672_s29 + $0xa8] sm:$0xff] %v2466_v3  ;;  %v2477_v8 = vpack.c.bf16 %v2466_v3, %v2465_v19  ;;  %v2467_v17 = vmul.f32 %v6952_v38, %v8026_v33  ;;  %v6742_v33 = vld [vmem:[#allocation2 + $0x28] ss:$16 sps:$4 sm:$0xff]  }
 0xac0   : > { %6376 = vmatmul.mubr.bf16.gmra.mrb[76].mxu0 %v2477_v8  ;;  %5647 = vst [vmem:[%s7672_s29 + $0xb0] sm:$0xff] %v2467_v17 }
 0xac1   : > { %v6954_v47 = vpop.eup %6953  ;;  %6379 = vmatprep.mubr.msk.bf16.mxu0 %vm7135_vm1, %v9140_v46 }
 0xac2   : > { %v2468_v0 = vmul.f32 %v6954_v47, %v8030_v29 }
 0xac3   : > { %6398 = vmatpush3.bf16.xpose.msra.mxu0 %v7828_v59  ;;  %v6743_v59 = vld [vmem:[#allocation2 + $0x48] ss:$16 sps:$4 sm:$0x7f]  }
 0xac4   : > { %5648 = vst [vmem:[%s7672_s29 + $0xb8] sm:$0x1f] %v2468_v0  ;;  %6467 = vmatprep.subr.bf16.mxu0 %v9140_v46  ;;  %v2478_v54 = vpack.c.bf16 %v2468_v0, %v2467_v17 }
 0xac8   : > { %6380 = vmatmul.mubr.bf16.gmra.mrb[80].mxu0 %v2478_v54 }
 0xac9   : > { %6399 = vmatprep.mubr.msk.bf16.mxu0 %vm7135_vm1, %v9140_v46 }
 0xad0   : > { %6400 = vmatmul.mubr.msk.bf16.vlgmr.msra.gmra.mrb[84].mxu0 %vm791_vm0, %v6741_v21 }
 0xad1   : > { %6403 = vmatprep.mubr.msk.bf16.mxu0 %vm7135_vm1, %v9140_v46 }
 0xad8   : > { %6404 = vmatmul.mubr.msk.bf16.gmra.mrb[88].mxu0 %vm791_vm0, %v6742_v33 }
 0xad9   : > { %6407 = vmatprep.mubr.msk.bf16.mxu0 %vm7135_vm1, %v9140_v46 }
 0xae0   : > { %6408 = vmatmul.mubr.msk.bf16.gmra.mrb[92].mxu0 %vm791_vm0, %v6743_v59 }
 0xae1   : > { %6483 = vmatprep.mubr.msk.bf16.mxu0 %vm7135_vm1, %v9140_v46 }
 0xb5c   : > { %v8085_v29 = vpop.f32.mrb[72].mxu0 }
 0xb5d   : > { %v6373_v5 = vpop.f32.mrb[73].mxu0 }
 0xb5e   : > { %v8087_v52 = vpop.f32.mrb[74].mxu0 }
 0xb5f   : > { %v6374_v27 = vpop.f32.mrb[75].mxu0 }
 0xb93   : > { %v8091_v60 = vpop.f32.mrb[76].mxu0 }
 0xb94   : > { %v6377_v28 = vpop.f32.mrb[77].mxu0 }
 0xb95   : > { %v8093_v61 = vpop.f32.mrb[78].mxu0 }
 0xb96   : > { %v6378_v7 = vpop.f32.mrb[79].mxu0 }
 0xb9b   : > { %v8097_v19 = vpop.f32.mrb[80].mxu0 }
 0xb9c   : > { %v6381_v62 = vpop.f32.mrb[81].mxu0 }
 0xb9d   : > { %v8099_v3 = vpop.f32.mrb[82].mxu0 }
 0xb9e   : > { %v6382_v8 = vpop.f32.mrb[83].mxu0 }
 0xba3   : > { %v2722_v17 = vpop.f32.mrb[84].mxu0 }
 0xba4   : > { %v6401_v47 = vpop.f32.mrb[85].mxu0  ;;  %v2745_v0 = vsel %vm481_vm11, %v2722_v17, -1e+09 }
 0xba5   : > { %2751 = vmax.xlane.f32.xlu0 %v2745_v0  ;;  %v2725_v54 = vpop.f32.mrb[86].mxu0 }
 0xba6   : > { %v6402_v21 = vpop.f32.mrb[87].mxu0  ;;  %v2746_v33 = vsel %vm481_vm11, %v2725_v54, -1e+09 }
 0xba7   : > { %2753 = vmax.xlane.f32.xlu1 %v2746_v33 }
 0xbab   : > { %v2730_v59 = vpop.f32.mrb[88].mxu0 }
 0xbac   : > { %v6405_v5 = vpop.f32.mrb[89].mxu0  ;;  %v2747_v27 = vsel %vm481_vm11, %v2730_v59, -1e+09 }
 0xbad   : > { %2755 = vmax.xlane.f32.xlu0 %v2747_v27  ;;  %v2733_v28 = vpop.f32.mrb[90].mxu0 }
 0xbae   : > { %v6406_v7 = vpop.f32.mrb[91].mxu0  ;;  %v2748_v62 = vsel %vm481_vm11, %v2733_v28, -1e+09 }
 0xbaf   : > { %2757 = vmax.xlane.f32.xlu1 %v2748_v62 }
 0xbb3   : > { %v2738_v8 = vpop.f32.mrb[92].mxu0 }
 0xbb4   : > { %v6409_v17 = vpop.f32.mrb[93].mxu0  ;;  %v2749_v47 = vsel %vm481_vm11, %v2738_v8, -1e+09 }
 0xbb5   : > { %2759 = vmax.xlane.f32.xlu1 %v2749_v47  ;;  %v2741_v54 = vpop.f32.mrb[94].mxu0 }
 0xbb6   : > { %v2750_v21 = vsel %vm481_vm11, %v2741_v54, -1e+09  ;;  %v6410_v5 = vpop.f32.mrb[95].mxu0 }
 0xbb7   : > { %v2761_v59 = vsel %vm1483_vm12, %v2750_v21, -inf  ;;  %v8122_v5 = vpack.i.bf16 %v7909_v34, %v7909_v34 }
 0xbb8   : > { %2762 = vmax.xlane.f32.xlu0 %v2761_v59 }
 0xbc6   : > { %2936 = vrot.lane.b32.xlu1 %v8046_v58, %s7136_s25 }
 0xbce   : > { %2934 = vrot.lane.b32.xlu0 %v8039_v45, %s7136_s25 }
 0xc32   : > { %v2752_v28 = vpop.xlane.xlu0 %2751 }
 0xc33   : > { %v2764_v7 = vsub.f32 %v2745_v0, %v2752_v28 }
 0xc34   : > { %v2754_v17 = vpop.xlane.xlu1 %2753 }
 0xc35   : > { %v2770_v39 = vmul.f32 1.442695, %v2764_v7  ;;  %v2765_v8 = vsub.f32 %v2746_v33, %v2754_v17 }
 0xc37   : > { %6955 = vpow2.f32 %v2770_v39  ;;  %v2772_v1 = vmul.f32 1.442695, %v2765_v8 }
 0xc39   : > { %6957 = vpow2.f32 %v2772_v1 }
 0xc3a   : > { %v2756_v58 = vpop.xlane.xlu0 %2755 }
 0xc3b   : > { %v2766_v39 = vsub.f32 %v2747_v27, %v2756_v58 }
 0xc3c   : > { %v2758_v45 = vpop.xlane.xlu1 %2757 }
 0xc3d   : > { %v2767_v0 = vsub.f32 %v2748_v62, %v2758_v45  ;;  %v2774_v28 = vmul.f32 1.442695, %v2766_v39 }
 0xc3f   : > { %v2776_v1 = vmul.f32 1.442695, %v2767_v0 }
 0xc41   : > { %v6956_v51 = vpop.eup %6955  ;;  %6959 = vpow2.f32 %v2776_v1 }
 0xc42   : > { %2782 = vadd.xlane.f32.xlu0 %v6956_v51  ;;  %v2760_v33 = vpop.xlane.xlu1 %2759  ;;  %6961 = vpow2.f32 %v2774_v28 }
 0xc43   : > { %v6958_v54 = vpop.eup %6957  ;;  %v2768_v7 = vsub.f32 %v2749_v47, %v2760_v33  ;;  %v6745_v47 = vld [vmem:[#allocation2 + $0x8] ss:$16 sps:$4 sm:$0xff]  }
 0xc44   : > { %2784 = vadd.xlane.f32.xlu1 %v6958_v54 }
 0xc45   : > { %v2763_v59 = vpop.xlane.xlu0 %2762  ;;  %v2778_v8 = vmul.f32 1.442695, %v2768_v7 }
 0xc46   : > { %v2769_v17 = vsub.f32 %v2750_v21, %v2763_v59  ;;  %v6746_v21 = vld [vmem:[#allocation2 + $0x48] ss:$16 sps:$4 sm:$0x7f]   ;;  %v2937_v58 = vpop.permute.xlu1 %2936 }
 0xc47   : > { %6963 = vpow2.f32 %v2778_v8  ;;  %v2963_v8 = vsel %vm791_vm0, %v2937_v58, 0 }
 0xc48   : > { %v2780_v38 = vmul.f32 1.442695, %v2769_v17 }
 0xc49   : > { %v2935_v45 = vpop.permute.xlu0 %2934 }
 0xc4a   : > { %6965 = vpow2.f32 %v2780_v38  ;;  %v6744_v38 = vld [vmem:[#allocation2 + $0x28] ss:$16 sps:$4 sm:$0xff]   ;;  %v2960_v17 = vsel %vm791_vm0, %v2935_v45, 0 }
 0xc55   : > { %2938 = vrot.lane.b32.xlu1 %v8051_v2, %s7136_s25  ;;  %v6960_v2 = vpop.eup %6959 }
 0xc56   : > { %v6962_v16 = vpop.eup %6961 }
 0xc57   : > { %v8128_v22 = vpop.eup %6963 }
 0xc58   : > { %6643 = vrot.lane.b32.xlu0 %v8122_v5, %s7136_s25  ;;  %v8130_v62 = vpop.eup %6965 }
 0xc59   : > { %v2792_v27 = vsel %vm1483_vm12, %v8130_v62, 0.0 }
 0xc77   : > { %2788 = vadd.xlane.f32.xlu0 %v6960_v2 }
 0xc79   : > { %2786 = vadd.xlane.f32.xlu1 %v6962_v16 }
 0xc7d   : > { %2790 = vadd.xlane.f32.xlu1 %v8128_v22 }
 0xc81   : > { %2793 = vadd.xlane.f32.xlu1 %v2792_v27 }
 0xc8d   : > { %2946 = vrot.lane.b32.xlu0 %v7909_v34, %s7136_s25 }
 0xc91   : > { %2948 = vrot.lane.b32.xlu0 %v7909_v34, %s7136_s25 }
 0xc92   : > { %2944 = vrot.lane.b32.xlu1 %v7909_v34, %s7136_s25 }
 0xc95   : > { %2922 = vrot.lane.b32.xlu0 %v6744_v38, %s7136_s25 }
 0xc96   : > { %2920 = vrot.lane.b32.xlu1 %v6745_v47, %s7136_s25 }
 0xc9a   : > { %2924 = vrot.lane.b32.xlu1 %v6746_v21, %s7136_s25 }
 0xccf   : > { %v2783_v0 = vpop.xlane.xlu0 %2782 }
 0xcd0   : > { %6967 = vrcp.f32 %v2783_v0 }
 0xcd1   : > { %v2785_v39 = vpop.xlane.xlu1 %2784 }
 0xcd2   : > { %6969 = vrcp.f32 %v2785_v39 }
 0xcda   : > { %v6968_v33 = vpop.eup %6967 }
 0xcdb   : > { %v2807_v1 = vmul.f32 %v6968_v33, %v6956_v51  ;;  %v2939_v51 = vpop.permute.xlu1 %2938 }
 0xcdc   : > { %v6970_v59 = vpop.eup %6969  ;;  %v2966_v27 = vsel %vm791_vm0, %v2939_v51, 0 }
 0xcdd   : > { %5661 = vst [vmem:[%s7672_s29 + $0xc0] sm:$0xff] %v2807_v1  ;;  %v2808_v28 = vmul.f32 %v6970_v59, %v6958_v54  ;;  %v6644_v54 = vpop.permute.xlu0 %6643 }
 0xcde   : > { %v6645_v38 = vunpack.i.l.bf16 %v6644_v54  ;;  %v6646_v21 = vunpack.i.h.bf16 %v6644_v54 }
 0xcdf   : > { %5662 = vst [vmem:[%s7672_s29 + $0xc8] sm:$0xff] %v2808_v28  ;;  %v2820_v7 = vpack.c.bf16 %v2808_v28, %v2807_v1 }
 0xce0   : > { %v2969_v47 = vsel %vm791_vm0, %v6645_v38, 0  ;;  %v2972_v45 = vsel %vm791_vm0, %v6646_v21, 0 }
 0xce1   : > { %6428 = vmatmul.mubr.bf16.vlgmr.msra.gmra.mrb[84].mxu1 %v2820_v7 }
 0xce2   : > { %6440 = vmatpush3.bf16.xpose.msra.mxu1 %v2960_v17  ;;  %6431 = vmatprep.mubr.msk.bf16.mxu1 %vm7135_vm1, %v9140_v46 }
 0xce3   : > { %6441 = vmatprep.subr.bf16.mxu1 %v9140_v46 }
 0xcea   : > { %6442 = vmatpush3.bf16.xpose.msra.mxu1 %v2963_v8 }
 0xceb   : > { %6443 = vmatprep.subr.bf16.mxu1 %v9140_v46 }
 0xcf2   : > { %6444 = vmatpush3.bf16.xpose.msra.mxu1 %v2966_v27 }
 0xcf3   : > { %6445 = vmatprep.subr.bf16.mxu1 %v9140_v46 }
 0xcfa   : > { %6446 = vmatpush3.bf16.xpose.msra.mxu1 %v2969_v47 }
 0xcfb   : > { %6447 = vmatprep.subr.bf16.mxu1 %v9140_v46 }
 0xd02   : > { %6448 = vmatpush3.bf16.xpose.msra.mxu1 %v2972_v45 }
 0xd03   : > { %6449 = vmatprep.subr.bf16.mxu1 %v9140_v46 }
 0xd04   : > { %v2789_v58 = vpop.xlane.xlu0 %2788 }
 0xd05   : > { %6971 = vrcp.f32 %v2789_v58 }
 0xd06   : > { %v2787_v0 = vpop.xlane.xlu1 %2786 }
 0xd07   : > { %6973 = vrcp.f32 %v2787_v0  ;;  %v8175_v0 = vld [vmem:[#allocation4 + $0x18] sm:$0xff] }
 0xd0a   : > { %v2791_v39 = vpop.xlane.xlu1 %2790 }
 0xd0b   : > { %6975 = vrcp.f32 %v2791_v39 }
 0xd0e   : > { %v2794_v33 = vpop.xlane.xlu1 %2793 }
 0xd0f   : > { %v6972_v1 = vpop.eup %6971  ;;  %6977 = vrcp.f32 %v2794_v33  ;;  %v8186_v33 = vld [vmem:[#allocation4 + $0x58] sm:$0xff] }
 0xd10   : > { %v2810_v59 = vmul.f32 %v6972_v1, %v6960_v2  ;;  %v2947_v2 = vpop.permute.xlu0 %2946 }
 0xd11   : > { %v6974_v28 = vpop.eup %6973 }
 0xd12   : > { %v2945_v7 = vpop.permute.xlu1 %2944  ;;  %v2809_v17 = vmul.f32 %v6974_v28, %v6962_v16  ;;  %5664 = vst [vmem:[%s7672_s29 + $0xd8] sm:$0xff] %v2810_v59  ;;  %v2978_v16 = vsel %vm791_vm0, %v2947_v2, 0 }
 0xd13   : > { %v2975_v8 = vsel %vm791_vm0, %v2945_v7, 0 }
 0xd14   : > { %6450 = vmatpush3.bf16.xpose.msra.mxu1 %v2975_v8  ;;  %5663 = vst [vmem:[%s7672_s29 + $0xd0] sm:$0xff] %v2809_v17  ;;  %v2821_v51 = vpack.c.bf16 %v2810_v59, %v2809_v17 }
 0xd15   : > { %v6976_v27 = vpop.eup %6975  ;;  %6451 = vmatprep.subr.bf16.mxu1 %v9140_v46 }
 0xd16   : > { %6432 = vmatmul.mubr.bf16.gmra.mrb[88].mxu1 %v2821_v51  ;;  %v2811_v54 = vmul.f32 %v6976_v27, %v8128_v22  ;;  %v2949_v22 = vpop.permute.xlu0 %2948  ;;  %v2921_v58 = vpop.permute.xlu1 %2920 }
 0xd17   : > { %6435 = vmatprep.mubr.msk.bf16.mxu1 %vm7135_vm1, %v9140_v46  ;;  %v2981_v45 = vsel %vm791_vm0, %v2949_v22, 0 }
 0xd18   : > { %5665 = vst [vmem:[%s7672_s29 + $0xe0] sm:$0xff] %v2811_v54 }
 0xd19   : > { %v6978_v38 = vpop.eup %6977 }
 0xd1a   : > { %v2812_v47 = vmul.f32 %v6978_v38, %v8130_v62  ;;  %v8181_v62 = vld [vmem:[#allocation4 + $0x38] sm:$0xff]  ;;  %v2923_v39 = vpop.permute.xlu0 %2922  ;;  %v2925_v1 = vpop.permute.xlu1 %2924 }
 0xd1c   : > { %6452 = vmatpush3.bf16.xpose.msra.mxu1 %v2978_v16  ;;  %5666 = vst [vmem:[%s7672_s29 + $0xe8] sm:$0x1f] %v2812_v47  ;;  %v2822_v21 = vpack.c.bf16 %v2812_v47, %v2811_v54 }
 0xd1d   : > { %6453 = vmatprep.subr.bf16.mxu1 %v9140_v46 }
 0xd1e   : > { %6436 = vmatmul.mubr.bf16.gmra.mrb[92].mxu1 %v2822_v21 }
 0xd1f   : > { %6455 = vmatprep.mubr.msk.bf16.mxu1 %vm7135_vm1, %v9140_v46 }
 0xd24   : > { %6454 = vmatpush3.bf16.xpose.msra.mxu1 %v2981_v45 }
 0xd25   : > { %6523 = vmatprep.subr.bf16.mxu1 %v9140_v46 }
 0xd2b   : > { %6456 = vmatmul.mubr.msk.bf16.vlgmr.msra.gmra.mrb[96].mxu1 %vm791_vm0, %v2921_v58 }
 0xd2c   : > { %6524 = vmatpush3.bf16.msra.mxu1 %v8175_v0  ;;  %6459 = vmatprep.mubr.msk.bf16.mxu1 %vm7135_vm1, %v9140_v46 }
 0xd2d   : > { %6525 = vmatprep.subr.bf16.mxu1 %v9140_v46 }
 0xd30   : > { %6526 = vmatpush3.bf16.msra.mxu1 %v8181_v62 }
 0xd31   : > { %6527 = vmatprep.subr.bf16.mxu1 %v9140_v46 }
 0xd33   : > { %6460 = vmatmul.mubr.msk.bf16.gmra.mrb[100].mxu1 %vm791_vm0, %v2923_v39 }
 0xd34   : > { %6528 = vmatpush3.bf16.msra.mxu1 %v8186_v33  ;;  %6463 = vmatprep.mubr.msk.bf16.mxu1 %vm7135_vm1, %v9140_v46 }
 0xd35   : > { %6529 = vmatprep.subr.bf16.mxu1 %v9140_v46 }
 0xd38   : > { %6530 = vmatpush3.bf16.msra.mxu1 %v7909_v34 }
 0xd39   : > { %6531 = vmatprep.subr.bf16.mxu1 %v9140_v46 }
 0xd3b   : > { %6464 = vmatmul.mubr.msk.bf16.gmra.mrb[104].mxu1 %vm791_vm0, %v2925_v1 }
 0xd3c   : > { %6532 = vmatpush3.bf16.msra.mxu1 %v7909_v34  ;;  %6539 = vmatprep.mubr.msk.bf16.mxu1 %vm7135_vm1, %v9140_v46 }
 0xd3d   : > { %6533 = vmatprep.subr.bf16.mxu1 %v9140_v46 }
 0xd40   : > { %6534 = vmatpush3.bf16.msra.mxu1 %v7909_v34 }
 0xd41   : > { %6535 = vmatprep.subr.bf16.mxu1 %v9140_v46 }
 0xd44   : > { %6536 = vmatpush3.bf16.msra.mxu1 %v7909_v34 }
 0xd45   : > { %6537 = vmatprep.subr.bf16.mxu1 %v9140_v46 }
 0xd48   : > { %6538 = vmatpush3.bf16.msra.mxu1 %v7909_v34 }
 0xd49   : > { %6551 = vmatprep.subr.bf16.mxu1 %v9140_v46 }
 0xdb4   : > { %v8205_v59 = vpop.f32.mrb[84].mxu1 }
 0xdb5   : > { %v6429_v28 = vpop.f32.mrb[85].mxu1 }
 0xdb6   : > { %v8207_v7 = vpop.f32.mrb[86].mxu1 }
 0xdb7   : > { %v6430_v8 = vpop.f32.mrb[87].mxu1 }
 0xde9   : > { %v8211_v51 = vpop.f32.mrb[88].mxu1 }
 0xdea   : > { %v6433_v27 = vpop.f32.mrb[89].mxu1 }
 0xdeb   : > { %v8213_v54 = vpop.f32.mrb[90].mxu1 }
 0xdec   : > { %v6434_v34 = vpop.f32.mrb[91].mxu1 }
 0xdf1   : > { %v8217_v38 = vpop.f32.mrb[92].mxu1 }
 0xdf2   : > { %v6437_v16 = vpop.f32.mrb[93].mxu1 }
 0xdf3   : > { %v8219_v47 = vpop.f32.mrb[94].mxu1 }
 0xdf4   : > { %v6438_v22 = vpop.f32.mrb[95].mxu1 }
 0xdfe   : > { %v3017_v45 = vpop.f32.mrb[96].mxu1 }
 0xdff   : > { %v3040_v58 = vsel %vm481_vm11, %v3017_v45, -1e+09  ;;  %v6457_v39 = vpop.f32.mrb[97].mxu1  ;;  %v2897_v45 = vld [vmem:[#allocation4 + $0x10] sm:$0xff] }
 0xe00   : > { %3046 = vmax.xlane.f32.xlu0 %v3040_v58  ;;  %v3020_v1 = vpop.f32.mrb[98].mxu1 }
 0xe01   : > { %v3041_v28 = vsel %vm481_vm11, %v3020_v1, -1e+09  ;;  %v6458_v8 = vpop.f32.mrb[99].mxu1 }
 0xe02   : > { %3048 = vmax.xlane.f32.xlu1 %v3041_v28  ;;  %v8238_v8 = vld [vmem:[#allocation3 + $0x60] sm:$0xff] }
 0xe06   : > { %v3025_v27 = vpop.f32.mrb[100].mxu1 }
 0xe07   : > { %v6461_v34 = vpop.f32.mrb[101].mxu1  ;;  %v3042_v39 = vsel %vm481_vm11, %v3025_v27, -1e+09 }
 0xe08   : > { %v3028_v16 = vpop.f32.mrb[102].mxu1 }
 0xe09   : > { %v6462_v2 = vpop.f32.mrb[103].mxu1 }
 0xe0a   : > { %v3043_v2 = vsel %vm481_vm11, %v3028_v16, -1e+09 }
 0xe0e   : > { %v3033_v10 = vpop.f32.mrb[104].mxu1 }
 0xe0f   : > { %v6465_v17 = vpop.f32.mrb[105].mxu1  ;;  %v3044_v1 = vsel %vm481_vm11, %v3033_v10, -1e+09 }
 0xe10   : > { %v3036_v21 = vpop.f32.mrb[106].mxu1 }
 0xe11   : > { %v6466_v22 = vpop.f32.mrb[107].mxu1  ;;  %v3045_v17 = vsel %vm481_vm11, %v3036_v21, -1e+09 }
 0xe13   : > { %3128 = vrot.lane.b32.xlu1 %v2898_v31, %s7136_s25  ;;  %v3056_v31 = vsel %vm1483_vm12, %v3045_v17, -inf }
 0xe16   : > { %3126 = vrot.lane.b32.xlu0 %v2897_v45, %s7136_s25 }
 0xe35   : > { %3050 = vmax.xlane.f32.xlu0 %v3042_v39 }
 0xe37   : > { %3054 = vmax.xlane.f32.xlu1 %v3044_v1 }
 0xe39   : > { %3052 = vmax.xlane.f32.xlu0 %v3043_v2 }
 0xe3d   : > { %3057 = vmax.xlane.f32.xlu0 %v3056_v31 }
 0xe48   : > { %3132 = vrot.lane.b32.xlu1 %v8238_v8, %s7136_s25 }
 0xe4c   : > { %3134 = vrot.lane.b32.xlu1 %v8238_v8, %s7136_s25 }
 0xe50   : > { %3136 = vrot.lane.b32.xlu1 %v8238_v8, %s7136_s25 }
 0xe53   : > { %3130 = vrot.lane.b32.xlu0 %v7959_v32, %s7136_s25 }
 0xe8d   : > { %v3047_v10 = vpop.xlane.xlu0 %3046 }
 0xe8e   : > { %v3059_v21 = vsub.f32 %v3040_v58, %v3047_v10 }
 0xe8f   : > { %v3049_v27 = vpop.xlane.xlu1 %3048 }
 0xe90   : > { %v3065_v34 = vmul.f32 1.442695, %v3059_v21  ;;  %v3060_v16 = vsub.f32 %v3041_v28, %v3049_v27 }
 0xe91   : > { %v3127_v22 = vpop.permute.xlu0 %3126 }
 0xe92   : > { %6979 = vpow2.f32 %v3065_v34  ;;  %v3067_v45 = vmul.f32 1.442695, %v3060_v16  ;;  %6468 = vmatpush3.bf16.msra.mxu0 %v3127_v22 }
 0xe93   : > { %6469 = vmatprep.subr.bf16.mxu0 %v9140_v46  ;;  %v3129_v31 = vpop.permute.xlu1 %3128 }
 0xe94   : > { %6981 = vpow2.f32 %v3067_v45 }
 0xe96   : > { %6470 = vmatpush3.bf16.msra.mxu0 %v3129_v31 }
 0xe97   : > { %6471 = vmatprep.subr.bf16.mxu0 %v9140_v46 }
 0xe9c   : > { %v6980_v41 = vpop.eup %6979 }
 0xe9d   : > { %3077 = vadd.xlane.f32.xlu1 %v6980_v41 }
 0xe9e   : > { %v6982_v49 = vpop.eup %6981 }
 0xe9f   : > { %3079 = vadd.xlane.f32.xlu0 %v6982_v49 }
 0xeae   : > { %3140 = vrot.lane.b32.xlu1 %v8238_v8, %s7136_s25 }
 0xeb5   : > { %3138 = vrot.lane.b32.xlu0 %v8238_v8, %s7136_s25 }
 0xec2   : > { %v3051_v32 = vpop.xlane.xlu0 %3050 }
 0xec3   : > { %v3061_v58 = vsub.f32 %v3042_v39, %v3051_v32 }
 0xec4   : > { %v3055_v28 = vpop.xlane.xlu1 %3054 }
 0xec5   : > { %v3069_v10 = vmul.f32 1.442695, %v3061_v58  ;;  %v3063_v21 = vsub.f32 %v3044_v1, %v3055_v28 }
 0xec6   : > { %v3053_v27 = vpop.xlane.xlu0 %3052 }
 0xec7   : > { %v3062_v34 = vsub.f32 %v3043_v2, %v3053_v27  ;;  %6983 = vpow2.f32 %v3069_v10  ;;  %v3073_v16 = vmul.f32 1.442695, %v3063_v21 }
 0xec8   : > { %v3133_v42 = vpop.permute.xlu1 %3132 }
 0xec9   : > { %v3071_v22 = vmul.f32 1.442695, %v3062_v34 }
 0xeca   : > { %v3058_v45 = vpop.xlane.xlu0 %3057 }
 0xecb   : > { %6985 = vpow2.f32 %v3071_v22  ;;  %v3064_v31 = vsub.f32 %v3045_v17, %v3058_v45  ;;  %v8272_v45 = vld [vmem:[#allocation3 + $0x18] sm:$0xff] }
 0xecc   : > { %6987 = vpow2.f32 %v3073_v16  ;;  %v3135_v39 = vpop.permute.xlu1 %3134 }
 0xecd   : > { %v3075_v6 = vmul.f32 1.442695, %v3064_v31  ;;  %v3304_v31 = vsel %vm791_vm0, %v8272_v45, 0 }
 0xece   : > { %v3131_v30 = vpop.permute.xlu0 %3130 }
 0xecf   : > { %6989 = vpow2.f32 %v3075_v6  ;;  %6472 = vmatpush3.bf16.msra.mxu0 %v3131_v30 }
 0xed0   : > { %6473 = vmatprep.subr.bf16.mxu0 %v9140_v46  ;;  %v3137_v17 = vpop.permute.xlu1 %3136 }
 0xed1   : > { %v8255_v32 = vpop.eup %6983 }
 0xed3   : > { %6474 = vmatpush3.bf16.msra.mxu0 %v3133_v42 }
 0xed4   : > { %3081 = vadd.xlane.f32.xlu0 %v8255_v32  ;;  %6475 = vmatprep.subr.bf16.mxu0 %v9140_v46 }
 0xed5   : > { %v6986_v1 = vpop.eup %6985 }
 0xed6   : > { %3083 = vadd.xlane.f32.xlu1 %v6986_v1  ;;  %v8259_v2 = vpop.eup %6987 }
 0xed7   : > { %6476 = vmatpush3.bf16.msra.mxu0 %v3135_v39 }
 0xed8   : > { %3085 = vadd.xlane.f32.xlu0 %v8259_v2  ;;  %6477 = vmatprep.subr.bf16.mxu0 %v9140_v46 }
 0xed9   : > { %v8263_v30 = vpop.eup %6989 }
 0xeda   : > { %v3087_v6 = vsel %vm1483_vm12, %v8263_v30, 0.0 }
 0xedb   : > { %6478 = vmatpush3.bf16.msra.mxu0 %v3137_v17 }
 0xedc   : > { %3088 = vadd.xlane.f32.xlu0 %v3087_v6  ;;  %6479 = vmatprep.subr.bf16.mxu0 %v9140_v46  ;;  %v3313_v6 = vsel %vm791_vm0, %v8238_v8, 0 }
 0xf2a   : > { %v3078_v42 = vpop.xlane.xlu1 %3077 }
 0xf2b   : > { %6991 = vrcp.f32 %v3078_v42 }
 0xf2c   : > { %v3080_v58 = vpop.xlane.xlu0 %3079 }
 0xf2d   : > { %6993 = vrcp.f32 %v3080_v58 }
 0xf2e   : > { %v3141_v10 = vpop.permute.xlu1 %3140 }
 0xf30   : > { %v3139_v28 = vpop.permute.xlu0 %3138 }
 0xf31   : > { %6480 = vmatpush3.bf16.msra.mxu0 %v3139_v28 }
 0xf32   : > { %6481 = vmatprep.subr.bf16.mxu0 %v9140_v46 }
 0xf35   : > { %v6992_v21 = vpop.eup %6991  ;;  %6482 = vmatpush3.bf16.msra.mxu0 %v3141_v10 }
 0xf36   : > { %v3102_v27 = vmul.f32 %v6992_v21, %v6980_v41  ;;  %6495 = vmatprep.subr.bf16.mxu0 %v9140_v46  ;;  %v8279_v41 = vld [vmem:[#allocation3 + $0x38] sm:$0xff] }
 0xf37   : > { %v6994_v34 = vpop.eup %6993  ;;  %v3307_v39 = vsel %vm791_vm0, %v8279_v41, 0 }
 0xf38   : > { %5673 = vst [vmem:[%s7672_s29 + $0xf0] sm:$0xff] %v3102_v27  ;;  %v3103_v16 = vmul.f32 %v6994_v34, %v6982_v49  ;;  %v8284_v49 = vld [vmem:[#allocation3 + $0x58] sm:$0xff] }
 0xf39   : > { %v3310_v17 = vsel %vm791_vm0, %v8284_v49, 0 }
 0xf3a   : > { %5674 = vst [vmem:[%s7672_s29 + $0xf8] sm:$0xff] %v3103_v16  ;;  %v3115_v22 = vpack.c.bf16 %v3103_v16, %v3102_v27 }
 0xf3c   : > { %6484 = vmatmul.mubr.bf16.vlgmr.msra.gmra.mrb[96].mxu0 %v3115_v22 }
 0xf3d   : > { %6487 = vmatprep.mubr.msk.bf16.mxu0 %vm7135_vm1, %v9140_v46 }
 0xf3e   : > { %6496 = vmatpush3.bf16.xpose.msra.mxu0 %v3304_v31 }
 0xf3f   : > { %6497 = vmatprep.subr.bf16.mxu0 %v9140_v46 }
 0xf46   : > { %6498 = vmatpush3.bf16.xpose.msra.mxu0 %v3307_v39 }
 0xf47   : > { %6499 = vmatprep.subr.bf16.mxu0 %v9140_v46 }
 0xf4e   : > { %6500 = vmatpush3.bf16.xpose.msra.mxu0 %v3310_v17 }
 0xf4f   : > { %6501 = vmatprep.subr.bf16.mxu0 %v9140_v46 }
 0xf56   : > { %6502 = vmatpush3.bf16.xpose.msra.mxu0 %v3313_v6 }
 0xf57   : > { %6503 = vmatprep.subr.bf16.mxu0 %v9140_v46 }
 0xf5e   : > { %6504 = vmatpush3.bf16.xpose.msra.mxu0 %v3313_v6 }
 0xf5f   : > { %6505 = vmatprep.subr.bf16.mxu0 %v9140_v46 }
 0xf61   : > { %v3082_v42 = vpop.xlane.xlu0 %3081 }
 0xf62   : > { %6995 = vrcp.f32 %v3082_v42  ;;  %v6747_v42 = vld [vmem:[#allocation2 + $0xc] ss:$16 sps:$4 sm:$0xff]  }
 0xf63   : > { %v3084_v58 = vpop.xlane.xlu1 %3083 }
 0xf64   : > { %6997 = vrcp.f32 %v3084_v58 }
 0xf65   : > { %v3086_v28 = vpop.xlane.xlu0 %3085 }
 0xf66   : > { %6999 = vrcp.f32 %v3086_v28  ;;  %6506 = vmatpush3.bf16.xpose.msra.mxu0 %v3313_v6 }
 0xf67   : > { %6507 = vmatprep.subr.bf16.mxu0 %v9140_v46 }
 0xf69   : > { %v3089_v10 = vpop.xlane.xlu0 %3088 }
 0xf6a   : > { %7001 = vrcp.f32 %v3089_v10 }
 0xf6c   : > { %v6996_v21 = vpop.eup %6995 }
 0xf6d   : > { %v3104_v27 = vmul.f32 %v6996_v21, %v8255_v32 }
 0xf6e   : > { %v6998_v34 = vpop.eup %6997  ;;  %6508 = vmatpush3.bf16.xpose.msra.mxu0 %v3313_v6 }
 0xf6f   : > { %v3105_v16 = vmul.f32 %v6998_v34, %v6986_v1  ;;  %5675 = vst [vmem:[%s7672_s29 + $0x100] sm:$0xff] %v3104_v27  ;;  %6509 = vmatprep.subr.bf16.mxu0 %v9140_v46 }
 0xf70   : > { %v7000_v22 = vpop.eup %6999 }
 0xf71   : > { %5676 = vst [vmem:[%s7672_s29 + $0x108] sm:$0xff] %v3105_v16  ;;  %v3116_v31 = vpack.c.bf16 %v3105_v16, %v3104_v27  ;;  %v3106_v39 = vmul.f32 %v7000_v22, %v8259_v2  ;;  %v6748_v2 = vld [vmem:[#allocation2 + $0x2c] ss:$16 sps:$4 sm:$0xff]  }
 0xf73   : > { %6488 = vmatmul.mubr.bf16.gmra.mrb[100].mxu0 %v3116_v31  ;;  %5677 = vst [vmem:[%s7672_s29 + $0x110] sm:$0xff] %v3106_v39 }
 0xf74   : > { %v7002_v17 = vpop.eup %7001  ;;  %6491 = vmatprep.mubr.msk.bf16.mxu0 %vm7135_vm1, %v9140_v46 }
 0xf75   : > { %v3107_v32 = vmul.f32 %v7002_v17, %v8263_v30  ;;  %v6749_v30 = vld [vmem:[#allocation2 + $0x4c] ss:$16 sps:$4 sm:$0x7f]  }
 0xf76   : > { %6510 = vmatpush3.bf16.xpose.msra.mxu0 %v3313_v6 }
 0xf77   : > { %5678 = vst [vmem:[%s7672_s29 + $0x118] sm:$0x1f] %v3107_v32  ;;  %6579 = vmatprep.subr.bf16.mxu0 %v9140_v46  ;;  %v3117_v1 = vpack.c.bf16 %v3107_v32, %v3106_v39 }
 0xf7b   : > { %6492 = vmatmul.mubr.bf16.gmra.mrb[104].mxu0 %v3117_v1 }
 0xf7c   : > { %6511 = vmatprep.mubr.msk.bf16.mxu0 %vm7135_vm1, %v9140_v46 }
 0xf83   : > { %6512 = vmatmul.mubr.msk.bf16.vlgmr.msra.gmra.mrb[108].mxu0 %vm791_vm0, %v6747_v42 }
 0xf84   : > { %6515 = vmatprep.mubr.msk.bf16.mxu0 %vm7135_vm1, %v9140_v46 }
 0xf8b   : > { %6516 = vmatmul.mubr.msk.bf16.gmra.mrb[112].mxu0 %vm791_vm0, %v6748_v2 }
 0xf8c   : > { %6519 = vmatprep.mubr.msk.bf16.mxu0 %vm7135_vm1, %v9140_v46 }
 0xf93   : > { %6520 = vmatmul.mubr.msk.bf16.gmra.mrb[116].mxu0 %vm791_vm0, %v6749_v30 }
 0xf94   : > { %6595 = vmatprep.mubr.msk.bf16.mxu0 %vm7135_vm1, %v9140_v46 }
0x100f   : > { %v8316_v6 = vpop.f32.mrb[96].mxu0 }
0x1010   : > { %v6485_v58 = vpop.f32.mrb[97].mxu0 }
0x1011   : > { %v8318_v28 = vpop.f32.mrb[98].mxu0 }
0x1012   : > { %v6486_v21 = vpop.f32.mrb[99].mxu0 }
0x1046   : > { %v8322_v27 = vpop.f32.mrb[100].mxu0 }
0x1047   : > { %v6489_v34 = vpop.f32.mrb[101].mxu0 }
0x1048   : > { %v8324_v16 = vpop.f32.mrb[102].mxu0 }
0x1049   : > { %v6490_v31 = vpop.f32.mrb[103].mxu0 }
0x104e   : > { %v8328_v39 = vpop.f32.mrb[104].mxu0 }
0x104f   : > { %v6493_v17 = vpop.f32.mrb[105].mxu0 }
0x1050   : > { %v8330_v32 = vpop.f32.mrb[106].mxu0 }
0x1051   : > { %v6494_v42 = vpop.f32.mrb[107].mxu0 }
0x1056   : > { %v3361_v2 = vpop.f32.mrb[108].mxu0 }
0x1057   : > { %v3384_v30 = vsel %vm481_vm11, %v3361_v2, -1e+09  ;;  %v6513_v58 = vpop.f32.mrb[109].mxu0 }
0x1058   : > { %3390 = vmax.xlane.f32.xlu0 %v3384_v30  ;;  %v3364_v21 = vpop.f32.mrb[110].mxu0 }
0x1059   : > { %v3385_v34 = vsel %vm481_vm11, %v3364_v21, -1e+09  ;;  %v6514_v31 = vpop.f32.mrb[111].mxu0 }
0x105a   : > { %3392 = vmax.xlane.f32.xlu1 %v3385_v34 }
0x105e   : > { %v3369_v22 = vpop.f32.mrb[112].mxu0 }
0x105f   : > { %v3386_v17 = vsel %vm481_vm11, %v3369_v22, -1e+09  ;;  %v6517_v10 = vpop.f32.mrb[113].mxu0 }
0x1060   : > { %3394 = vmax.xlane.f32.xlu0 %v3386_v17  ;;  %v3372_v1 = vpop.f32.mrb[114].mxu0 }
0x1061   : > { %v3387_v42 = vsel %vm481_vm11, %v3372_v1, -1e+09  ;;  %v6518_v46 = vpop.f32.mrb[115].mxu0 }
0x1062   : > { %3396 = vmax.xlane.f32.xlu1 %v3387_v42 }
0x1066   : > { %v3377_v2 = vpop.f32.mrb[116].mxu0 }
0x1067   : > { %v3388_v58 = vsel %vm481_vm11, %v3377_v2, -1e+09  ;;  %v6521_v36 = vpop.f32.mrb[117].mxu0 }
0x1068   : > { %3398 = vmax.xlane.f32.xlu1 %v3388_v58  ;;  %v3380_v21 = vpop.f32.mrb[118].mxu0 }
0x1069   : > { %v3389_v31 = vsel %vm481_vm11, %v3380_v21, -1e+09  ;;  %v6522_v35 = vpop.f32.mrb[119].mxu0 }
0x106a   : > { %v3400_v10 = vsel %vm1483_vm12, %v3389_v31, -inf }
0x106b   : > { %3401 = vmax.xlane.f32.xlu0 %v3400_v10 }
0x1079   : > { %3575 = vrot.lane.b32.xlu1 %v8279_v41, %s7136_s25 }
0x1081   : > { %3573 = vrot.lane.b32.xlu0 %v8272_v45, %s7136_s25 }
0x10e5   : > { %v3391_v46 = vpop.xlane.xlu0 %3390 }
0x10e6   : > { %v3403_v22 = vsub.f32 %v3384_v30, %v3391_v46 }
0x10e7   : > { %v3393_v1 = vpop.xlane.xlu1 %3392 }
0x10e8   : > { %v3409_v2 = vmul.f32 1.442695, %v3403_v22  ;;  %v3404_v36 = vsub.f32 %v3385_v34, %v3393_v1 }
0x10ea   : > { %7003 = vpow2.f32 %v3409_v2  ;;  %v3411_v25 = vmul.f32 1.442695, %v3404_v36 }
0x10ec   : > { %7005 = vpow2.f32 %v3411_v25 }
0x10ed   : > { %v3395_v45 = vpop.xlane.xlu0 %3394 }
0x10ee   : > { %v3405_v30 = vsub.f32 %v3386_v17, %v3395_v45 }
0x10ef   : > { %v3397_v41 = vpop.xlane.xlu1 %3396 }
0x10f0   : > { %v3406_v21 = vsub.f32 %v3387_v42, %v3397_v41  ;;  %v3413_v22 = vmul.f32 1.442695, %v3405_v30  ;;  %v6752_v41 = vld [vmem:[#allocation2 + $0x4c] ss:$16 sps:$4 sm:$0x7f]  }
0x10f2   : > { %v3415_v46 = vmul.f32 1.442695, %v3406_v21 }
0x10f4   : > { %v7004_v24 = vpop.eup %7003  ;;  %7007 = vpow2.f32 %v3415_v46 }
0x10f5   : > { %3421 = vadd.xlane.f32.xlu0 %v7004_v24  ;;  %v3399_v10 = vpop.xlane.xlu1 %3398  ;;  %7009 = vpow2.f32 %v3413_v22 }
0x10f6   : > { %v7006_v35 = vpop.eup %7005  ;;  %v3407_v1 = vsub.f32 %v3388_v58, %v3399_v10  ;;  %v6750_v58 = vld [vmem:[#allocation2 + $0x2c] ss:$16 sps:$4 sm:$0xff]  }
0x10f7   : > { %3423 = vadd.xlane.f32.xlu1 %v7006_v35 }
0x10f8   : > { %v3402_v34 = vpop.xlane.xlu0 %3401  ;;  %v3417_v2 = vmul.f32 1.442695, %v3407_v1 }
0x10f9   : > { %v3408_v25 = vsub.f32 %v3389_v31, %v3402_v34  ;;  %v6751_v31 = vld [vmem:[#allocation2 + $0xc] ss:$16 sps:$4 sm:$0xff]   ;;  %v3576_v21 = vpop.permute.xlu1 %3575 }
0x10fa   : > { %7011 = vpow2.f32 %v3417_v2 }
0x10fb   : > { %v3419_v36 = vmul.f32 1.442695, %v3408_v25 }
0x10fc   : > { %v3574_v45 = vpop.permute.xlu0 %3573 }
0x10fd   : > { %7013 = vpow2.f32 %v3419_v36  ;;  %v3599_v2 = vsel %vm791_vm0, %v3574_v45, 0  ;;  %v9165_v36 = vmov 0.0  }
0x1108   : > { %3577 = vrot.lane.b32.xlu1 %v8284_v49, %s7136_s25  ;;  %v7008_v49 = vpop.eup %7007 }
0x1109   : > { %v7010_v13 = vpop.eup %7009 }
0x110b   : > { %6648 = vrot.lane.b32.xlu0 %v8122_v5, %s7136_s25  ;;  %v8355_v5 = vpop.eup %7011 }
0x110c   : > { %v8357_v42 = vpop.eup %7013 }
0x110d   : > { %v3431_v17 = vsel %vm1483_vm12, %v8357_v42, 0.0 }
0x112a   : > { %3427 = vadd.xlane.f32.xlu0 %v7008_v49 }
0x112c   : > { %3425 = vadd.xlane.f32.xlu1 %v7010_v13 }
0x1130   : > { %3429 = vadd.xlane.f32.xlu1 %v8355_v5 }
0x1134   : > { %3432 = vadd.xlane.f32.xlu1 %v3431_v17  ;;  %v3602_v17 = vsel %vm791_vm0, %v3576_v21, 0 }
0x1140   : > { %3585 = vrot.lane.b32.xlu0 %v8238_v8, %s7136_s25 }
0x1144   : > { %3587 = vrot.lane.b32.xlu0 %v8238_v8, %s7136_s25 }
0x1145   : > { %3583 = vrot.lane.b32.xlu1 %v8238_v8, %s7136_s25 }
0x1148   : > { %3561 = vrot.lane.b32.xlu0 %v6750_v58, %s7136_s25 }
0x1149   : > { %3559 = vrot.lane.b32.xlu1 %v6751_v31, %s7136_s25 }
0x114d   : > { %3563 = vrot.lane.b32.xlu1 %v6752_v41, %s7136_s25 }
0x1182   : > { %v3422_v30 = vpop.xlane.xlu0 %3421 }
0x1183   : > { %7015 = vrcp.f32 %v3422_v30 }
0x1184   : > { %v3424_v10 = vpop.xlane.xlu1 %3423 }
0x1185   : > { %7017 = vrcp.f32 %v3424_v10 }
0x118d   : > { %v7016_v46 = vpop.eup %7015 }
0x118e   : > { %v3446_v34 = vmul.f32 %v7016_v46, %v7004_v24  ;;  %v3578_v24 = vpop.permute.xlu1 %3577 }
0x118f   : > { %v7018_v22 = vpop.eup %7017  ;;  %v3605_v58 = vsel %vm791_vm0, %v3578_v24, 0 }
0x1190   : > { %5691 = vst [vmem:[%s7672_s29 + $0x120] sm:$0xff] %v3446_v34  ;;  %v3447_v1 = vmul.f32 %v7018_v22, %v7006_v35  ;;  %v6649_v35 = vpop.permute.xlu0 %6648 }
0x1191   : > { %v6650_v31 = vunpack.i.l.bf16 %v6649_v35  ;;  %v6651_v45 = vunpack.i.h.bf16 %v6649_v35 }
0x1192   : > { %5692 = vst [vmem:[%s7672_s29 + $0x128] sm:$0xff] %v3447_v1  ;;  %v3459_v25 = vpack.c.bf16 %v3447_v1, %v3446_v34 }
0x1193   : > { %v3608_v41 = vsel %vm791_vm0, %v6650_v31, 0  ;;  %v3611_v30 = vsel %vm791_vm0, %v6651_v45, 0 }
0x1194   : > { %6540 = vmatmul.mubr.bf16.vlgmr.msra.gmra.mrb[108].mxu1 %v3459_v25 }
0x1195   : > { %6552 = vmatpush3.bf16.xpose.msra.mxu1 %v3599_v2  ;;  %6543 = vmatprep.mubr.msk.bf16.mxu1 %vm7135_vm1, %v9165_v36 }
0x1196   : > { %6553 = vmatprep.subr.bf16.mxu1 %v9165_v36 }
0x119d   : > { %6554 = vmatpush3.bf16.xpose.msra.mxu1 %v3602_v17 }
0x119e   : > { %6555 = vmatprep.subr.bf16.mxu1 %v9165_v36 }
0x11a5   : > { %6556 = vmatpush3.bf16.xpose.msra.mxu1 %v3605_v58 }
0x11a6   : > { %6557 = vmatprep.subr.bf16.mxu1 %v9165_v36 }
0x11ad   : > { %6558 = vmatpush3.bf16.xpose.msra.mxu1 %v3608_v41 }
0x11ae   : > { %6559 = vmatprep.subr.bf16.mxu1 %v9165_v36 }
0x11b5   : > { %6560 = vmatpush3.bf16.xpose.msra.mxu1 %v3611_v30 }
0x11b6   : > { %6561 = vmatprep.subr.bf16.mxu1 %v9165_v36 }
0x11b7   : > { %v3428_v21 = vpop.xlane.xlu0 %3427 }
0x11b8   : > { %7019 = vrcp.f32 %v3428_v21 }
0x11b9   : > { %v3426_v10 = vpop.xlane.xlu1 %3425 }
0x11ba   : > { %7021 = vrcp.f32 %v3426_v10 }
0x11bd   : > { %v3430_v46 = vpop.xlane.xlu1 %3429 }
0x11be   : > { %7023 = vrcp.f32 %v3430_v46 }
0x11c1   : > { %v3433_v34 = vpop.xlane.xlu1 %3432 }
0x11c2   : > { %v7020_v22 = vpop.eup %7019  ;;  %7025 = vrcp.f32 %v3433_v34 }
0x11c3   : > { %v3449_v1 = vmul.f32 %v7020_v22, %v7008_v49  ;;  %v3586_v49 = vpop.permute.xlu0 %3585 }
0x11c4   : > { %v7022_v25 = vpop.eup %7021 }
0x11c5   : > { %v3584_v2 = vpop.permute.xlu1 %3583  ;;  %v3448_v17 = vmul.f32 %v7022_v25, %v7010_v13  ;;  %5694 = vst [vmem:[%s7672_s29 + $0x138] sm:$0xff] %v3449_v1  ;;  %v3617_v13 = vsel %vm791_vm0, %v3586_v49, 0 }
0x11c6   : > { %v3614_v24 = vsel %vm791_vm0, %v3584_v2, 0 }
0x11c7   : > { %6562 = vmatpush3.bf16.xpose.msra.mxu1 %v3614_v24  ;;  %5693 = vst [vmem:[%s7672_s29 + $0x130] sm:$0xff] %v3448_v17  ;;  %v3460_v58 = vpack.c.bf16 %v3449_v1, %v3448_v17 }
0x11c8   : > { %v7024_v35 = vpop.eup %7023  ;;  %6563 = vmatprep.subr.bf16.mxu1 %v9165_v36 }
0x11c9   : > { %6544 = vmatmul.mubr.bf16.gmra.mrb[112].mxu1 %v3460_v58  ;;  %v3450_v31 = vmul.f32 %v7024_v35, %v8355_v5  ;;  %v3588_v5 = vpop.permute.xlu0 %3587  ;;  %v3560_v10 = vpop.permute.xlu1 %3559 }
0x11ca   : > { %6547 = vmatprep.mubr.msk.bf16.mxu1 %vm7135_vm1, %v9165_v36  ;;  %v3620_v21 = vsel %vm791_vm0, %v3588_v5, 0 }
0x11cb   : > { %5695 = vst [vmem:[%s7672_s29 + $0x140] sm:$0xff] %v3450_v31 }
0x11cc   : > { %v7026_v41 = vpop.eup %7025 }
0x11cd   : > { %v3451_v45 = vmul.f32 %v7026_v41, %v8357_v42  ;;  %v3562_v42 = vpop.permute.xlu0 %3561  ;;  %v3564_v46 = vpop.permute.xlu1 %3563 }
0x11cf   : > { %6564 = vmatpush3.bf16.xpose.msra.mxu1 %v3617_v13  ;;  %5696 = vst [vmem:[%s7672_s29 + $0x148] sm:$0x1f] %v3451_v45  ;;  %v3461_v30 = vpack.c.bf16 %v3451_v45, %v3450_v31 }
0x11d0   : > { %6565 = vmatprep.subr.bf16.mxu1 %v9165_v36 }
0x11d1   : > { %6548 = vmatmul.mubr.bf16.gmra.mrb[116].mxu1 %v3461_v30 }
0x11d2   : > { %6567 = vmatprep.mubr.msk.bf16.mxu1 %vm7135_vm1, %v9165_v36 }
0x11d7   : > { %6566 = vmatpush3.bf16.xpose.msra.mxu1 %v3620_v21 }
0x11de   : > { %6568 = vmatmul.mubr.msk.bf16.vlgmr.msra.gmra.mrb[120].mxu1 %vm791_vm0, %v3560_v10 }
0x11df   : > { %6571 = vmatprep.mubr.msk.bf16.mxu1 %vm7135_vm1, %v9165_v36 }
0x11e6   : > { %6572 = vmatmul.mubr.msk.bf16.gmra.mrb[124].mxu1 %vm791_vm0, %v3562_v42 }
0x11e7   : > { %6575 = vmatprep.mubr.msk.bf16.mxu1 %vm7135_vm1, %v9165_v36 }
0x11ee   : > { %6576 = vmatmul.mubr.msk.bf16.gmra.mrb[128].mxu1 %vm791_vm0, %v3564_v46 }
0x1267   : > { %v8407_v34 = vpop.f32.mrb[108].mxu1 }
0x1268   : > { %v6541_v22 = vpop.f32.mrb[109].mxu1 }
0x1269   : > { %v8409_v1 = vpop.f32.mrb[110].mxu1 }
0x126a   : > { %v6542_v2 = vpop.f32.mrb[111].mxu1 }
0x129c   : > { %v8413_v17 = vpop.f32.mrb[112].mxu1 }
0x129d   : > { %v6545_v24 = vpop.f32.mrb[113].mxu1 }
0x129e   : > { %v8415_v58 = vpop.f32.mrb[114].mxu1 }
0x129f   : > { %v6546_v31 = vpop.f32.mrb[115].mxu1 }
0x12a4   : > { %v8419_v49 = vpop.f32.mrb[116].mxu1 }
0x12a5   : > { %9166 = vst [vmem:[#allocation16_spill] sm:$0xff] %v8419_v49  ;;  %v6549_v41 = vpop.f32.mrb[117].mxu1 }
0x12a6   : > { %v8421_v13 = vpop.f32.mrb[118].mxu1 }
0x12a7   : > { %9167 = vst [vmem:[#allocation17_spill] sm:$0xff] %v8421_v13  ;;  %v6550_v30 = vpop.f32.mrb[119].mxu1 }
0x12b1   : > { %v3656_v5 = vpop.f32.mrb[120].mxu1 }
0x12b2   : > { %v3679_v21 = vsel %vm481_vm11, %v3656_v5, -1e+09  ;;  %v6569_v10 = vpop.f32.mrb[121].mxu1 }
0x12b3   : > { %3685 = vmax.xlane.f32.xlu0 %v3679_v21  ;;  %v3659_v42 = vpop.f32.mrb[122].mxu1 }
0x12b4   : > { %v3680_v46 = vsel %vm481_vm11, %v3659_v42, -1e+09  ;;  %v6570_v22 = vpop.f32.mrb[123].mxu1 }
0x12b5   : > { %3687 = vmax.xlane.f32.xlu1 %v3680_v46 }
0x12b9   : > { %v3664_v2 = vpop.f32.mrb[124].mxu1 }
0x12ba   : > { %v3681_v24 = vsel %vm481_vm11, %v3664_v2, -1e+09  ;;  %v6573_v31 = vpop.f32.mrb[125].mxu1 }
0x12bb   : > { %3689 = vmax.xlane.f32.xlu0 %v3681_v24  ;;  %v3667_v41 = vpop.f32.mrb[126].mxu1 }
0x12bc   : > { %v6574_v30 = vpop.f32.mrb[127].mxu1  ;;  %v3682_v45 = vsel %vm481_vm11, %v3667_v41, -1e+09 }
0x12bf   : > { %3691 = vmax.xlane.f32.xlu0 %v3682_v45 }
0x12c1   : > { %v3672_v5 = vpop.f32.mrb[128].mxu1 }
0x12c2   : > { %v3683_v10 = vsel %vm481_vm11, %v3672_v5, -1e+09  ;;  %v6577_v35 = vpop.f32.mrb[129].mxu1 }
0x12c3   : > { %3693 = vmax.xlane.f32.xlu1 %v3683_v10  ;;  %v3675_v42 = vpop.f32.mrb[130].mxu1  ;;  %v6652_v35 = vpack.i.bf16 %v8238_v8, %v8238_v8 }
0x12c4   : > { %v3684_v22 = vsel %vm481_vm11, %v3675_v42, -1e+09  ;;  %v6578_v25 = vpop.f32.mrb[131].mxu1 }
0x12c5   : > { %v3695_v2 = vsel %vm1483_vm12, %v3684_v22, -inf }
0x12c6   : > { %3696 = vmax.xlane.f32.xlu0 %v3695_v2 }
0x12d4   : > { %3767 = vrot.lane.b32.xlu1 %v8181_v62, %s7136_s25 }
0x12dc   : > { %3765 = vrot.lane.b32.xlu0 %v8175_v0, %s7136_s25 }
0x12e0   : > { %3769 = vrot.lane.b32.xlu0 %v8186_v33, %s7136_s25 }
0x12e4   : > { %6653 = vrot.lane.b32.xlu0 %v6652_v35, %s7136_s25 }
0x1340   : > { %v3686_v40 = vpop.xlane.xlu0 %3685 }
0x1341   : > { %v3698_v31 = vsub.f32 %v3679_v21, %v3686_v40 }
0x1342   : > { %v3688_v25 = vpop.xlane.xlu1 %3687 }
0x1343   : > { %v3704_v41 = vmul.f32 1.442695, %v3698_v31  ;;  %v3699_v30 = vsub.f32 %v3680_v46, %v3688_v25 }
0x1345   : > { %7027 = vpow2.f32 %v3704_v41  ;;  %v3706_v5 = vmul.f32 1.442695, %v3699_v30 }
0x1347   : > { %7029 = vpow2.f32 %v3706_v5 }
0x1348   : > { %v3690_v42 = vpop.xlane.xlu0 %3689 }
0x1349   : > { %v3700_v62 = vsub.f32 %v3681_v24, %v3690_v42  ;;  %v9168_v42 = vpack.c.bf16 %v7862_v26, %v7860_v23  ;;  %v9172_v23 = vpack.c.bf16 %v8324_v16, %v8322_v27  ;;  %v9173_v26 = vpack.c.bf16 %v7874_v48, %v7872_v44 }
0x134b   : > { %v3708_v2 = vmul.f32 1.442695, %v3700_v62  ;;  %v9169_v62 = vpack.c.bf16 %v8087_v52, %v8085_v29  ;;  %v9174_v29 = vpack.c.bf16 %v8330_v32, %v8328_v39 }
0x134c   : > { %v3692_v0 = vpop.xlane.xlu0 %3691 }
0x134d   : > { %7031 = vpow2.f32 %v3708_v2  ;;  %v3701_v12 = vsub.f32 %v3682_v45, %v3692_v0  ;;  %v9170_v2 = vpack.c.bf16 %v8318_v28, %v8316_v6 }
0x134f   : > { %v7028_v33 = vpop.eup %7027  ;;  %v3710_v49 = vmul.f32 1.442695, %v3701_v12 }
0x1350   : > { %3716 = vadd.xlane.f32.xlu1 %v7028_v33  ;;  %v3694_v13 = vpop.xlane.xlu1 %3693 }
0x1351   : > { %7033 = vpow2.f32 %v3710_v49  ;;  %v3702_v35 = vsub.f32 %v3683_v10, %v3694_v13  ;;  %v7030_v53 = vpop.eup %7029 }
0x1353   : > { %v3712_v21 = vmul.f32 1.442695, %v3702_v35  ;;  %v3697_v40 = vpop.xlane.xlu0 %3696 }
0x1354   : > { %v3703_v31 = vsub.f32 %v3684_v22, %v3697_v40  ;;  %3718 = vadd.xlane.f32.xlu1 %v7030_v53  ;;  %v3768_v12 = vpop.permute.xlu1 %3767 }
0x1355   : > { %7035 = vpow2.f32 %v3712_v21 }
0x1356   : > { %v3714_v46 = vmul.f32 1.442695, %v3703_v31 }
0x1357   : > { %v7032_v25 = vpop.eup %7031  ;;  %v3766_v41 = vpop.permute.xlu0 %3765 }
0x1358   : > { %7037 = vpow2.f32 %v3714_v46  ;;  %3720 = vadd.xlane.f32.xlu1 %v7032_v25  ;;  %6580 = vmatpush3.bf16.msra.mxu0 %v3766_v41 }
0x1359   : > { %6581 = vmatprep.subr.bf16.mxu0 %v9165_v36 }
0x135b   : > { %v7034_v45 = vpop.eup %7033  ;;  %v3770_v24 = vpop.permute.xlu0 %3769 }
0x135c   : > { %3722 = vadd.xlane.f32.xlu0 %v7034_v45  ;;  %6582 = vmatpush3.bf16.msra.mxu0 %v3768_v12 }
0x135d   : > { %6583 = vmatprep.subr.bf16.mxu0 %v9165_v36 }
0x135f   : > { %v7036_v49 = vpop.eup %7035  ;;  %v6654_v13 = vpop.permute.xlu0 %6653 }
0x1360   : > { %3724 = vadd.xlane.f32.xlu1 %v7036_v49  ;;  %6584 = vmatpush3.bf16.msra.mxu0 %v3770_v24  ;;  %v6655_v10 = vunpack.i.l.bf16 %v6654_v13  ;;  %v6656_v5 = vunpack.i.h.bf16 %v6654_v13 }
0x1361   : > { %6585 = vmatprep.subr.bf16.mxu0 %v9165_v36 }
0x1362   : > { %v8450_v22 = vpop.eup %7037 }
0x1363   : > { %v3726_v30 = vsel %vm1483_vm12, %v8450_v22, 0.0 }
0x1364   : > { %3727 = vadd.xlane.f32.xlu1 %v3726_v30  ;;  %6586 = vmatpush3.bf16.msra.mxu0 %v6655_v10 }
0x1365   : > { %6587 = vmatprep.subr.bf16.mxu0 %v9165_v36 }
0x1368   : > { %6588 = vmatpush3.bf16.msra.mxu0 %v6656_v5  ;;  %v6753_v5 = vld [vmem:[%s9130_s3 + $0x40] sm:$0xff]  }
0x1369   : > { %6589 = vmatprep.subr.bf16.mxu0 %v9165_v36 }
0x1372   : > { %3777 = vrot.lane.b32.xlu0 %v8238_v8, %s7136_s25 }
0x1375   : > { %3775 = vrot.lane.b32.xlu1 %v8238_v8, %s7136_s25 }
0x1376   : > { %3779 = vrot.lane.b32.xlu0 %v8238_v8, %s7136_s25  ;;  %v9171_v8 = vpack.c.bf16 %v7868_v14, %v7866_v56 }
0x1379   : > { %1935 = vrot.lane.b32.xlu1 %v9168_v42, %s7136_s25 }
0x137a   : > { %2574 = vrot.lane.b32.xlu0 %v9169_v62, %s7136_s25 }
0x137d   : > { %3213 = vrot.lane.b32.xlu1 %v9170_v2, %s7136_s25  ;;  %v6754_v2 = vld [vmem:[%s9130_s3] sm:$0xff]  }
0x1381   : > { %1937 = vrot.lane.b32.xlu1 %v9171_v8, %s7136_s25 }
0x1385   : > { %3215 = vrot.lane.b32.xlu1 %v9172_v23, %s7136_s25 }
0x1389   : > { %1939 = vrot.lane.b32.xlu1 %v9173_v26, %s7136_s25 }
0x138d   : > { %3217 = vrot.lane.b32.xlu1 %v9174_v29, %s7136_s25  ;;  %v6755_v29 = vld [vmem:[%s9130_s3 + $0x48] sm:$0xff]  }
0x13dd   : > { %v3717_v52 = vpop.xlane.xlu1 %3716 }
0x13de   : > { %7039 = vrcp.f32 %v3717_v52  ;;  %v6756_v52 = vld [vmem:[%s9130_s3 + $0x8] sm:$0xff]  }
0x13e1   : > { %v3719_v56 = vpop.xlane.xlu1 %3718 }
0x13e2   : > { %7041 = vrcp.f32 %v3719_v56 }
0x13e5   : > { %v3721_v14 = vpop.xlane.xlu1 %3720 }
0x13e6   : > { %7043 = vrcp.f32 %v3721_v14 }
0x13e8   : > { %v7040_v6 = vpop.eup %7039 }
0x13e9   : > { %v3741_v28 = vmul.f32 %v7040_v6, %v7028_v33  ;;  %v3723_v27 = vpop.xlane.xlu0 %3722  ;;  %v6757_v6 = vld [vmem:[%s9130_s3 + $0x50] sm:$0xff]  }
0x13ea   : > { %7045 = vrcp.f32 %v3723_v27  ;;  %v6758_v27 = vld [vmem:[%s9130_s3 + $0x10] sm:$0xff]  }
0x13eb   : > { %5703 = vst [vmem:[%s7672_s29 + $0x150] sm:$0xff] %v3741_v28 }
0x13ec   : > { %v7042_v44 = vpop.eup %7041 }
0x13ed   : > { %v3742_v48 = vmul.f32 %v7042_v44, %v7030_v53  ;;  %v3725_v16 = vpop.xlane.xlu1 %3724  ;;  %v3778_v0 = vpop.permute.xlu0 %3777  ;;  %v9175_v53 = vpack.c.bf16 %v7980_v55, %v7978_v63 }
0x13ee   : > { %7047 = vrcp.f32 %v3725_v16 }
0x13ef   : > { %5704 = vst [vmem:[%s7672_s29 + $0x158] sm:$0xff] %v3742_v48  ;;  %v3754_v26 = vpack.c.bf16 %v3742_v48, %v3741_v28 }
0x13f0   : > { %v7044_v39 = vpop.eup %7043 }
0x13f1   : > { %v3728_v32 = vpop.xlane.xlu1 %3727  ;;  %v3780_v35 = vpop.permute.xlu0 %3779  ;;  %v8492_v21 = vmul.f32 %v7044_v39, %v7032_v25 }
0x13f2   : > { %7049 = vrcp.f32 %v3728_v32 }
0x13f3   : > { %5705 = vst [vmem:[%s7672_s29 + $0x160] sm:$0xff] %v8492_v21 }
0x13f4   : > { %v7046_v40 = vpop.eup %7045 }
0x13f5   : > { %v3776_v33 = vpop.permute.xlu1 %3775  ;;  %v2575_v31 = vpop.permute.xlu0 %2574  ;;  %v3744_v46 = vmul.f32 %v7046_v40, %v7034_v45  ;;  %v9176_v45 = vpack.c.bf16 %v7744_v37, %v7742_v18  ;;  %v9177_v37 = vpack.c.bf16 %v8207_v7, %v8205_v59  ;;  %v9178_v7 = vpack.c.bf16 %v7750_v9, %v7748_v4 }
0x13f6   : > { %v2582_v41 = vsel %vm791_vm0, %v9175_v53, %v2575_v31  ;;  %6590 = vmatpush3.bf16.msra.mxu0 %v3776_v33  ;;  %v9179_v9 = vpack.c.bf16 %v8213_v54, %v8211_v51  ;;  %v1976_v51 = vld [vmem:[#allocation5 + $0x50] sm:$0x7]  ;;  %v9180_v54 = vpack.c.bf16 %v7756_v15, %v7754_v20  ;;  %v6761_v33 = vld [vmem:[%s9130_s3 + $0x60] sm:$0xff]   ;;  %v3254_v31 = vld [vmem:[#allocation5 + $0x58] sm:$0x7] }
0x13f7   : > { %v5649_v12 = vcombine.low %v2582_v41, %v2582_v41  ;;  %v5650_v24 = vcombine.high %v2582_v41, %v2582_v41  ;;  %6591 = vmatprep.subr.bf16.mxu0 %v9165_v36  ;;  %5706 = vst [vmem:[%s7672_s29 + $0x168] sm:$0xff] %v3744_v46  ;;  %v3755_v16 = vpack.c.bf16 %v3744_v46, %v8492_v21 }
0x13f8   : > { %v7048_v25 = vpop.eup %7047  ;;  %v9181_v46 = vpack.c.bf16 %v8219_v47, %v8217_v38  ;;  %v6767_v47 = vld [vmem:[%s9130_s3 + $0x28] sm:$0xff]  }
0x13f9   : > { %2610 = vst [vmem:[#allocation5 + $0x4] sm:$0xf] %v5649_v12  ;;  %2611 = vst [vmem:[#allocation5 + $0x14] sm:$0xf] %v5650_v24  ;;  %v1936_v13 = vpop.permute.xlu1 %1935  ;;  %v8502_v10 = vmul.f32 %v7048_v25, %v7036_v49  ;;  %v6766_v25 = vld [vmem:[%s9130_s3 + $0x68] sm:$0xff]  }
0x13fa   : > { %v1943_v63 = vsel %vm791_vm0, %v9176_v45, %v1936_v13  ;;  %6592 = vmatpush3.bf16.msra.mxu0 %v3778_v0  ;;  %v6759_v0 = vld [vmem:[%s9130_s3 + $0x58] sm:$0xff]   ;;  %v6769_v45 = vld [vmem:[%s9130_s3 + $0x30] sm:$0xff]  }
0x13fb   : > { %v5619_v55 = vcombine.low %v1943_v63, %v1943_v63  ;;  %v5620_v30 = vcombine.high %v1943_v63, %v1943_v63  ;;  %6593 = vmatprep.subr.bf16.mxu0 %v9165_v36  ;;  %5707 = vst [vmem:[%s7672_s29 + $0x170] sm:$0xff] %v8502_v10  ;;  %v6770_v63 = vld [vmem:[%s9130_s3 + $0x78] sm:$0xff]  }
0x13fc   : > { %v7050_v42 = vpop.eup %7049 }
0x13fd   : > { %1971 = vst [vmem:[#allocation5] sm:$0xf] %v5619_v55  ;;  %1972 = vst [vmem:[#allocation5 + $0x10] sm:$0xf] %v5620_v30  ;;  %v3214_v49 = vpop.permute.xlu1 %3213  ;;  %v8515_v18 = vmul.f32 %v7050_v42, %v8450_v22  ;;  %v6771_v55 = vld [vmem:[%s9130_s3 + $0x38] sm:$0xff]   ;;  %v6773_v42 = vld [vmem:[%s9130_s3 + $0x80] sm:$0xff]  }
0x13fe   : > { %v3221_v62 = vsel %vm791_vm0, %v9177_v37, %v3214_v49  ;;  %6594 = vmatpush3.bf16.msra.mxu0 %v3780_v35  ;;  %v6760_v35 = vld [vmem:[%s9130_s3 + $0x18] sm:$0xff]   ;;  %v6774_v49 = vld [vmem:[%s9130_s3 + $0xc8] sm:$0xff]   ;;  %v6776_v37 = vld [vmem:[%s9130_s3 + $0xd0] sm:$0xff]  }
0x13ff   : > { %v5679_v8 = vcombine.low %v3221_v62, %v3221_v62  ;;  %v5680_v23 = vcombine.high %v3221_v62, %v3221_v62  ;;  %6023 = vmatprep.subr.bf16.mxu0 %v6753_v5  ;;  %5708 = vst [vmem:[%s7672_s29 + $0x178] sm:$0x1f] %v8515_v18  ;;  %v3756_v24 = vpack.c.bf16 %v8515_v18, %v8502_v10  ;;  %v6768_v10 = vld [vmem:[%s9130_s3 + $0x70] sm:$0xff]   ;;  %v6772_v5 = vld [vmem:[%s9130_s3 + $0xc0] sm:$0xff]   ;;  %v6775_v18 = vld [vmem:[%s9130_s3 + $0x88] sm:$0xff]   ;;  %s5761_s29 = sld [smem:[#allocation6 + $0x2]] }
0x1400   : > { %v6765_v13 = vld [vmem:[#allocation5 + $0x4] ss:$16 sps:$4 sm:$0xff]   ;;  %6057 = vmatprep.subr.bf16.mxu1 %v6772_v5 }
0x1401   : > { %3249 = vst [vmem:[#allocation5 + $0x8] sm:$0xf] %v5679_v8  ;;  %3250 = vst [vmem:[#allocation5 + $0x18] sm:$0xf] %v5680_v23  ;;  %v1938_v59 = vpop.permute.xlu1 %1937  ;;  %6596 = vmatmul.mubr.bf16.vlgmr.msra.gmra.mrb[120].mxu0 %v3754_v26  ;;  %6058 = vmatpush3.bf16.msra.mxu1 %v6773_v42  ;;  %v6777_v62 = vld [vmem:[%s9130_s3 + $0x90] sm:$0xff]   ;;  %v6779_v8 = vld [vmem:[%s9130_s3 + $0x98] sm:$0xff]  }
0x1402   : > { %v1946_v22 = vsel %vm791_vm0, %v9178_v7, %v1938_v59  ;;  %6024 = vmatpush3.bf16.msra.mxu0 %v6754_v2  ;;  %6599 = vmatprep.mubr.msk.bf16.mxu0 %vm7135_vm1, %v9165_v36  ;;  %v6778_v2 = vld [vmem:[%s9130_s3 + $0xd8] sm:$0xff]   ;;  %v6780_v23 = vld [vmem:[%s9130_s3 + $0xe0] sm:$0xff]   ;;  %v6783_v59 = vld [vmem:[%s9130_s3 + $0xa8] sm:$0xff]  }
0x1403   : > { %v5621_v56 = vcombine.low %v1946_v22, %v1946_v22  ;;  %v5622_v14 = vcombine.high %v1946_v22, %v1946_v22  ;;  %6025 = vmatprep.subr.bf16.mxu0 %v6755_v29  ;;  %6059 = vmatprep.subr.bf16.mxu1 %v6774_v49  ;;  %v6781_v26 = vld [vmem:[%s9130_s3 + $0xa0] sm:$0xff]   ;;  %v6782_v29 = vld [vmem:[%s9130_s3 + $0xe8] sm:$0xff]   ;;  %v6784_v7 = vld [vmem:[%s9130_s3 + $0xf0] sm:$0xff]  }
0x1404   : > { %v6763_v30 = vld [vmem:[#allocation5] ss:$16 sps:$4 sm:$0xff]  }
0x1405   : > { %1973 = vst [vmem:[#allocation5 + $0x20] sm:$0xf] %v5621_v56  ;;  %1974 = vst [vmem:[#allocation5 + $0x30] sm:$0xf] %v5622_v14  ;;  %v3216_v4 = vpop.permute.xlu1 %3215  ;;  %6060 = vmatpush3.bf16.msra.mxu1 %v6775_v18  ;;  %v6785_v22 = vld [vmem:[%s9130_s3 + $0xb0] sm:$0xff]  }
0x1406   : > { %v3224_v28 = vsel %vm791_vm0, %v9179_v9, %v3216_v4  ;;  %6026 = vmatpush3.bf16.msra.mxu0 %v6756_v52  ;;  %6061 = vmatprep.subr.bf16.mxu1 %v6776_v37 }
0x1407   : > { %v5681_v44 = vcombine.low %v3224_v28, %v3224_v28  ;;  %v5682_v48 = vcombine.high %v3224_v28, %v3224_v28  ;;  %6027 = vmatprep.subr.bf16.mxu0 %v6757_v6  ;;  %v6786_v6 = vld [vmem:[%s9130_s3 + $0xf8] sm:$0xff]  }
0x1408   : > { %v6787_v28 = vld [vmem:[%s9130_s3 + $0xb8] sm:$0xff]  }
0x1409   : > { %3251 = vst [vmem:[#allocation5 + $0x28] sm:$0xf] %v5681_v44  ;;  %3252 = vst [vmem:[#allocation5 + $0x38] sm:$0xf] %v5682_v48  ;;  %v1940_v39 = vpop.permute.xlu1 %1939  ;;  %6600 = vmatmul.mubr.bf16.gmra.mrb[124].mxu0 %v3755_v16  ;;  %6062 = vmatpush3.bf16.msra.mxu1 %v6777_v62  ;;  %v9182_v44 = vpack.c.bf16 %v8093_v61, %v8091_v60  ;;  %v3893_v62 = vld [vmem:[#allocation5 + $0x5c] sm:$0x7] }
0x140a   : > { %v1949_v32 = vsel %vm791_vm0, %v9180_v54, %v1940_v39  ;;  %6028 = vmatpush3.bf16.msra.mxu0 %v6758_v27  ;;  %6603 = vmatprep.mubr.msk.bf16.mxu0 %vm7135_vm1, %v9165_v36  ;;  %v6762_v36 = vld [vmem:[%s9130_s3 + $0x20] sm:$0xff]   ;;  %v9183_v54 = vpack.c.bf16 %v8099_v3, %v8097_v19 }
0x140b   : > { %v5623_v21 = vcombine.low %v1949_v32, %v1949_v32  ;;  %v5624_v40 = vcombine.high %v1949_v32, %v1949_v32  ;;  %6029 = vmatprep.subr.bf16.mxu0 %v6759_v0  ;;  %6063 = vmatprep.subr.bf16.mxu1 %v6778_v2  ;;  %v9189_v2 = vld [vmem:[#allocation17_spill] sm:$0xff] }
0x140c   : > { %v6793_v37 = vld [vmem:[#allocation5 + $0x20] ss:$16 sps:$4 sm:$0xff]  }
0x140d   : > { %1975 = vst [vmem:[#allocation5 + $0x40] sm:$0xf] %v5623_v21  ;;  %v1977_v20 = vsel %vm7447_vm6, %v5624_v40, %v1976_v51  ;;  %v3218_v15 = vpop.permute.xlu1 %3217  ;;  %6064 = vmatpush3.bf16.msra.mxu1 %v6779_v8  ;;  %v9190_v8 = vld [vmem:[#allocation16_spill] sm:$0xff] }
0x140e   : > { %1978 = vst [vmem:[#allocation5 + $0x50] sm:$0x7] %v1977_v20  ;;  %v3227_v53 = vsel %vm791_vm0, %v9181_v46, %v3218_v15  ;;  %6030 = vmatpush3.bf16.msra.mxu0 %v6760_v35  ;;  %6065 = vmatprep.subr.bf16.mxu1 %v6780_v23  ;;  %v9191_v23 = vpack.c.bf16 %v9189_v2, %v9190_v8 }
0x140f   : > { %v5683_v41 = vcombine.low %v3227_v53, %v3227_v53  ;;  %v5684_v12 = vcombine.high %v3227_v53, %v3227_v53  ;;  %6031 = vmatprep.subr.bf16.mxu0 %v6761_v33  ;;  %v9184_v53 = vpack.c.bf16 %v8409_v1, %v8407_v34  ;;  %v9186_v34 = vpack.c.bf16 %v8415_v58, %v8413_v17 }
0x1411   : > { %3253 = vst [vmem:[#allocation5 + $0x48] sm:$0xf] %v5683_v41  ;;  %v3255_v38 = vsel %vm7447_vm6, %v5684_v12, %v3254_v31  ;;  %6604 = vmatmul.mubr.bf16.gmra.mrb[128].mxu0 %v3756_v24  ;;  %6066 = vmatpush3.bf16.msra.mxu1 %v6781_v26  ;;  %v9185_v12 = vpack.c.bf16 %v7986_v50, %v7984_v43  ;;  %v2615_v43 = vld [vmem:[#allocation5 + $0x54] sm:$0x7] }
0x1412   : > { %3256 = vst [vmem:[#allocation5 + $0x58] sm:$0x7] %v3255_v38  ;;  %6032 = vmatpush3.bf16.msra.mxu0 %v6762_v36  ;;  %4256 = vmatprep.mubr.bf16.mxu0 %v6765_v13  ;;  %v9187_v50 = vld [vmem:[#allocation15_spill] sm:$0xff] }
0x1413   : > { %6033 = vmatprep.subr.bf16.mxu0 %v6766_v25  ;;  %6067 = vmatprep.subr.bf16.mxu1 %v6782_v29 }
0x1415   : > { %6068 = vmatpush3.bf16.msra.mxu1 %v6783_v59 }
0x1416   : > { %6034 = vmatpush3.bf16.msra.mxu0 %v6767_v47  ;;  %6069 = vmatprep.subr.bf16.mxu1 %v6784_v7 }
0x1417   : > { %6035 = vmatprep.subr.bf16.mxu0 %v6768_v10 }
0x1419   : > { %6070 = vmatpush3.bf16.msra.mxu1 %v6785_v22  ;;  %v6796_v22 = vld [vmem:[#allocation5 + $0x28] ss:$16 sps:$4 sm:$0xff]  }
0x141a   : > { %6036 = vmatpush3.bf16.msra.mxu0 %v6769_v45  ;;  %6071 = vmatprep.subr.bf16.mxu1 %v6786_v6  ;;  %v6788_v45 = vld [vmem:[#allocation5 + $0x8] ss:$16 sps:$4 sm:$0xff]   ;;  %v8682_v6 = vld [vmem:[#allocation3 + $0x60] sm:$0xff] }
0x141b   : > { %6037 = vmatprep.subr.bf16.mxu0 %v6770_v63 }
0x141d   : > { %6072 = vmatpush3.bf16.msra.mxu1 %v6787_v28  ;;  %v9192_v28 = vld [vmem:[#allocation9_spill] sm:$0xff] }
0x141e   : > { %6038 = vmatpush3.bf16.msra.mxu0 %v6771_v55 }
0x1421   : > { %4257 = vmatmul.mubr.bf16.vlgmr.msra.gmra.mrb[132].mxu0 %v6763_v30  ;;  %v9188_v30 = vpack.c.bf16 %v7992_v57, %v9187_v50 }
0x14d4   : > { %v3823_v52 = vpop.f32.mrb[120].mxu0 }
0x14d5   : > { %v6597_v56 = vpop.f32.mrb[121].mxu0 }
0x14d6   : > { %v3826_v14 = vpop.f32.mrb[122].mxu0  ;;  %v6799_v56 = vld [vmem:[#allocation5 + $0x40] ss:$16 sps:$4 sm:$0x7f]  }
0x14d7   : > { %v3846_v4 = vpack.c.bf16 %v3826_v14, %v3823_v52  ;;  %v6598_v9 = vpop.f32.mrb[123].mxu0 }
0x14d9   : > { %3852 = vrot.lane.b32.xlu0 %v3846_v4, %s7136_s25  ;;  %v6802_v4 = vld [vmem:[#allocation5 + $0x48] ss:$16 sps:$4 sm:$0x7f]  }
0x14dc   : > { %v3831_v27 = vpop.f32.mrb[124].mxu0 }
0x14dd   : > { %2576 = vrot.lane.b32.xlu0 %v9182_v44, %s7136_s25  ;;  %v6601_v48 = vpop.f32.mrb[125].mxu0 }
0x14de   : > { %v3834_v16 = vpop.f32.mrb[126].mxu0 }
0x14df   : > { %v3847_v0 = vpack.c.bf16 %v3834_v16, %v3831_v27  ;;  %v6602_v39 = vpop.f32.mrb[127].mxu0 }
0x14e0   : > { %v9193_v39 = vld [vmem:[#allocation10_spill] sm:$0xff] }
0x14e1   : > { %3854 = vrot.lane.b32.xlu0 %v3847_v0, %s7136_s25 }
0x14e4   : > { %v3839_v51 = vpop.f32.mrb[128].mxu0 }
0x14e5   : > { %2578 = vrot.lane.b32.xlu0 %v9183_v54, %s7136_s25  ;;  %v6605_v32 = vpop.f32.mrb[129].mxu0 }
0x14e6   : > { %v3842_v35 = vpop.f32.mrb[130].mxu0 }
0x14e7   : > { %v3848_v21 = vpack.c.bf16 %v3842_v35, %v3839_v51  ;;  %v6606_v40 = vpop.f32.mrb[131].mxu0 }
0x14e9   : > { %3856 = vrot.lane.b32.xlu0 %v3848_v21, %s7136_s25 }
0x14f4   : > { %v6039_v60 = vpop.f32.mrb[132].mxu0 }
0x14f5   : > { %v6040_v61 = vpop.f32.mrb[133].mxu0 }
0x14f6   : > { %v8654_v33 = vadd.f32 %v6040_v61, %v6039_v60  ;;  %v6042_v20 = vpop.f32.mrb[134].mxu0 }
0x14f7   : > { %v6043_v15 = vpop.f32.mrb[135].mxu0 }
0x14f8   : > { %v8656_v31 = vadd.f32 %v6043_v15, %v6042_v20  ;;  %v4259_v27 = vadd.f32 %v8654_v33, %v9192_v28 }
0x14fa   : > { %v4262_v51 = vadd.f32 %v8656_v31, %v9193_v39  ;;  %v9194_v31 = vld [vmem:[#allocation11_spill] sm:$0xff] }
0x154b   : > { %v3853_v46 = vpop.permute.xlu0 %3852 }
0x154c   : > { %v3860_v19 = vsel %vm791_vm0, %v9184_v53, %v3853_v46 }
0x154d   : > { %v5709_v3 = vcombine.low %v3860_v19, %v3860_v19  ;;  %v5710_v36 = vcombine.high %v3860_v19, %v3860_v19 }
0x154f   : > { %3888 = vst [vmem:[#allocation5 + $0xc] sm:$0xf] %v5709_v3  ;;  %3889 = vst [vmem:[#allocation5 + $0x1c] sm:$0xf] %v5710_v36  ;;  %v2577_v41 = vpop.permute.xlu0 %2576 }
0x1550   : > { %v2585_v24 = vsel %vm791_vm0, %v9185_v12, %v2577_v41  ;;  %v9195_v12 = vld [vmem:[#allocation12_spill] sm:$0xff] }
0x1551   : > { %v5651_v25 = vcombine.low %v2585_v24, %v2585_v24  ;;  %v5652_v13 = vcombine.high %v2585_v24, %v2585_v24 }
0x1553   : > { %2612 = vst [vmem:[#allocation5 + $0x24] sm:$0xf] %v5651_v25  ;;  %2613 = vst [vmem:[#allocation5 + $0x34] sm:$0xf] %v5652_v13  ;;  %v3855_v38 = vpop.permute.xlu0 %3854 }
0x1554   : > { %v3863_v1 = vsel %vm791_vm0, %v9186_v34, %v3855_v38 }
0x1555   : > { %v5711_v47 = vcombine.low %v3863_v1, %v3863_v1  ;;  %v5712_v10 = vcombine.high %v3863_v1, %v3863_v1 }
0x1556   : > { %v6790_v55 = vld [vmem:[#allocation5 + $0xc] ss:$16 sps:$4 sm:$0xff]  }
0x1557   : > { %3890 = vst [vmem:[#allocation5 + $0x2c] sm:$0xf] %v5711_v47  ;;  %3891 = vst [vmem:[#allocation5 + $0x3c] sm:$0xf] %v5712_v10  ;;  %v2579_v63 = vpop.permute.xlu0 %2578  ;;  %4313 = vmatprep.mubr.bf16.mxu1 %v6790_v55 }
0x1558   : > { %v2588_v5 = vsel %vm791_vm0, %v9188_v30, %v2579_v63  ;;  %4314 = vmatmul.mubr.bf16.vlgmr.msra.gmra.mrb[132].mxu1 %v6788_v45  ;;  %v9196_v30 = vld [vmem:[#allocation13_spill] sm:$0xff] }
0x1559   : > { %v5653_v42 = vcombine.low %v2588_v5, %v2588_v5  ;;  %v5654_v49 = vcombine.high %v2588_v5, %v2588_v5 }
0x155a   : > { %v6791_v17 = vld [vmem:[#allocation5 + $0x24] ss:$16 sps:$4 sm:$0xff]  }
0x155b   : > { %2614 = vst [vmem:[#allocation5 + $0x44] sm:$0xf] %v5653_v42  ;;  %v2616_v58 = vsel %vm7447_vm6, %v5654_v49, %v2615_v43  ;;  %v3857_v18 = vpop.permute.xlu0 %3856  ;;  %4264 = vmatprep.mubr.bf16.mxu0 %v6791_v17 }
0x155c   : > { %2617 = vst [vmem:[#allocation5 + $0x54] sm:$0x7] %v2616_v58  ;;  %v3866_v57 = vsel %vm791_vm0, %v9191_v23, %v3857_v18  ;;  %4265 = vmatmul.mubr.bf16.gmra.mrb[136].mxu0 %v6793_v37  ;;  %v9197_v18 = vld [vmem:[#allocation14_spill] sm:$0xff] }
0x155d   : > { %v5713_v26 = vcombine.low %v3866_v57, %v3866_v57  ;;  %v5714_v29 = vcombine.high %v3866_v57, %v3866_v57 }
0x155e   : > { %v6794_v59 = vld [vmem:[#allocation5 + $0x2c] ss:$16 sps:$4 sm:$0xff]  }
0x155f   : > { %3892 = vst [vmem:[#allocation5 + $0x4c] sm:$0xf] %v5713_v26  ;;  %v3894_v7 = vsel %vm7447_vm6, %v5714_v29, %v3893_v62  ;;  %4321 = vmatprep.mubr.bf16.mxu1 %v6794_v59 }
0x1560   : > { %3895 = vst [vmem:[#allocation5 + $0x5c] sm:$0x7] %v3894_v7  ;;  %4322 = vmatmul.mubr.bf16.gmra.mrb[136].mxu1 %v6796_v22 }
0x1563   : > { %v6797_v52 = vld [vmem:[#allocation5 + $0x44] ss:$16 sps:$4 sm:$0x7f]  }
0x1564   : > { %4272 = vmatprep.mubr.bf16.mxu0 %v6797_v52 }
0x1565   : > { %4273 = vmatmul.mubr.bf16.gmra.mrb[140].mxu0 %v6799_v56 }
0x1566   : > { %4829 = vmatprep.mubr.bf16.mxu0 %v8682_v6 }
0x1567   : > { %v6800_v14 = vld [vmem:[#allocation5 + $0x4c] ss:$16 sps:$4 sm:$0x7f]  }
0x1568   : > { %4329 = vmatprep.mubr.bf16.mxu1 %v6800_v14 }
0x1569   : > { %4330 = vmatmul.mubr.bf16.gmra.mrb[140].mxu1 %v6802_v4 }
0x156a   : > { %4892 = vmatprep.mubr.bf16.mxu1 %v8682_v6 }
0x162b   : > { %v6073_v11 = vpop.f32.mrb[132].mxu1 }
0x162c   : > { %v6074_v9 = vpop.f32.mrb[133].mxu1 }
0x162d   : > { %v6075_v44 = vadd.f32 %v6074_v9, %v6073_v11  ;;  %v6076_v48 = vpop.f32.mrb[134].mxu1 }
0x162e   : > { %v6077_v16 = vpop.f32.mrb[135].mxu1 }
0x162f   : > { %v6045_v0 = vpop.f32.mrb[136].mxu0  ;;  %v8690_v54 = vadd.f32 %v6075_v44, %v4259_v27  ;;  %v6078_v32 = vadd.f32 %v6077_v16, %v6076_v48 }
0x1630   : > { %v6046_v35 = vpop.f32.mrb[137].mxu0 }
0x1631   : > { %v6047_v21 = vadd.f32 %v6046_v35, %v6045_v0  ;;  %v6048_v40 = vpop.f32.mrb[138].mxu0  ;;  %v8692_v60 = vadd.f32 %v6078_v32, %v4262_v51  ;;  %v4338_v20 = vsel %vm791_vm0, %v8690_v54, 0.0 }
0x1632   : > { %v6049_v61 = vpop.f32.mrb[139].mxu0  ;;  %4339 = vadd.xlane.f32.xlu1 %v4338_v20 }
0x1633   : > { %v6050_v33 = vadd.f32 %v6049_v61, %v6048_v40  ;;  %v6079_v15 = vpop.f32.mrb[136].mxu1  ;;  %v4341_v46 = vsel %vm791_vm0, %v8692_v60, 0.0  ;;  %v4267_v19 = vadd.f32 %v6047_v21, %v9194_v31 }
0x1634   : > { %v6080_v53 = vpop.f32.mrb[137].mxu1  ;;  %4342 = vadd.xlane.f32.xlu0 %v4341_v46 }
0x1635   : > { %v6081_v3 = vadd.f32 %v6080_v53, %v6079_v15  ;;  %v6082_v36 = vpop.f32.mrb[138].mxu1  ;;  %v4270_v24 = vadd.f32 %v6050_v33, %v9195_v12  ;;  %v6811_v12 = vld [vmem:[%s9135_s8 + $0x24] ss:$16 sps:$4 sm:$0xff]  }
0x1636   : > { %v6083_v41 = vpop.f32.mrb[139].mxu1 }
0x1637   : > { %v8700_v25 = vadd.f32 %v6081_v3, %v4267_v19  ;;  %v6084_v13 = vadd.f32 %v6083_v41, %v6082_v36  ;;  %v6803_v19 = vld [vmem:[%s9135_s8] ss:$16 sps:$4 sm:$0xff]   ;;  %v6805_v3 = vld [vmem:[%s9135_s8 + $0x4] ss:$16 sps:$4 sm:$0xff]   ;;  %v6806_v36 = vld [vmem:[%s9135_s8 + $0x8] ss:$16 sps:$4 sm:$0xff]  }
0x1638   : > { %v6051_v38 = vpop.f32.mrb[140].mxu0  ;;  %v6808_v41 = vld [vmem:[%s9135_s8 + $0xc] ss:$16 sps:$4 sm:$0xff]   ;;  %4797 = vmatprep.subr.bf16.mxu0 %v6805_v3 }
0x1639   : > { %v6052_v34 = vpop.f32.mrb[141].mxu0  ;;  %v8702_v1 = vadd.f32 %v6084_v13, %v4270_v24  ;;  %v4344_v45 = vsel %vm791_vm0, %v8700_v25, 0.0  ;;  %v6814_v24 = vld [vmem:[%s9135_s8 + $0x2c] ss:$16 sps:$4 sm:$0xff]   ;;  %4798 = vmatpush1.bf16.msra.mxu0 %v6803_v19  ;;  %4860 = vmatprep.subr.bf16.mxu1 %v6808_v41  ;;  %v6809_v13 = vld [vmem:[%s9135_s8 + $0x20] ss:$16 sps:$4 sm:$0xff]  }
0x163a   : > { %v6053_v47 = vadd.f32 %v6052_v34, %v6051_v38  ;;  %v6054_v10 = vpop.f32.mrb[142].mxu0  ;;  %4345 = vadd.xlane.f32.xlu0 %v4344_v45  ;;  %4861 = vmatpush1.bf16.msra.mxu1 %v6806_v36  ;;  %v6812_v38 = vld [vmem:[%s9135_s8 + $0x28] ss:$16 sps:$4 sm:$0xff]   ;;  %v6817_v34 = vld [vmem:[%s9135_s8 + $0x44] ss:$16 sps:$4 sm:$0xff]  }
0x163b   : > { %v6055_v63 = vpop.f32.mrb[143].mxu0  ;;  %v4347_v17 = vsel %vm791_vm0, %v8702_v1, 0.0  ;;  %4799 = vmatprep.subr.bf16.mxu0 %v6811_v12  ;;  %4862 = vmatprep.subr.bf16.mxu1 %v6814_v24  ;;  %v6818_v45 = vld [vmem:[%s9135_s8 + $0x48] ss:$16 sps:$4 sm:$0xff]  }
0x163c   : > { %v6056_v55 = vadd.f32 %v6055_v63, %v6054_v10  ;;  %v6085_v43 = vpop.f32.mrb[140].mxu1  ;;  %v4275_v5 = vadd.f32 %v6053_v47, %v9196_v30  ;;  %v6820_v47 = vld [vmem:[%s9135_s8 + $0x4c] ss:$16 sps:$4 sm:$0xff]   ;;  %v6815_v10 = vld [vmem:[%s9135_s8 + $0x40] ss:$16 sps:$4 sm:$0xff]  }
0x163d   : > { %v6086_v50 = vpop.f32.mrb[141].mxu1  ;;  %4800 = vmatpush1.bf16.msra.mxu0 %v6809_v13  ;;  %v6823_v63 = vld [vmem:[%s9135_s8 + $0x64] ss:$16 sps:$4 sm:$0xff]  }
0x163e   : > { %v6087_v42 = vadd.f32 %v6086_v50, %v6085_v43  ;;  %v6088_v49 = vpop.f32.mrb[142].mxu1  ;;  %4348 = vadd.xlane.f32.xlu0 %v4347_v17  ;;  %v4278_v37 = vadd.f32 %v6056_v55, %v9197_v18  ;;  %4863 = vmatpush1.bf16.msra.mxu1 %v6812_v38  ;;  %v6826_v55 = vld [vmem:[%s9135_s8 + $0x6c] ss:$16 sps:$4 sm:$0xff]   ;;  %v6821_v43 = vld [vmem:[%s9135_s8 + $0x60] ss:$16 sps:$4 sm:$0xff]  }
0x163f   : > { %v6089_v58 = vpop.f32.mrb[143].mxu1  ;;  %4801 = vmatprep.subr.bf16.mxu0 %v6817_v34  ;;  %4864 = vmatprep.subr.bf16.mxu1 %v6820_v47  ;;  %v6824_v50 = vld [vmem:[%s9135_s8 + $0x68] ss:$16 sps:$4 sm:$0xff]   ;;  %v6827_v30 = vld [vmem:[%s9136_s9 + $0x40] sm:$0xff]  }
0x1640   : > { %v8710_v62 = vadd.f32 %v6087_v42, %v4275_v5  ;;  %v6090_v2 = vadd.f32 %v6089_v58, %v6088_v49  ;;  %v6828_v5 = vld [vmem:[%s9136_s9 + $0xc0] sm:$0xff]  }
0x1641   : > { %4802 = vmatpush1.bf16.msra.mxu0 %v6815_v10 }
0x1642   : > { %v8712_v8 = vadd.f32 %v6090_v2, %v4278_v37  ;;  %v4350_v23 = vsel %vm791_vm0, %v8710_v62, 0.0  ;;  %4865 = vmatpush1.bf16.msra.mxu1 %v6818_v45  ;;  %4803 = vmatprep.subr.bf16.mxu0 %v6823_v63 }
0x1643   : > { %4351 = vadd.xlane.f32.xlu1 %v4350_v23  ;;  %4866 = vmatprep.subr.bf16.mxu1 %v6826_v55 }
0x1644   : > { %v4354_v57 = vsel %vm4353_vm13, %v8712_v8, 0.0 }
0x1645   : > { %4355 = vadd.xlane.f32.xlu0 %v4354_v57  ;;  %4804 = vmatpush1.bf16.msra.mxu0 %v6821_v43 }
0x1646   : > { %4867 = vmatpush1.bf16.msra.mxu1 %v6824_v50  ;;  %6091 = vmatprep.subr.bf16.mxu0 %v6827_v30 }
0x1647   : > { %6125 = vmatprep.subr.bf16.mxu1 %v6828_v5 }
0x16bf   : > { %v4340_v26 = vpop.xlane.xlu1 %4339 }
0x16c0   : > { %v4358_v29 = vmul.f32 0.015625, %v4340_v26 }
0x16c1   : > { %v4343_v59 = vpop.xlane.xlu0 %4342 }
0x16c2   : > { %v8719_v7 = vsub.f32 %v8690_v54, %v4358_v29  ;;  %v4359_v22 = vmul.f32 0.015625, %v4343_v59 }
0x16c4   : > { %v8722_v52 = vsub.f32 %v8692_v60, %v4359_v22  ;;  %v4370_v56 = vmul.f32 %v8719_v7, %v8719_v7  ;;  %v5759_v22 = vld [vmem:[%s9131_s4] ss:$0 sm:$0xff] }
0x16c6   : > { %v4376_v14 = vsel %vm791_vm0, %v4370_v56, 0.0  ;;  %v4371_v4 = vmul.f32 %v8722_v52, %v8722_v52 }
0x16c7   : > { %v4346_v11 = vpop.xlane.xlu0 %4345  ;;  %4377 = vadd.xlane.f32.xlu1 %v4376_v14 }
0x16c8   : > { %v4360_v9 = vmul.f32 0.015625, %v4346_v11  ;;  %v4379_v28 = vsel %vm791_vm0, %v4371_v4, 0.0 }
0x16c9   : > { %4380 = vadd.xlane.f32.xlu0 %v4379_v28 }
0x16ca   : > { %v8731_v27 = vsub.f32 %v8700_v25, %v4360_v9  ;;  %v5760_v9 = vld [vmem:[%s9131_s4 + $0x1] ss:$0 sm:$0xff] }
0x16cb   : > { %v4349_v44 = vpop.xlane.xlu0 %4348 }
0x16cc   : > { %v4361_v48 = vmul.f32 0.015625, %v4349_v44  ;;  %v4372_v16 = vmul.f32 %v8731_v27, %v8731_v27 }
0x16ce   : > { %v8736_v0 = vsub.f32 %v8702_v1, %v4361_v48  ;;  %v4382_v39 = vsel %vm791_vm0, %v4372_v16, 0.0 }
0x16cf   : > { %4383 = vadd.xlane.f32.xlu1 %v4382_v39  ;;  %v4457_v39 = vstv %s5762_s21  ;;  %s8857_s21 = sld [smem:[#allocation6 + $0x4]] }
0x16d0   : > { %v4352_v51 = vpop.xlane.xlu1 %4351  ;;  %v4373_v35 = vmul.f32 %v8736_v0, %v8736_v0 }
0x16d1   : > { %v4362_v32 = vmul.f32 0.015625, %v4352_v51 }
0x16d2   : > { %v4356_v21 = vpop.xlane.xlu0 %4355  ;;  %v4385_v20 = vsel %vm791_vm0, %v4373_v35, 0.0 }
0x16d3   : > { %v8742_v40 = vsub.f32 %v8710_v62, %v4362_v32  ;;  %v4363_v61 = vmul.f32 0.015625, %v4356_v21  ;;  %4386 = vadd.xlane.f32.xlu0 %v4385_v20 }
0x16d5   : > { %v8746_v33 = vsub.f32 %v8712_v8, %v4363_v61  ;;  %v4374_v15 = vmul.f32 %v8742_v40, %v8742_v40  ;;  %v4465_v61 = vstv %s5763_s22  ;;  %s8860_s22 = sld [smem:[#allocation6 + $0x5]] }
0x16d7   : > { %v4388_v46 = vsel %vm791_vm0, %v4374_v15, 0.0  ;;  %v4375_v53 = vmul.f32 %v8746_v33, %v8746_v33 }
0x16d8   : > { %4389 = vadd.xlane.f32.xlu1 %v4388_v46 }
0x16d9   : > { %v4391_v31 = vsel %vm4353_vm13, %v4375_v53, 0.0 }
0x16da   : > { %4392 = vadd.xlane.f32.xlu0 %v4391_v31 }
0x1754   : > { %v4378_v42 = vpop.xlane.xlu1 %4377 }
0x1755   : > { %v4394_v49 = vmul.f32 0.015625, %v4378_v42 }
0x1756   : > { %v4381_v17 = vpop.xlane.xlu0 %4380 }
0x1757   : > { %v4400_v58 = vadd.f32 1e-05, %v4394_v49  ;;  %v4395_v18 = vmul.f32 0.015625, %v4381_v17 }
0x1759   : > { %7051 = vrsqrt.f32 %v4400_v58  ;;  %v4401_v37 = vadd.f32 1e-05, %v4395_v18 }
0x175b   : > { %7053 = vrsqrt.f32 %v4401_v37 }
0x175c   : > { %v4384_v2 = vpop.xlane.xlu1 %4383 }
0x175d   : > { %v4396_v23 = vmul.f32 0.015625, %v4384_v2 }
0x175f   : > { %v4402_v57 = vadd.f32 1e-05, %v4396_v23 }
0x1760   : > { %v4387_v26 = vpop.xlane.xlu0 %4386 }
0x1761   : > { %7055 = vrsqrt.f32 %v4402_v57  ;;  %v4397_v29 = vmul.f32 0.015625, %v4387_v26  ;;  %v4626_v26 = vld [vmem:[%s9134_s7 + $0x3] sm:$0x1] }
0x1763   : > { %v7052_v59 = vpop.eup %7051  ;;  %v4403_v56 = vadd.f32 1e-05, %v4397_v29  ;;  %v8832_v29 = vstv %s4440_s28 }
0x1764   : > { %v4412_v14 = vmul.f32 %v7052_v59, %v8719_v7 }
0x1765   : > { %v4390_v4 = vpop.xlane.xlu1 %4389  ;;  %v7054_v11 = vpop.eup %7053  ;;  %7057 = vrsqrt.f32 %v4403_v56  ;;  %v4627_v56 = vadd.f32 1e-05, %v4626_v26 }
0x1766   : > { %v4398_v28 = vmul.f32 0.015625, %v4390_v4  ;;  %v4423_v44 = vmul.f32 %v5759_v22, %v4412_v14  ;;  %v4413_v48 = vmul.f32 %v7054_v11, %v8722_v52  ;;  %v8835_v11 = vstv %s5761_s29 }
0x1767   : > { %v4393_v16 = vpop.xlane.xlu0 %4392 }
0x1768   : > { %v4404_v51 = vadd.f32 1e-05, %v4398_v28  ;;  %v4399_v32 = vmul.f32 0.015625, %v4393_v16  ;;  %v4434_v35 = vadd.f32 %v5760_v9, %v4423_v44  ;;  %v4424_v21 = vmul.f32 %v5759_v22, %v4413_v48 }
0x176a   : > { %7059 = vrsqrt.f32 %v4404_v51  ;;  %v4405_v7 = vadd.f32 1e-05, %v4399_v32  ;;  %v4458_v20 = vmul.f32 %v4457_v39, %v4434_v35  ;;  %v4435_v15 = vadd.f32 %v5760_v9, %v4424_v21 }
0x176b   : > { %v7056_v46 = vpop.eup %7055  ;;  %v4442_v14 = vmul.f32 %v8832_v29, %v4434_v35 }
0x176c   : > { %7061 = vrsqrt.f32 %v4405_v7  ;;  %v4466_v53 = vadd.f32 %v4465_v61, %v4458_v20  ;;  %v4459_v31 = vmul.f32 %v4457_v39, %v4435_v15  ;;  %v4414_v19 = vmul.f32 %v7056_v46, %v8731_v27  ;;  %v8848_v7 = vld [vmem:[%s9133_s6 + $0x1] ss:$0 sm:$0xff] }
0x176d   : > { %v4450_v48 = vadd.f32 %v8835_v11, %v4442_v14  ;;  %v9198_v46 = vlaneseq  ;;  %v8894_v14 = vstv %s8860_s22 }
0x176e   : > { %v5764_v3 = vmul.f32 -1.442695, %v4466_v53  ;;  %v4467_v36 = vadd.f32 %v4465_v61, %v4459_v31  ;;  %v4425_v41 = vmul.f32 %v5759_v22, %v4414_v19  ;;  %v8854_v31 = vld [vmem:[%s9133_s6 + $0x2] ss:$0 sm:$0xff] }
0x176f   : > { %v7058_v52 = vpop.eup %7057  ;;  %v4630_v53 = vshrl.u32 %v9198_v46, 7 }
0x1770   : > { %7063 = vpow2.f32 %v5764_v3  ;;  %v5765_v12 = vmul.f32 -1.442695, %v4467_v36  ;;  %v4415_v24 = vmul.f32 %v7058_v52, %v8736_v0  ;;  %v4436_v13 = vadd.f32 %v5760_v9, %v4425_v41 }
0x1772   : > { %7065 = vpow2.f32 %v5765_v12  ;;  %v4426_v38 = vmul.f32 %v5759_v22, %v4415_v24  ;;  %v4460_v47 = vmul.f32 %v4457_v39, %v4436_v13  ;;  %v4444_v19 = vmul.f32 %v8832_v29, %v4436_v13 }
0x1774   : > { %v7060_v34 = vpop.eup %7059  ;;  %v8818_v10 = vadd.f32 %v5760_v9, %v4426_v38  ;;  %v4468_v55 = vadd.f32 %v4465_v61, %v4460_v47 }
0x1775   : > { %v4416_v45 = vmul.f32 %v7060_v34, %v8742_v40 }
0x1776   : > { %v7062_v63 = vpop.eup %7061  ;;  %v4461_v27 = vmul.f32 %v4457_v39, %v8818_v10  ;;  %v5766_v30 = vmul.f32 -1.442695, %v4468_v55  ;;  %v4445_v13 = vmul.f32 %v8832_v29, %v8818_v10 }
0x1777   : > { %v4427_v43 = vmul.f32 %v5759_v22, %v4416_v45  ;;  %v4417_v50 = vmul.f32 %v7062_v63, %v8746_v33  ;;  %v4631_v63 = vsub.s32 0, %v4630_v53  ;;  %v8913_v53 = vld [vmem:[%s9134_s7 + $0x1] ss:$0 sm:$0xff] }
0x1778   : > { %v4469_v5 = vadd.f32 %v4465_v61, %v4461_v27  ;;  %7067 = vpow2.f32 %v5766_v30  ;;  %v4452_v30 = vadd.f32 %v8835_v11, %v4444_v19 }
0x1779   : > { %v8823_v0 = vadd.f32 %v5760_v9, %v4427_v43  ;;  %v4428_v42 = vmul.f32 %v5759_v22, %v4417_v50 }
0x177a   : > { %v7064_v49 = vpop.eup %7063  ;;  %v5767_v17 = vmul.f32 -1.442695, %v4469_v5 }
0x177b   : > { %v4462_v58 = vmul.f32 %v4457_v39, %v8823_v0  ;;  %v8826_v18 = vadd.f32 %v5760_v9, %v4428_v42  ;;  %v4490_v40 = vadd.f32 1.0, %v7064_v49  ;;  %v4443_v9 = vmul.f32 %v8832_v29, %v4435_v15  ;;  %v8873_v42 = vld [vmem:[%s9133_s6 + $0x3] ss:$0 sm:$0xff] }
0x177c   : > { %v7066_v37 = vpop.eup %7065  ;;  %7069 = vpow2.f32 %v5767_v17  ;;  %v4446_v17 = vmul.f32 %v8832_v29, %v8823_v0 }
0x177d   : > { %v4470_v2 = vadd.f32 %v4465_v61, %v4462_v58  ;;  %7071 = vrcp.f32 %v4490_v40  ;;  %v4491_v33 = vadd.f32 1.0, %v7066_v37  ;;  %v4463_v23 = vmul.f32 %v4457_v39, %v8826_v18  ;;  %v8882_v37 = vld [vmem:[%s9134_s7 + $0x2] ss:$0 sm:$0xff] }
0x177e   : > { %v4451_v32 = vadd.f32 %v8835_v11, %v4443_v9  ;;  %v4453_v40 = vadd.f32 %v8835_v11, %v4445_v13  ;;  %v4447_v26 = vmul.f32 %v8832_v29, %v8826_v18  ;;  %v4454_v9 = vadd.f32 %v8835_v11, %v4446_v17 }
0x177f   : > { %v5768_v57 = vmul.f32 -1.442695, %v4470_v2  ;;  %7073 = vrcp.f32 %v4491_v33  ;;  %v4471_v59 = vadd.f32 %v4465_v61, %v4463_v23  ;;  %v8843_v61 = vld [vmem:[%s9133_s6] ss:$0 sm:$0xff] }
0x1781   : > { %7075 = vpow2.f32 %v5768_v57  ;;  %v5769_v22 = vmul.f32 -1.442695, %v4471_v59 }
0x1782   : > { %v7068_v4 = vpop.eup %7067 }
0x1783   : > { %7077 = vpow2.f32 %v5769_v22  ;;  %v4492_v28 = vadd.f32 1.0, %v7068_v4 }
0x1784   : > { %7079 = vrsqrt.f32 %v4627_v56  ;;  %v8891_v56 = vstv %s8857_s21 }
0x1785   : > { %7081 = vrcp.f32 %v4492_v28 }
0x1786   : > { %v7070_v44 = vpop.eup %7069 }
0x1787   : > { %v7072_v16 = vpop.eup %7071  ;;  %v4493_v39 = vadd.f32 1.0, %v7070_v44 }
0x1788   : > { %v4508_v51 = vmul.f32 %v7072_v16, %v4450_v48 }
0x1789   : > { %v7074_v21 = vpop.eup %7073  ;;  %7083 = vrcp.f32 %v4493_v39  ;;  %v8904_v39 = vld [vmem:[%s9134_s7] ss:$0 sm:$0xff] }
0x178a   : > { %v4521_v20 = vrot.slane %v4508_v51, 7  ;;  %v4509_v15 = vmul.f32 %v7074_v21, %v4451_v32  ;;  %v4540_v52 = vrot.slane %v4508_v51, 1  ;;  %v4575_v34 = vmul.f32 %v8848_v7, %v4508_v51 }
0x178b   : > { %v7076_v35 = vpop.eup %7075  ;;  %v4455_v21 = vadd.f32 %v8835_v11, %v4447_v26 }
0x178c   : > { %v4494_v3 = vadd.f32 1.0, %v7076_v35  ;;  %v4538_v36 = vsel %vm4520_vm14, 0.0, %v4521_v20  ;;  %v4522_v41 = vrot.slane %v4509_v15, 7  ;;  %v4541_v12 = vrot.slane %v4509_v15, 1 }
0x178d   : > { %v7078_v24 = vpop.eup %7077  ;;  %v4564_v38 = vmul.f32 %v8843_v61, %v4538_v36  ;;  %v4576_v0 = vmul.f32 %v8848_v7, %v4509_v15 }
0x178e   : > { %7085 = vrcp.f32 %v4494_v3  ;;  %v4542_v47 = vsel %vm1306_vm9, %v4540_v52, %v4541_v12  ;;  %v4495_v45 = vadd.f32 1.0, %v7078_v24  ;;  %v7080_v55 = vpop.eup %7079  ;;  %v4523_v43 = vsel %vm4520_vm14, %v4521_v20, %v4522_v41 }
0x178f   : > { %v4581_v27 = vadd.f32 %v4575_v34, %v4564_v38  ;;  %v4592_v50 = vmul.f32 %v8854_v31, %v4542_v47  ;;  %v7082_v5 = vpop.eup %7081  ;;  %v4565_v58 = vmul.f32 %v8843_v61, %v4523_v43  ;;  %v8884_v2 = vrot.slane %v7080_v55, %v4631_v63 }
0x1790   : > { %7087 = vrcp.f32 %v4495_v45  ;;  %v4510_v49 = vmul.f32 %v7082_v5, %v4452_v30 }
0x1791   : > { %v4598_v10 = vadd.f32 %v4592_v50, %v4581_v27  ;;  %v4582_v48 = vadd.f32 %v4576_v0, %v4565_v58 }
0x1792   : > { %v4524_v23 = vrot.slane %v4510_v49, 7  ;;  %v4543_v57 = vrot.slane %v4510_v49, 1  ;;  %v4577_v32 = vmul.f32 %v8848_v7, %v4510_v49 }
0x1793   : > { %v7084_v33 = vpop.eup %7083  ;;  %v4609_v59 = vadd.f32 %v8873_v42, %v4598_v10 }
0x1794   : > { %v4511_v22 = vmul.f32 %v7084_v33, %v4453_v40  ;;  %v4544_v4 = vsel %vm1306_vm9, %v4541_v12, %v4543_v57  ;;  %v4525_v44 = vsel %vm4520_vm14, %v4522_v41, %v4524_v23 }
0x1795   : > { %v4620_v28 = vsub.f32 %v4609_v59, %v8882_v37  ;;  %v4593_v18 = vmul.f32 %v8854_v31, %v4544_v4  ;;  %v4566_v20 = vmul.f32 %v8843_v61, %v4525_v44 }
0x1796   : > { %v4526_v29 = vrot.slane %v4511_v22, 7  ;;  %v4545_v16 = vrot.slane %v4511_v22, 1  ;;  %v4578_v47 = vmul.f32 %v8848_v7, %v4511_v22 }
0x1797   : > { %v4633_v35 = vmul.f32 %v8884_v2, %v4620_v28  ;;  %v4599_v15 = vadd.f32 %v4593_v18, %v4582_v48  ;;  %v4583_v11 = vadd.f32 %v4577_v32, %v4566_v20 }
0x1798   : > { %v7086_v51 = vpop.eup %7085  ;;  %v4527_v19 = vsel %vm4520_vm14, %v4524_v23, %v4526_v29  ;;  %v4546_v3 = vsel %vm1306_vm9, %v4543_v57, %v4545_v16 }
0x1799   : > { %v4512_v46 = vmul.f32 %v7086_v51, %v4454_v9  ;;  %v4644_v36 = vmul.f32 %v8904_v39, %v4633_v35  ;;  %v4567_v52 = vmul.f32 %v8843_v61, %v4527_v19  ;;  %v4594_v41 = vmul.f32 %v8854_v31, %v4546_v3 }
0x179a   : > { %v7088_v12 = vpop.eup %7087  ;;  %v4610_v34 = vadd.f32 %v8873_v42, %v4599_v15 }
0x179b   : > { %v4528_v24 = vrot.slane %v4512_v46, 7  ;;  %v4547_v38 = vrot.slane %v4512_v46, 1  ;;  %v4513_v13 = vmul.f32 %v7088_v12, %v4455_v21  ;;  %v4655_v45 = vadd.f32 %v8913_v53, %v4644_v36 }
0x179c   : > { %v4600_v63 = vadd.f32 %v4594_v41, %v4583_v11  ;;  %v4579_v55 = vmul.f32 %v8848_v7, %v4512_v46  ;;  %v4621_v27 = vsub.f32 %v4610_v34, %v8882_v37  ;;  %v4584_v49 = vadd.f32 %v4578_v47, %v4567_v52 }
0x179d   : > { %v4548_v43 = vsel %vm1306_vm9, %v4545_v16, %v4547_v38  ;;  %v4529_v50 = vsel %vm4520_vm14, %v4526_v29, %v4528_v24  ;;  %v4530_v30 = vrot.slane %v4513_v13, 7  ;;  %v4549_v5 = vrot.slane %v4513_v13, 1 }
0x179e   : > { %v4661_v10 = vmax.f32 %v4655_v45, 0.0  ;;  %v4634_v17 = vmul.f32 %v8884_v2, %v4621_v27  ;;  %v4595_v58 = vmul.f32 %v8854_v31, %v4548_v43  ;;  %v4611_v40 = vadd.f32 %v8873_v42, %v4600_v63  ;;  %v6829_v27 = vld [vmem:[%s9136_s9] sm:$0xff]  }
0x179f   : > { %v4568_v33 = vmul.f32 %v8843_v61, %v4529_v50  ;;  %v4580_v23 = vmul.f32 %v8848_v7, %v4513_v13  ;;  %v4531_v57 = vsel %vm4520_vm14, %v4528_v24, %v4530_v30  ;;  %v4550_v26 = vsel %vm1306_vm9, %v4547_v38, %v4549_v5  ;;  %v6832_v50 = vld [vmem:[%s9136_s9 + $0xc8] sm:$0xff]  }
0x17a0   : > { %v4558_v59 = vsel %vm4557_vm15, %v4549_v5, 0.0  ;;  %v4645_v0 = vmul.f32 %v8904_v39, %v4634_v17  ;;  %v4601_v22 = vadd.f32 %v4595_v58, %v4584_v49  ;;  %v4622_v4 = vsub.f32 %v4611_v40, %v8882_v37  ;;  %v6833_v58 = vld [vmem:[%s9136_s9 + $0x8] sm:$0xff]  }
0x17a1   : > { %v4569_v9 = vmul.f32 %v8843_v61, %v4531_v57  ;;  %v4669_v28 = vmul.f32 %v8891_v56, %v4661_v10  ;;  %v4585_v44 = vadd.f32 %v4579_v55, %v4568_v33  ;;  %v4596_v48 = vmul.f32 %v8854_v31, %v4550_v26  ;;  %v6834_v40 = vld [vmem:[%s9136_s9 + $0x88] sm:$0xff]   ;;  %v6836_v33 = vld [vmem:[%s9136_s9 + $0xd0] sm:$0xff]  }
0x17a2   : > { %v4597_v7 = vmul.f32 %v8854_v31, %v4558_v59  ;;  %v4656_v18 = vadd.f32 %v8913_v53, %v4645_v0  ;;  %v4612_v29 = vadd.f32 %v8873_v42, %v4601_v22  ;;  %v4635_v16 = vmul.f32 %v8884_v2, %v4622_v4  ;;  %v6837_v4 = vld [vmem:[%s9136_s9 + $0x10] sm:$0xff]  }
0x17a3   : > { %v4586_v51 = vadd.f32 %v4580_v23, %v4569_v9  ;;  %v4602_v32 = vadd.f32 %v4596_v48, %v4585_v44  ;;  %v4677_v15 = vadd.f32 %v8894_v14, %v4669_v28  ;;  %v6841_v44 = vld [vmem:[%s9136_s9 + $0x18] sm:$0xff]  }
0x17a4   : > { %v4662_v21 = vmax.f32 %v4656_v18, 0.0  ;;  %v4623_v35 = vsub.f32 %v4612_v29, %v8882_v37  ;;  %v4646_v61 = vmul.f32 %v8904_v39, %v4635_v16  ;;  %v6842_v48 = vld [vmem:[%s9136_s9 + $0x98] sm:$0xff]   ;;  %v6845_v18 = vld [vmem:[%s9136_s9 + $0x20] sm:$0xff]   ;;  %v6848_v16 = vld [vmem:[%s9136_s9 + $0xe8] sm:$0xff]  }
0x17a5   : > { %v4603_v20 = vadd.f32 %v4597_v7, %v4586_v51  ;;  %v4613_v46 = vadd.f32 %v8873_v42, %v4602_v32  ;;  %v8957_v38 = vadd.f32 %v4677_v15, %v8690_v54  ;;  %v6846_v29 = vld [vmem:[%s9136_s9 + $0xa0] sm:$0xff]   ;;  %v6849_v51 = vld [vmem:[%s9136_s9 + $0x28] sm:$0xff]   ;;  %v6855_v15 = vld [vmem:[%s9136_s9 + $0x78] sm:$0xff]  }
0x17a6   : > { %v4670_v31 = vmul.f32 %v8891_v56, %v4662_v21  ;;  %v4636_v19 = vmul.f32 %v8884_v2, %v4623_v35  ;;  %v4657_v3 = vadd.f32 %v8913_v53, %v4646_v61  ;;  %v6850_v32 = vld [vmem:[%s9136_s9 + $0xa8] sm:$0xff]   ;;  %v6851_v21 = vld [vmem:[%s9136_s9 + $0x70] sm:$0xff]  }
0x17a7   : > { %v4614_v36 = vadd.f32 %v8873_v42, %v4603_v20  ;;  %v4624_v52 = vsub.f32 %v4613_v46, %v8882_v37  ;;  %v6852_v35 = vld [vmem:[%s9136_s9 + $0xf0] sm:$0xff]   ;;  %v6856_v46 = vld [vmem:[%s9136_s9 + $0xf8] sm:$0xff]  }
0x17a8   : > { %v4678_v11 = vadd.f32 %v8894_v14, %v4670_v31  ;;  %v4647_v41 = vmul.f32 %v8904_v39, %v4636_v19  ;;  %v4663_v12 = vmax.f32 %v4657_v3, 0.0  ;;  %v6853_v61 = vld [vmem:[%s9136_s9 + $0x30] sm:$0xff]   ;;  %v6857_v31 = vld [vmem:[%s9136_s9 + $0x38] sm:$0xff]  }
0x17a9   : > { %v4625_v24 = vsub.f32 %v4614_v36, %v8882_v37  ;;  %v4637_v34 = vmul.f32 %v8884_v2, %v4624_v52  ;;  %v6854_v20 = vld [vmem:[%s9136_s9 + $0xb0] sm:$0xff]   ;;  %v6858_v19 = vld [vmem:[%s9136_s9 + $0xb8] sm:$0xff]  }
0x17aa   : > { %v8961_v47 = vadd.f32 %v4678_v11, %v8692_v60  ;;  %v4658_v13 = vadd.f32 %v8913_v53, %v4647_v41  ;;  %v4671_v42 = vmul.f32 %v8891_v56, %v4663_v12  ;;  %v6830_v60 = vld [vmem:[%s9136_s9 + $0x80] sm:$0xff]  }
0x17ab   : > { %v4638_v45 = vmul.f32 %v8884_v2, %v4625_v24  ;;  %v4648_v63 = vmul.f32 %v8904_v39, %v4637_v34  ;;  %v6831_v2 = vld [vmem:[%s9136_s9 + $0x48] sm:$0xff]  }
0x17ac   : > { %v4689_v55 = vpack.c.bf16 %v8961_v47, %v8957_v38  ;;  %v4664_v37 = vmax.f32 %v4658_v13, 0.0  ;;  %v4679_v30 = vadd.f32 %v8894_v14, %v4671_v42 }
0x17ad   : > { %v4649_v54 = vmul.f32 %v8904_v39, %v4638_v45  ;;  %v4659_v43 = vadd.f32 %v8913_v53, %v4648_v63 }
0x17ae   : > { %5795 = vmatmul.mubr.msk.bf16.vlgmr.msra.gmra.mrb[144].mxu0 %vm791_vm0, %v4689_v55  ;;  %5798 = vmatmul.mubr.msk.bf16.vlgmr.msra.gmra.mrb[144].mxu1 %vm791_vm0, %v4689_v55  ;;  %v4672_v39 = vmul.f32 %v8891_v56, %v4664_v37  ;;  %v9004_v23 = vadd.f32 %v4679_v30, %v8700_v25  ;;  %v6838_v25 = vld [vmem:[%s9136_s9 + $0x90] sm:$0xff]  }
0x17af   : > { %v4660_v5 = vadd.f32 %v8913_v53, %v4649_v54  ;;  %4839 = vmatprep.mubr.bf16.mxu0 %v8682_v6  ;;  %4902 = vmatprep.mubr.bf16.mxu1 %v8682_v6  ;;  %v4665_v10 = vmax.f32 %v4659_v43, 0.0  ;;  %v6835_v53 = vld [vmem:[%s9136_s9 + $0x50] sm:$0xff]  }
0x17b0   : > { %v4680_v49 = vadd.f32 %v8894_v14, %v4672_v39  ;;  %6092 = vmatpush3.bf16.msra.mxu0 %v6829_v27  ;;  %6126 = vmatpush3.bf16.msra.mxu1 %v6830_v60 }
0x17b1   : > { %v4666_v17 = vmax.f32 %v4660_v5, 0.0  ;;  %6093 = vmatprep.subr.bf16.mxu0 %v6831_v2  ;;  %6127 = vmatprep.subr.bf16.mxu1 %v6832_v50  ;;  %v4673_v26 = vmul.f32 %v8891_v56, %v4665_v10 }
0x17b2   : > { %v9007_v57 = vadd.f32 %v4680_v49, %v8702_v1  ;;  %v6839_v1 = vld [vmem:[%s9136_s9 + $0x58] sm:$0xff]  }
0x17b3   : > { %v4674_v59 = vmul.f32 %v8891_v56, %v4666_v17  ;;  %v6840_v56 = vld [vmem:[%s9136_s9 + $0xd8] sm:$0xff]   ;;  %v4681_v9 = vadd.f32 %v8894_v14, %v4673_v26 }
0x17b4   : > { %v4690_v0 = vpack.c.bf16 %v9007_v57, %v9004_v23  ;;  %6094 = vmatpush3.bf16.msra.mxu0 %v6833_v58  ;;  %6128 = vmatpush3.bf16.msra.mxu1 %v6834_v40 }
0x17b5   : > { %v4682_v22 = vadd.f32 %v8894_v14, %v4674_v59  ;;  %6095 = vmatprep.subr.bf16.mxu0 %v6835_v53  ;;  %6129 = vmatprep.subr.bf16.mxu1 %v6836_v33  ;;  %v6843_v14 = vld [vmem:[%s9136_s9 + $0x60] sm:$0xff]  }
0x17b6   : > { %5796 = vmatmul.mubr.msk.bf16.gmra.mrb[148].mxu0 %vm791_vm0, %v4690_v0  ;;  %5799 = vmatmul.mubr.msk.bf16.gmra.mrb[148].mxu1 %vm791_vm0, %v4690_v0 }
0x17b7   : > { %4849 = vmatprep.mubr.bf16.mxu0 %v8682_v6  ;;  %4912 = vmatprep.mubr.bf16.mxu1 %v8682_v6  ;;  %v9032_v28 = vadd.f32 %v4682_v22, %v8712_v8  ;;  %v6844_v6 = vld [vmem:[%s9136_s9 + $0xe0] sm:$0xff]   ;;  %v9047_v8 = vadd.f32 %v4681_v9, %v8710_v62  ;;  %v6847_v62 = vld [vmem:[%s9136_s9 + $0x68] sm:$0xff]  }
0x17b8   : > { %6096 = vmatpush3.bf16.msra.mxu0 %v6837_v4  ;;  %6130 = vmatpush3.bf16.msra.mxu1 %v6838_v25 }
0x17b9   : > { %6097 = vmatprep.subr.bf16.mxu0 %v6839_v1  ;;  %6131 = vmatprep.subr.bf16.mxu1 %v6840_v56  ;;  %v4691_v7 = vpack.c.bf16 %v9032_v28, %v9047_v8 }
0x17bc   : > { %6098 = vmatpush3.bf16.msra.mxu0 %v6841_v44  ;;  %6132 = vmatpush3.bf16.msra.mxu1 %v6842_v48 }
0x17bd   : > { %6099 = vmatprep.subr.bf16.mxu0 %v6843_v14  ;;  %6133 = vmatprep.subr.bf16.mxu1 %v6844_v6 }
0x17be   : > { %5797 = vmatmul.mubr.msk.bf16.gmra.mrb[152].mxu0 %vm791_vm0, %v4691_v7  ;;  %5800 = vmatmul.mubr.msk.bf16.gmra.mrb[152].mxu1 %vm791_vm0, %v4691_v7 }
0x17c0   : > { %6100 = vmatpush3.bf16.msra.mxu0 %v6845_v18  ;;  %6134 = vmatpush3.bf16.msra.mxu1 %v6846_v29 }
0x17c1   : > { %6101 = vmatprep.subr.bf16.mxu0 %v6847_v62  ;;  %6135 = vmatprep.subr.bf16.mxu1 %v6848_v16 }
0x17c4   : > { %6102 = vmatpush3.bf16.msra.mxu0 %v6849_v51  ;;  %6136 = vmatpush3.bf16.msra.mxu1 %v6850_v32 }
0x17c5   : > { %6103 = vmatprep.subr.bf16.mxu0 %v6851_v21  ;;  %6137 = vmatprep.subr.bf16.mxu1 %v6852_v35 }
0x17c8   : > { %6104 = vmatpush3.bf16.msra.mxu0 %v6853_v61  ;;  %6138 = vmatpush3.bf16.msra.mxu1 %v6854_v20 }
0x17c9   : > { %6105 = vmatprep.subr.bf16.mxu0 %v6855_v15  ;;  %6139 = vmatprep.subr.bf16.mxu1 %v6856_v46 }
0x17cc   : > { %6106 = vmatpush3.bf16.msra.mxu0 %v6857_v31  ;;  %6140 = vmatpush3.bf16.msra.mxu1 %v6858_v19 }
0x1881   : > { %v4831_v3 = vpop.f32.mrb[144].mxu0  ;;  %v4894_v36 = vpop.f32.mrb[144].mxu1 }
0x1882   : > { %v4833_v52 = vpop.f32.mrb[145].mxu0  ;;  %v4896_v11 = vpop.f32.mrb[145].mxu1  ;;  %v4923_v24 = vmax.f32 %v4831_v3, 0.0  ;;  %v4925_v34 = vmax.f32 %v4894_v36, 0.0 }
0x1883   : > { %v4835_v41 = vpop.f32.mrb[146].mxu0  ;;  %v4898_v12 = vpop.f32.mrb[146].mxu1  ;;  %v4924_v55 = vmax.f32 %v4833_v52, 0.0  ;;  %v4926_v37 = vmax.f32 %v4896_v11, 0.0 }
0x1884   : > { %v4927_v13 = vmax.f32 %v4835_v41, 0.0  ;;  %v4929_v42 = vmax.f32 %v4898_v12, 0.0  ;;  %v4837_v45 = vpop.f32.mrb[147].mxu0  ;;  %v4900_v63 = vpop.f32.mrb[147].mxu1 }
0x1885   : > { %v4928_v54 = vmax.f32 %v4837_v45, 0.0  ;;  %v4930_v27 = vmax.f32 %v4900_v63, 0.0 }
0x1886   : > { %v4947_v60 = vpack.c.bf16 %v4927_v13, %v4923_v24  ;;  %v4949_v43 = vpack.c.bf16 %v4929_v42, %v4925_v34 }
0x1887   : > { %v4948_v2 = vpack.c.bf16 %v4928_v54, %v4924_v55  ;;  %v4950_v50 = vpack.c.bf16 %v4930_v27, %v4926_v37 }
0x1889   : > { %5247 = vmatprep.mubr.bf16.mxu0 %v4948_v2  ;;  %5304 = vmatprep.mubr.bf16.mxu1 %v4950_v50  ;;  %v4841_v39 = vpop.f32.mrb[148].mxu0  ;;  %v4904_v30 = vpop.f32.mrb[148].mxu1 }
0x188a   : > { %5248 = vmatmul.mubr.bf16.vlgmr.msra.gmra.mrb[156].mxu0 %v4947_v60  ;;  %5305 = vmatmul.mubr.bf16.vlgmr.msra.gmra.mrb[156].mxu1 %v4949_v43  ;;  %v4843_v5 = vpop.f32.mrb[149].mxu0  ;;  %v4906_v10 = vpop.f32.mrb[149].mxu1  ;;  %v4931_v58 = vmax.f32 %v4841_v39, 0.0  ;;  %v4933_v40 = vmax.f32 %v4904_v30, 0.0 }
0x188b   : > { %v4845_v49 = vpop.f32.mrb[150].mxu0  ;;  %v4908_v17 = vpop.f32.mrb[150].mxu1  ;;  %v4932_v0 = vmax.f32 %v4843_v5, 0.0  ;;  %v4934_v22 = vmax.f32 %v4906_v10, 0.0 }
0x188c   : > { %v4935_v53 = vmax.f32 %v4845_v49, 0.0  ;;  %v4937_v33 = vmax.f32 %v4908_v17, 0.0  ;;  %v4847_v26 = vpop.f32.mrb[151].mxu0  ;;  %v4910_v59 = vpop.f32.mrb[151].mxu1 }
0x188d   : > { %v4936_v4 = vmax.f32 %v4847_v26, 0.0  ;;  %v4938_v25 = vmax.f32 %v4910_v59, 0.0 }
0x188e   : > { %v4951_v1 = vpack.c.bf16 %v4935_v53, %v4931_v58  ;;  %v4953_v56 = vpack.c.bf16 %v4937_v33, %v4933_v40 }
0x188f   : > { %v4952_v9 = vpack.c.bf16 %v4936_v4, %v4932_v0  ;;  %v4954_v44 = vpack.c.bf16 %v4938_v25, %v4934_v22 }
0x1891   : > { %v4851_v48 = vpop.f32.mrb[152].mxu0  ;;  %v4914_v14 = vpop.f32.mrb[152].mxu1  ;;  %5255 = vmatprep.mubr.bf16.mxu0 %v4952_v9  ;;  %5312 = vmatprep.mubr.bf16.mxu1 %v4954_v44 }
0x1892   : > { %v4853_v6 = vpop.f32.mrb[153].mxu0  ;;  %v4916_v7 = vpop.f32.mrb[153].mxu1  ;;  %5256 = vmatmul.mubr.bf16.gmra.mrb[160].mxu0 %v4951_v1  ;;  %5313 = vmatmul.mubr.bf16.gmra.mrb[160].mxu1 %v4953_v56  ;;  %v4939_v62 = vmax.f32 %v4851_v48, 0.0  ;;  %v4941_v16 = vmax.f32 %v4914_v14, 0.0 }
0x1893   : > { %v4855_v18 = vpop.f32.mrb[154].mxu0  ;;  %v4918_v29 = vpop.f32.mrb[154].mxu1  ;;  %v4940_v61 = vmax.f32 %v4853_v6, 0.0  ;;  %v4942_v20 = vmax.f32 %v4916_v7, 0.0 }
0x1894   : > { %v4943_v51 = vmax.f32 %v4855_v18, 0.0  ;;  %v4945_v32 = vmax.f32 %v4918_v29, 0.0  ;;  %v4857_v21 = vpop.f32.mrb[155].mxu0  ;;  %v4920_v35 = vpop.f32.mrb[155].mxu1 }
0x1895   : > { %v4944_v15 = vmax.f32 %v4857_v21, 0.0  ;;  %v4946_v46 = vmax.f32 %v4920_v35, 0.0 }
0x1896   : > { %v4955_v31 = vpack.c.bf16 %v4943_v51, %v4939_v62  ;;  %v4957_v19 = vpack.c.bf16 %v4945_v32, %v4941_v16 }
0x1897   : > { %v4956_v3 = vpack.c.bf16 %v4944_v15, %v4940_v61  ;;  %v4958_v36 = vpack.c.bf16 %v4946_v46, %v4942_v20 }
0x1899   : > { %5263 = vmatprep.mubr.bf16.mxu0 %v4956_v3  ;;  %5320 = vmatprep.mubr.bf16.mxu1 %v4958_v36 }
0x189a   : > { %5264 = vmatmul.mubr.bf16.gmra.mrb[164].mxu0 %v4955_v31  ;;  %5321 = vmatmul.mubr.bf16.gmra.mrb[164].mxu1 %v4957_v19 }
0x195d   : > { %v6107_v52 = vpop.f32.mrb[156].mxu0  ;;  %v6141_v11 = vpop.f32.mrb[156].mxu1 }
0x195e   : > { %v6108_v41 = vpop.f32.mrb[157].mxu0  ;;  %v6142_v12 = vpop.f32.mrb[157].mxu1 }
0x195f   : > { %v6109_v24 = vadd.f32 %v6108_v41, %v6107_v52  ;;  %v6143_v34 = vadd.f32 %v6142_v12, %v6141_v11  ;;  %v6110_v13 = vpop.f32.mrb[158].mxu0  ;;  %v6144_v42 = vpop.f32.mrb[158].mxu1 }
0x1960   : > { %v6111_v45 = vpop.f32.mrb[159].mxu0  ;;  %v6145_v63 = vpop.f32.mrb[159].mxu1 }
0x1961   : > { %v5250_v55 = vadd.f32 %v6109_v24, %v8957_v38  ;;  %v6112_v37 = vadd.f32 %v6111_v45, %v6110_v13  ;;  %v6146_v54 = vadd.f32 %v6145_v63, %v6144_v42 }
0x1963   : > { %v5307_v27 = vadd.f32 %v6143_v34, %v5250_v55  ;;  %v5253_v60 = vadd.f32 %v6112_v37, %v8961_v47 }
0x1965   : > { %v5310_v43 = vadd.f32 %v6146_v54, %v5253_v60  ;;  %v6113_v2 = vpop.f32.mrb[160].mxu0  ;;  %v6147_v50 = vpop.f32.mrb[160].mxu1  ;;  %v5329_v39 = vsel %vm791_vm0, %v5307_v27, 0.0 }
0x1966   : > { %5330 = vadd.xlane.f32.xlu1 %v5329_v39  ;;  %v6114_v30 = vpop.f32.mrb[161].mxu0  ;;  %v6148_v5 = vpop.f32.mrb[161].mxu1 }
0x1967   : > { %v6115_v10 = vadd.f32 %v6114_v30, %v6113_v2  ;;  %v6149_v49 = vadd.f32 %v6148_v5, %v6147_v50  ;;  %v6116_v17 = vpop.f32.mrb[162].mxu0  ;;  %v6150_v58 = vpop.f32.mrb[162].mxu1  ;;  %v5332_v40 = vsel %vm791_vm0, %v5310_v43, 0.0 }
0x1968   : > { %5333 = vadd.xlane.f32.xlu0 %v5332_v40  ;;  %v6117_v38 = vpop.f32.mrb[163].mxu0  ;;  %v6151_v53 = vpop.f32.mrb[163].mxu1 }
0x1969   : > { %v5258_v33 = vadd.f32 %v6115_v10, %v9004_v23  ;;  %v6118_v47 = vadd.f32 %v6117_v38, %v6116_v17  ;;  %v6152_v26 = vadd.f32 %v6151_v53, %v6150_v58 }
0x196b   : > { %v5315_v59 = vadd.f32 %v6149_v49, %v5258_v33  ;;  %v5261_v0 = vadd.f32 %v6118_v47, %v9007_v57 }
0x196d   : > { %v5318_v22 = vadd.f32 %v6152_v26, %v5261_v0  ;;  %v6119_v4 = vpop.f32.mrb[164].mxu0  ;;  %v6153_v25 = vpop.f32.mrb[164].mxu1  ;;  %v5335_v1 = vsel %vm791_vm0, %v5315_v59, 0.0 }
0x196e   : > { %v6154_v56 = vpop.f32.mrb[165].mxu1  ;;  %5336 = vadd.xlane.f32.xlu1 %v5335_v1  ;;  %v6120_v9 = vpop.f32.mrb[165].mxu0 }
0x196f   : > { %v6155_v44 = vadd.f32 %v6154_v56, %v6153_v25  ;;  %v6121_v48 = vadd.f32 %v6120_v9, %v6119_v4  ;;  %v6122_v14 = vpop.f32.mrb[166].mxu0  ;;  %v6156_v6 = vpop.f32.mrb[166].mxu1  ;;  %v5338_v7 = vsel %vm791_vm0, %v5318_v22, 0.0 }
0x1970   : > { %v6157_v23 = vpop.f32.mrb[167].mxu1  ;;  %5339 = vadd.xlane.f32.xlu0 %v5338_v7  ;;  %v6123_v18 = vpop.f32.mrb[167].mxu0 }
0x1971   : > { %v5266_v29 = vadd.f32 %v6121_v48, %v9047_v8  ;;  %v6158_v57 = vadd.f32 %v6157_v23, %v6156_v6  ;;  %v6124_v62 = vadd.f32 %v6123_v18, %v6122_v14 }
0x1973   : > { %v5269_v16 = vadd.f32 %v6124_v62, %v9032_v28  ;;  %v5323_v51 = vadd.f32 %v6155_v44, %v5266_v29 }
0x1975   : > { %v5341_v32 = vsel %vm791_vm0, %v5323_v51, 0.0  ;;  %v5326_v21 = vadd.f32 %v6158_v57, %v5269_v16 }
0x1976   : > { %5342 = vadd.xlane.f32.xlu1 %v5341_v32 }
0x1977   : > { %v5344_v35 = vsel %vm4353_vm13, %v5326_v21, 0.0 }
0x1978   : > { %5345 = vadd.xlane.f32.xlu0 %v5344_v35 }
0x19f3   : > { %v5331_v61 = vpop.xlane.xlu1 %5330 }
0x19f4   : > { %v5347_v20 = vmul.f32 0.015625, %v5331_v61 }
0x19f5   : > { %v5334_v15 = vpop.xlane.xlu0 %5333 }
0x19f6   : > { %v5353_v46 = vsub.f32 %v5307_v27, %v5347_v20  ;;  %v5348_v31 = vmul.f32 0.015625, %v5334_v15 }
0x19f8   : > { %v5354_v19 = vsub.f32 %v5310_v43, %v5348_v31  ;;  %v5359_v3 = vmul.f32 %v5353_v46, %v5353_v46 }
0x19fa   : > { %v5365_v8 = vsel %vm791_vm0, %v5359_v3, 0.0  ;;  %v5360_v36 = vmul.f32 %v5354_v19, %v5354_v19 }
0x19fb   : > { %5366 = vadd.xlane.f32.xlu1 %v5365_v8  ;;  %v5337_v28 = vpop.xlane.xlu1 %5336 }
0x19fc   : > { %v5349_v52 = vmul.f32 0.015625, %v5337_v28  ;;  %v5368_v11 = vsel %vm791_vm0, %v5360_v36, 0.0 }
0x19fd   : > { %5369 = vadd.xlane.f32.xlu0 %v5368_v11  ;;  %v5340_v41 = vpop.xlane.xlu0 %5339 }
0x19fe   : > { %v5355_v12 = vsub.f32 %v5315_v59, %v5349_v52  ;;  %v5350_v24 = vmul.f32 0.015625, %v5340_v41 }
0x1a00   : > { %v5356_v34 = vsub.f32 %v5318_v22, %v5350_v24  ;;  %v5361_v13 = vmul.f32 %v5355_v12, %v5355_v12 }
0x1a02   : > { %v5371_v42 = vsel %vm791_vm0, %v5361_v13, 0.0  ;;  %v5362_v45 = vmul.f32 %v5356_v34, %v5356_v34 }
0x1a03   : > { %5372 = vadd.xlane.f32.xlu1 %v5371_v42  ;;  %v5343_v63 = vpop.xlane.xlu1 %5342 }
0x1a04   : > { %v5351_v55 = vmul.f32 0.015625, %v5343_v63  ;;  %v5374_v37 = vsel %vm791_vm0, %v5362_v45, 0.0 }
0x1a05   : > { %5375 = vadd.xlane.f32.xlu0 %v5374_v37  ;;  %v5346_v54 = vpop.xlane.xlu0 %5345 }
0x1a06   : > { %v5357_v27 = vsub.f32 %v5323_v51, %v5351_v55  ;;  %v5352_v60 = vmul.f32 0.015625, %v5346_v54 }
0x1a08   : > { %v5358_v43 = vsub.f32 %v5326_v21, %v5352_v60  ;;  %v5363_v2 = vmul.f32 %v5357_v27, %v5357_v27 }
0x1a0a   : > { %v5377_v50 = vsel %vm791_vm0, %v5363_v2, 0.0  ;;  %v5364_v39 = vmul.f32 %v5358_v43, %v5358_v43 }
0x1a0b   : > { %5378 = vadd.xlane.f32.xlu1 %v5377_v50 }
0x1a0c   : > { %v5380_v30 = vsel %vm4353_vm13, %v5364_v39, 0.0 }
0x1a0d   : > { %5381 = vadd.xlane.f32.xlu0 %v5380_v30 }
0x1a88   : > { %v5367_v5 = vpop.xlane.xlu1 %5366 }
0x1a89   : > { %v5383_v10 = vmul.f32 0.015625, %v5367_v5 }
0x1a8a   : > { %v5370_v49 = vpop.xlane.xlu0 %5369 }
0x1a8b   : > { %v5389_v17 = vadd.f32 1e-05, %v5383_v10  ;;  %v5384_v58 = vmul.f32 0.015625, %v5370_v49 }
0x1a8d   : > { %7089 = vrsqrt.f32 %v5389_v17  ;;  %v5390_v40 = vadd.f32 1e-05, %v5384_v58 }
0x1a8f   : > { %7091 = vrsqrt.f32 %v5390_v40 }
0x1a90   : > { %v5373_v38 = vpop.xlane.xlu1 %5372 }
0x1a91   : > { %v5385_v53 = vmul.f32 0.015625, %v5373_v38 }
0x1a92   : > { %v5376_v33 = vpop.xlane.xlu0 %5375 }
0x1a93   : > { %v5391_v47 = vadd.f32 1e-05, %v5385_v53  ;;  %v5386_v26 = vmul.f32 0.015625, %v5376_v33 }
0x1a95   : > { %7093 = vrsqrt.f32 %v5391_v47  ;;  %v5392_v59 = vadd.f32 1e-05, %v5386_v26 }
0x1a97   : > { %v7090_v0 = vpop.eup %7089  ;;  %7095 = vrsqrt.f32 %v5392_v59 }
0x1a98   : > { %v5401_v22 = vmul.f32 %v7090_v0, %v5353_v46  ;;  %v5379_v4 = vpop.xlane.xlu1 %5378 }
0x1a99   : > { %v7092_v25 = vpop.eup %7091  ;;  %v5387_v1 = vmul.f32 0.015625, %v5379_v4 }
0x1a9a   : > { %5407 = vst.msk [vmem:[%s408_s30] sm:$0xff] %vm791_vm0, %v5401_v22  ;;  %v5402_v56 = vmul.f32 %v7092_v25, %v5354_v19  ;;  %v5382_v9 = vpop.xlane.xlu0 %5381 }
0x1a9b   : > { %v5393_v44 = vadd.f32 1e-05, %v5387_v1  ;;  %v5388_v48 = vmul.f32 0.015625, %v5382_v9 }
0x1a9c   : > { %5408 = vst.msk [vmem:[%s408_s30 + $0x8] sm:$0xff] %vm791_vm0, %v5402_v56 }
0x1a9d   : > { %7097 = vrsqrt.f32 %v5393_v44  ;;  %v5394_v14 = vadd.f32 1e-05, %v5388_v48 }
0x1a9f   : > { %v7094_v6 = vpop.eup %7093  ;;  %7099 = vrsqrt.f32 %v5394_v14 }
0x1aa0   : > { %v5403_v7 = vmul.f32 %v7094_v6, %v5355_v12 }
0x1aa1   : > { %v7096_v23 = vpop.eup %7095 }
0x1aa2   : > { %5409 = vst.msk [vmem:[%s408_s30 + $0x10] sm:$0xff] %vm791_vm0, %v5403_v7  ;;  %v5404_v18 = vmul.f32 %v7096_v23, %v5356_v34 }
0x1aa4   : > { %5410 = vst.msk [vmem:[%s408_s30 + $0x18] sm:$0xff] %vm791_vm0, %v5404_v18 }
0x1aa7   : > { %v7098_v29 = vpop.eup %7097 }
0x1aa8   : > { %v5405_v57 = vmul.f32 %v7098_v29, %v5357_v27 }
0x1aa9   : > { %v7100_v62 = vpop.eup %7099 }
0x1aaa   : > { %5411 = vst.msk [vmem:[%s408_s30 + $0x20] sm:$0xff] %vm791_vm0, %v5405_v57  ;;  %v5406_v16 = vmul.f32 %v7100_v62, %v5358_v43 }
0x1aac   : > { %5412 = vst.msk [vmem:[%s408_s30 + $0x28] sm:$0x1f] %vm4353_vm13, %v5406_v16 }
0x1aad PF: > { %s23_s17 = sadd.s32 1, %s7130_s17  }
0x1aae   : > { %p20_p1 = scmp.ge.s32.totalorder %s23_s17, 4  }
0x1ab0   :  { %22 = sbr.rel (!%p20_p1) target bundleno = 1 (0x1), region = 114 }
0x1ab7   :  { %5450 = vsyncpa [#allocation7], 1 }
0x1ab8   :  { %5452 = vsyncpa [#allocation7 + $0x1], 1 }

</bundles_post_ra>
